<compile_context>
chip_gen: v7x
topology: tpu7x:2x2x1
jax: 0.10.0
libtpu: 0.0.40
codegen_flags: <defaults>
</compile_context>

<pallas_src>
import functools

import jax
import jax.numpy as jnp
import numpy as np
from jax import lax
from jax.experimental import pallas as pl
from jax.experimental.pallas import tpu as pltpu


# -----------------------------------------------------------------------------
# Pallas kernel: BiLSTM recurrence + hidden2tag projection + CRF forward algo.
# -----------------------------------------------------------------------------
def _bilstm_crf_kernel(
    emb_ref,       # (T, B, E)   f32  embedded tokens (time-major)
    oh_ref,        # (T, B, K)   f32  one-hot tags
    mask_ref,      # (T, B, 1)   f32  mask
    last_oh_ref,   # (B, K)      f32  one-hot of last (unmasked) tag per sequence
    w_ih_all_ref,  # (E, 8H)     [forward 4H | backward 4H]
    b_all_ref,     # (1, 8H)
    w_hh_f_ref,    # (H, 4H)
    w_hh_b_ref,    # (H, 4H)
    w_h2t_ref,     # (2H, K)
    b_h2t_ref,     # (1, K)
    start_ref,     # (1, K)
    end_ref,       # (1, K)
    trans_t_ref,   # (K, K)      transposed transitions
    loss_ref,      # (1, 1)      output
    xp_ref,        # (2, T, B, 4H) VMEM scratch: hoisted input projections
    hf_ref,        # (T, B, H)     VMEM scratch: forward hidden states
    hb_ref,        # (T, B, H)     VMEM scratch: backward hidden states
):
    T, B, E = emb_ref.shape
    H = w_hh_f_ref.shape[0]
    K = trans_t_ref.shape[0]
    G = 4 * H
    f32 = jnp.float32

    # ---- hoisted, loop-invariant parameter loads ----------------------------
    w_hh_f = w_hh_f_ref[...]
    w_hh_b = w_hh_b_ref[...]
    start = start_ref[...]                 # (1, K)
    end = end_ref[...]                     # (1, K)
    trans_t = trans_t_ref[...]             # (K, K)
    trans_b = trans_t[None, :, :]          # (1, K, K) — broadcast hoisted

    # ---- hoisted input projection: ONE MXU matmul for both directions -------
    emb2d = emb_ref[...].reshape(T * B, E)
    xw = jnp.dot(emb2d, w_ih_all_ref[...],
                 preferred_element_type=f32) + b_all_ref[...]     # (T*B, 8H)
    xp_ref[0] = xw[:, :G].reshape(T, B, G)   # forward-direction pre-gates
    xp_ref[1] = xw[:, G:].reshape(T, B, G)   # backward-direction pre-gates

    # ---- interleaved bidirectional recurrence (fully unrolled) --------------
    # Gate slices are 32-lane sub-ranges of one (B, 4H) vreg; acceptable at
    # H=32 — padding H to 128 (review item) only pays off at production sizes.
    def cell(pre, h, c, w_hh):
        g = pre + jnp.dot(h, w_hh, preferred_element_type=f32)    # (B, 4H)
        i_g = jax.nn.sigmoid(g[:, 0 * H:1 * H])
        f_g = jax.nn.sigmoid(g[:, 1 * H:2 * H])
        g_g = jnp.tanh(g[:, 2 * H:3 * H])
        o_g = jax.nn.sigmoid(g[:, 3 * H:4 * H])
        c_new = f_g * c + i_g * g_g
        h_new = o_g * jnp.tanh(c_new)
        return h_new, c_new

    h_f = jnp.zeros((B, H), f32)
    c_f = jnp.zeros((B, H), f32)
    h_b = jnp.zeros((B, H), f32)
    c_b = jnp.zeros((B, H), f32)
    # Static Python loop == full unroll with static ref indices: gives the LLO
    # scheduler full visibility across iterations and both directions.
    for t in range(T):
        tb = T - 1 - t
        h_f, c_f = cell(xp_ref[0, t], h_f, c_f, w_hh_f)
        h_b, c_b = cell(xp_ref[1, tb], h_b, c_b, w_hh_b)
        hf_ref[t] = h_f
        hb_ref[tb] = h_b

    # ---- hidden2tag projection (no concat: split-weight matmuls) ------------
    w_h2t = w_h2t_ref[...]                                        # (2H, K)
    hf2d = hf_ref[...].reshape(T * B, H)
    hb2d = hb_ref[...].reshape(T * B, H)
    em2d = (jnp.dot(hf2d, w_h2t[:H], preferred_element_type=f32)
            + jnp.dot(hb2d, w_h2t[H:], preferred_element_type=f32)
            + b_h2t_ref[...])                                     # (T*B, K)
    em3 = em2d.reshape(T, B, K)                                   # value, tiny

    oh3 = oh_ref[...]                                             # (T, B, K)
    mask3 = mask_ref[...]                                         # (T, B, 1)

    # ---- fused CRF numerator + denominator (unrolled over t) ----------------
    oh0 = oh3[0]
    # emit[0] is added unmasked — matches torchcrf, which requires mask[:,0]==1.
    num_b = (jnp.sum(start * oh0, axis=-1, keepdims=True)
             + jnp.sum(em3[0] * oh0, axis=-1, keepdims=True))     # (B, 1)
    alpha = start + em3[0]                                        # (B, K)

    for t in range(1, T):
        e_t = em3[t]                                              # (B, K)
        m_t = mask3[t]                                            # (B, 1)
        oh_t = oh3[t]
        oh_p = oh3[t - 1]

        # numerator: gold emission + transition score at step t (masked)
        emit_t = jnp.sum(e_t * oh_t, axis=-1, keepdims=True)      # (B, 1)
        proj = jnp.dot(oh_t, trans_t, preferred_element_type=f32) # (B, K)
        tr_t = jnp.sum(proj * oh_p, axis=-1, keepdims=True)       # (B, 1)
        num_b = num_b + m_t * (emit_t + tr_t)

        # denominator: forward algorithm, logsumexp over previous tag
        # scores[b, j, i] = alpha[b, i] + transitions[i, j]
        scores = alpha[:, None, :] + trans_b                      # (B, K, K)
        mmax = jnp.max(scores, axis=-1, keepdims=True)            # (B, K, 1)
        lse = jnp.log(jnp.sum(jnp.exp(scores - mmax), axis=-1,
                              keepdims=True)) + mmax              # (B, K, 1)
        new_alpha = lse[:, :, 0] + e_t                            # (B, K)
        alpha = jnp.where(m_t > 0.0, new_alpha, alpha)

    num_b = num_b + jnp.sum(end * last_oh_ref[...], axis=-1, keepdims=True)
    num_total = jnp.sum(num_b)

    alpha = alpha + end                                           # (B, K)
    amax = jnp.max(alpha, axis=-1, keepdims=True)                 # (B, 1)
    denom_total = jnp.sum(
        amax + jnp.log(jnp.sum(jnp.exp(alpha - amax), axis=-1, keepdims=True)))

    loss_ref[...] = jnp.full((1, 1), -(num_total - denom_total), dtype=f32)


# -----------------------------------------------------------------------------
# Wrapper: embedding lookup / layout plumbing in plain JAX, hot path in Pallas.
# -----------------------------------------------------------------------------
@functools.partial(jax.jit, static_argnames=())
def bilstm_crf_loss(params, x_ids, tags, mask):
    B, T = x_ids.shape
    H = params["w_hh_f"].shape[0]
    K = params["trans"].shape[0]

    emb = jnp.take(params["embedding"], x_ids, axis=0)          # (B, T, E)
    emb_tm = jnp.transpose(emb, (1, 0, 2)).astype(jnp.float32)  # (T, B, E)

    oh = jax.nn.one_hot(tags, K, dtype=jnp.float32)             # (B, T, K)
    oh_tm = jnp.transpose(oh, (1, 0, 2))                        # (T, B, K)

    maskf = mask.astype(jnp.float32)                            # (B, T)
    mask_tm = jnp.transpose(maskf)[:, :, None]                  # (T, B, 1)

    seq_len = jnp.sum(mask, axis=1).astype(jnp.int32)           # (B,)
    last_tag = jnp.take_along_axis(tags, (seq_len - 1)[:, None], axis=1)[:, 0]
    last_oh = jax.nn.one_hot(last_tag, K, dtype=jnp.float32)    # (B, K)

    trans_t = jnp.transpose(params["trans"])                    # (K, K)

    # Parameter plumbing for the single hoisted x-projection matmul.
    w_ih_all = jnp.concatenate([params["w_ih_f"], params["w_ih_b"]], axis=1)  # (E, 8H)
    b_all = jnp.concatenate([params["b_f"], params["b_b"]], axis=1)           # (1, 8H)

    inputs = (
        emb_tm, oh_tm, mask_tm, last_oh,
        w_ih_all, b_all,
        params["w_hh_f"], params["w_hh_b"],
        params["w_h2t"], params["b_h2t"],
        params["start"], params["end"], trans_t,
    )

    vmem_spec = pl.BlockSpec(memory_space=pltpu.MemorySpace.VMEM)
    loss = pl.pallas_call(
        _bilstm_crf_kernel,
        out_shape=jax.ShapeDtypeStruct((1, 1), jnp.float32),
        in_specs=[vmem_spec] * len(inputs),
        out_specs=vmem_spec,
        scratch_shapes=[
            pltpu.VMEM((2, T, B, 4 * H), jnp.float32),  # hoisted input projections
            pltpu.VMEM((T, B, H), jnp.float32),         # forward hidden states
            pltpu.VMEM((T, B, H), jnp.float32),         # backward hidden states
        ],
    )(*inputs)
    return loss[0, 0]


# -----------------------------------------------------------------------------
# Deterministic parameter init (shapes follow the PyTorch module).
# -----------------------------------------------------------------------------
def init_params(key, vocab_size, E, H, K):
    ks = jax.random.split(key, 12)
    u = lambda k, shape, a: jax.random.uniform(k, shape, jnp.float32, -a, a)
    s_lstm = 1.0 / np.sqrt(H)
    s_lin = 1.0 / np.sqrt(2 * H)
    return dict(
        embedding=jax.random.normal(ks[0], (vocab_size, E), jnp.float32),
        w_ih_f=u(ks[1], (E, 4 * H), s_lstm),
        w_hh_f=u(ks[2], (H, 4 * H), s_lstm),
        b_f=u(ks[3], (1, 4 * H), s_lstm),
        w_ih_b=u(ks[4], (E, 4 * H), s_lstm),
        w_hh_b=u(ks[5], (H, 4 * H), s_lstm),
        b_b=u(ks[6], (1, 4 * H), s_lstm),
        w_h2t=u(ks[7], (2 * H, K), s_lin),
        b_h2t=u(ks[8], (1, K), s_lin),
        start=u(ks[9], (1, K), 0.1),
        end=u(ks[10], (1, K), 0.1),
        trans=u(ks[11], (K, K), 0.1),
    )


# -----------------------------------------------------------------------------
# Pure-JAX reference (same math) for a sanity check.
# -----------------------------------------------------------------------------
def reference_loss(params, x_ids, tags, mask):
    emb = jnp.take(params["embedding"], x_ids, axis=0)  # (B, T, E)
    B, T, _ = emb.shape
    H = params["w_hh_f"].shape[0]
    K = params["trans"].shape[0]

    def run_lstm(xs, w_ih, w_hh, b, reverse):
        def step(carry, x_t):
            h, c = carry
            g = x_t @ w_ih + h @ w_hh + b[0]
            i = jax.nn.sigmoid(g[:, :H])
            f = jax.nn.sigmoid(g[:, H:2 * H])
            gg = jnp.tanh(g[:, 2 * H:3 * H])
            o = jax.nn.sigmoid(g[:, 3 * H:4 * H])
            c = f * c + i * gg
            h = o * jnp.tanh(c)
            return (h, c), h
        xs_t = jnp.transpose(xs, (1, 0, 2))
        if reverse:
            xs_t = xs_t[::-1]
        _, hs = lax.scan(step, (jnp.zeros((B, H)), jnp.zeros((B, H))), xs_t)
        if reverse:
            hs = hs[::-1]
        return jnp.transpose(hs, (1, 0, 2))

    hf = run_lstm(emb, params["w_ih_f"], params["w_hh_f"], params["b_f"], False)
    hb = run_lstm(emb, params["w_ih_b"], params["w_hh_b"], params["b_b"], True)
    em = jnp.concatenate([hf, hb], -1) @ params["w_h2t"] + params["b_h2t"][0]

    maskf = mask.astype(jnp.float32)
    oh = jax.nn.one_hot(tags, K)
    emit = jnp.sum(em * oh, -1)
    tsc = jnp.einsum("bti,ij,btj->bt", oh[:, :-1], params["trans"], oh[:, 1:])
    seq_len = jnp.sum(mask, 1).astype(jnp.int32)
    last_tag = jnp.take_along_axis(tags, (seq_len - 1)[:, None], 1)[:, 0]
    num = (params["start"][0][tags[:, 0]] + emit[:, 0]
           + jnp.sum(maskf[:, 1:] * (tsc + emit[:, 1:]), 1)
           + params["end"][0][last_tag])

    alpha = params["start"] + em[:, 0]
    def body(alpha, inp):
        e_t, m_t = inp
        sc = alpha[:, :, None] + params["trans"][None] + e_t[:, None, :]
        new = jax.nn.logsumexp(sc, axis=1)
        return jnp.where(m_t[:, None] > 0, new, alpha), None
    alpha, _ = lax.scan(body, alpha,
                        (jnp.transpose(em, (1, 0, 2))[1:], maskf.T[1:]))
    denom = jax.nn.logsumexp(alpha + params["end"], -1)
    return -jnp.sum(num - denom)


if __name__ == "__main__":
    B, T, E, H, K, V = 2, 8, 16, 32, 5, 50

    key = jax.random.PRNGKey(0)
    pkey, xkey, ykey = jax.random.split(key, 3)
    params = init_params(pkey, V, E, H, K)

    x = jax.random.randint(xkey, (B, T), 0, V, dtype=jnp.int32)
    y = jax.random.randint(ykey, (B, T), 0, K, dtype=jnp.int32)
    # mask[:, 0] must be 1 (torchcrf requirement); make batch 1 one step shorter.
    mask = jnp.ones((B, T), jnp.int32).at[1, T - 1].set(0)

    loss = bilstm_crf_loss(params, x, y, mask)
    loss = jax.block_until_ready(loss)

    ref = reference_loss(params, x, y, mask)
    assert np.isfinite(float(loss))
    assert np.allclose(float(loss), float(ref), rtol=2e-2, atol=2e-2), (loss, ref)

    # TODO(synk): CRF.decode (Viterbi, used only by `predict`) is not implemented;
    # the forward pass returns only the NLL loss, as in the PyTorch module.
    print("KERNEL_OK")
</pallas_src>

<mosaic_0001>
module attributes {stable_mosaic.version = 11 : i64} {
  func.func @_bilstm_crf_kernel(%arg0: memref<8x2x16xf32, #tpu.memory_space<vmem>>, %arg1: memref<8x2x5xf32, #tpu.memory_space<vmem>>, %arg2: memref<8x2x1xf32, #tpu.memory_space<vmem>>, %arg3: memref<2x5xf32, #tpu.memory_space<vmem>>, %arg4: memref<16x256xf32, #tpu.memory_space<vmem>>, %arg5: memref<1x256xf32, #tpu.memory_space<vmem>>, %arg6: memref<32x128xf32, #tpu.memory_space<vmem>>, %arg7: memref<32x128xf32, #tpu.memory_space<vmem>>, %arg8: memref<64x5xf32, #tpu.memory_space<vmem>>, %arg9: memref<1x5xf32, #tpu.memory_space<vmem>>, %arg10: memref<1x5xf32, #tpu.memory_space<vmem>>, %arg11: memref<1x5xf32, #tpu.memory_space<vmem>>, %arg12: memref<5x5xf32, #tpu.memory_space<vmem>>, %arg13: memref<1x1xf32, #tpu.memory_space<vmem>>, %arg14: memref<2x8x2x128xf32, #tpu.memory_space<vmem>>, %arg15: memref<8x2x32xf32, #tpu.memory_space<vmem>>, %arg16: memref<8x2x32xf32, #tpu.memory_space<vmem>>) attributes {dimension_semantics = [], scalar_prefetch = 0 : i64, scratch_operands = 3 : i64, tpu.core_type = #tpu.core_type<tc>} {
    %c0 = arith.constant 0 : index
    %c0_0 = arith.constant 0 : index
    %0 = vector.load %arg6[%c0, %c0_0] : memref<32x128xf32, #tpu.memory_space<vmem>>, vector<32x128xf32>
    %c0_1 = arith.constant 0 : index
    %c0_2 = arith.constant 0 : index
    %1 = vector.load %arg7[%c0_1, %c0_2] : memref<32x128xf32, #tpu.memory_space<vmem>>, vector<32x128xf32>
    %c0_3 = arith.constant 0 : index
    %c0_4 = arith.constant 0 : index
    %2 = vector.load %arg10[%c0_3, %c0_4] : memref<1x5xf32, #tpu.memory_space<vmem>>, vector<1x5xf32>
    %c0_5 = arith.constant 0 : index
    %c0_6 = arith.constant 0 : index
    %3 = vector.load %arg11[%c0_5, %c0_6] : memref<1x5xf32, #tpu.memory_space<vmem>>, vector<1x5xf32>
    %c0_7 = arith.constant 0 : index
    %c0_8 = arith.constant 0 : index
    %4 = vector.load %arg12[%c0_7, %c0_8] : memref<5x5xf32, #tpu.memory_space<vmem>>, vector<5x5xf32>
    %5 = vector.shape_cast %4 : vector<5x5xf32> to vector<1x5x5xf32>
    %c0_9 = arith.constant 0 : index
    %c0_10 = arith.constant 0 : index
    %c0_11 = arith.constant 0 : index
    %6 = vector.load %arg0[%c0_9, %c0_10, %c0_11] : memref<8x2x16xf32, #tpu.memory_space<vmem>>, vector<8x2x16xf32>
    %7 = vector.shape_cast %6 : vector<8x2x16xf32> to vector<16x16xf32>
    %c0_12 = arith.constant 0 : index
    %c0_13 = arith.constant 0 : index
    %8 = vector.load %arg4[%c0_12, %c0_13] : memref<16x256xf32, #tpu.memory_space<vmem>>, vector<16x256xf32>
    %cst = arith.constant dense<0.000000e+00> : vector<16x256xf32>
    %9 = tpu.matmul %7, %8, %cst {dimension_numbers = #tpu.dot_dimension_numbers<[1], [0], [0], [1], [0, 0, 1, 1], [], []>} : vector<16x16xf32>, vector<16x256xf32>, vector<16x256xf32> -> vector<16x256xf32>
    %c0_14 = arith.constant 0 : index
    %c0_15 = arith.constant 0 : index
    %10 = vector.load %arg5[%c0_14, %c0_15] : memref<1x256xf32, #tpu.memory_space<vmem>>, vector<1x256xf32>
    %11 = vector.broadcast %10 : vector<1x256xf32> to vector<16x256xf32>
    %12 = arith.addf %9, %11 : vector<16x256xf32>
    %13 = vector.extract_strided_slice %12 {offsets = [0, 0], sizes = [16, 128], strides = [1, 1]} : vector<16x256xf32> to vector<16x128xf32>
    %14 = vector.shape_cast %13 : vector<16x128xf32> to vector<8x2x128xf32>
    %c0_16 = arith.constant 0 : index
    %c0_17 = arith.constant 0 : index
    %c0_18 = arith.constant 0 : index
    %c0_19 = arith.constant 0 : index
    %15 = vector.load %arg14[%c0_16, %c0_17, %c0_18, %c0_19] : memref<2x8x2x128xf32, #tpu.memory_space<vmem>>, vector<1x8x2x128xf32>
    %16 = vector.shape_cast %15 : vector<1x8x2x128xf32> to vector<8x2x128xf32>
    %17 = vector.shape_cast %14 : vector<8x2x128xf32> to vector<1x8x2x128xf32>
    tpu.vector_store %arg14[%c0_16, %c0_17, %c0_18, %c0_19], %17 {strides = array<i32>} : memref<2x8x2x128xf32, #tpu.memory_space<vmem>>, vector<1x8x2x128xf32>,
    %18 = vector.extract_strided_slice %12 {offsets = [0, 128], sizes = [16, 128], strides = [1, 1]} : vector<16x256xf32> to vector<16x128xf32>
    %19 = vector.shape_cast %18 : vector<16x128xf32> to vector<8x2x128xf32>
    %c1 = arith.constant 1 : index
    %c0_20 = arith.constant 0 : index
    %c0_21 = arith.constant 0 : index
    %c0_22 = arith.constant 0 : index
    %20 = vector.load %arg14[%c1, %c0_20, %c0_21, %c0_22] : memref<2x8x2x128xf32, #tpu.memory_space<vmem>>, vector<1x8x2x128xf32>
    %21 = vector.shape_cast %20 : vector<1x8x2x128xf32> to vector<8x2x128xf32>
    %22 = vector.shape_cast %19 : vector<8x2x128xf32> to vector<1x8x2x128xf32>
    tpu.vector_store %arg14[%c1, %c0_20, %c0_21, %c0_22], %22 {strides = array<i32>} : memref<2x8x2x128xf32, #tpu.memory_space<vmem>>, vector<1x8x2x128xf32>,
    %cst_23 = arith.constant 0.000000e+00 : f32
    %23 = vector.broadcast %cst_23 : f32 to vector<2x32xf32>
    %cst_24 = arith.constant 0.000000e+00 : f32
    %24 = vector.broadcast %cst_24 : f32 to vector<2x32xf32>
    %cst_25 = arith.constant 0.000000e+00 : f32
    %25 = vector.broadcast %cst_25 : f32 to vector<2x32xf32>
    %cst_26 = arith.constant 0.000000e+00 : f32
    %26 = vector.broadcast %cst_26 : f32 to vector<2x32xf32>
    %c0_27 = arith.constant 0 : index
    %c0_28 = arith.constant 0 : index
    %c0_29 = arith.constant 0 : index
    %c0_30 = arith.constant 0 : index
    %27 = vector.load %arg14[%c0_27, %c0_28, %c0_29, %c0_30] : memref<2x8x2x128xf32, #tpu.memory_space<vmem>>, vector<1x1x2x128xf32>
    %28 = vector.shape_cast %27 : vector<1x1x2x128xf32> to vector<2x128xf32>
    %cst_31 = arith.constant dense<0.000000e+00> : vector<2x128xf32>
    %29 = tpu.matmul %23, %0, %cst_31 {dimension_numbers = #tpu.dot_dimension_numbers<[1], [0], [0], [1], [0, 0, 1, 1], [], []>} : vector<2x32xf32>, vector<32x128xf32>, vector<2x128xf32> -> vector<2x128xf32>
    %30 = arith.addf %28, %29 : vector<2x128xf32>
    %31 = vector.extract_strided_slice %30 {offsets = [0, 0], sizes = [2, 32], strides = [1, 1]} : vector<2x128xf32> to vector<2x32xf32>
    %32 = arith.negf %31 : vector<2x32xf32>
    %33 = math.exp %32 : vector<2x32xf32>
    %cst_32 = arith.constant 1.000000e+00 : f32
    %34 = vector.broadcast %cst_32 : f32 to vector<2x32xf32>
    %35 = arith.addf %34, %33 : vector<2x32xf32>
    %36 = arith.divf %34, %35 : vector<2x32xf32>
    %37 = vector.extract_strided_slice %30 {offsets = [0, 32], sizes = [2, 32], strides = [1, 1]} : vector<2x128xf32> to vector<2x32xf32>
    %38 = arith.negf %37 : vector<2x32xf32>
    %39 = math.exp %38 : vector<2x32xf32>
    %cst_33 = arith.constant 1.000000e+00 : f32
    %40 = vector.broadcast %cst_33 : f32 to vector<2x32xf32>
    %41 = arith.addf %40, %39 : vector<2x32xf32>
    %42 = arith.divf %40, %41 : vector<2x32xf32>
    %43 = vector.extract_strided_slice %30 {offsets = [0, 64], sizes = [2, 32], strides = [1, 1]} : vector<2x128xf32> to vector<2x32xf32>
    %44 = math.tanh %43 : vector<2x32xf32>
    %45 = vector.extract_strided_slice %30 {offsets = [0, 96], sizes = [2, 32], strides = [1, 1]} : vector<2x128xf32> to vector<2x32xf32>
    %46 = arith.negf %45 : vector<2x32xf32>
    %47 = math.exp %46 : vector<2x32xf32>
    %cst_34 = arith.constant 1.000000e+00 : f32
    %48 = vector.broadcast %cst_34 : f32 to vector<2x32xf32>
    %49 = arith.addf %48, %47 : vector<2x32xf32>
    %50 = arith.divf %48, %49 : vector<2x32xf32>
    %51 = arith.mulf %42, %24 : vector<2x32xf32>
    %52 = arith.mulf %36, %44 : vector<2x32xf32>
    %53 = arith.addf %51, %52 : vector<2x32xf32>
    %54 = math.tanh %53 : vector<2x32xf32>
    %55 = arith.mulf %50, %54 : vector<2x32xf32>
    %c1_35 = arith.constant 1 : index
    %c7 = arith.constant 7 : index
    %c0_36 = arith.constant 0 : index
    %c0_37 = arith.constant 0 : index
    %56 = vector.load %arg14[%c1_35, %c7, %c0_36, %c0_37] : memref<2x8x2x128xf32, #tpu.memory_space<vmem>>, vector<1x1x2x128xf32>
    %57 = vector.shape_cast %56 : vector<1x1x2x128xf32> to vector<2x128xf32>
    %cst_38 = arith.constant dense<0.000000e+00> : vector<2x128xf32>
    %58 = tpu.matmul %25, %1, %cst_38 {dimension_numbers = #tpu.dot_dimension_numbers<[1], [0], [0], [1], [0, 0, 1, 1], [], []>} : vector<2x32xf32>, vector<32x128xf32>, vector<2x128xf32> -> vector<2x128xf32>
    %59 = arith.addf %57, %58 : vector<2x128xf32>
    %60 = vector.extract_strided_slice %59 {offsets = [0, 0], sizes = [2, 32], strides = [1, 1]} : vector<2x128xf32> to vector<2x32xf32>
    %61 = arith.negf %60 : vector<2x32xf32>
    %62 = math.exp %61 : vector<2x32xf32>
    %cst_39 = arith.constant 1.000000e+00 : f32
    %63 = vector.broadcast %cst_39 : f32 to vector<2x32xf32>
    %64 = arith.addf %63, %62 : vector<2x32xf32>
    %65 = arith.divf %63, %64 : vector<2x32xf32>
    %66 = vector.extract_strided_slice %59 {offsets = [0, 32], sizes = [2, 32], strides = [1, 1]} : vector<2x128xf32> to vector<2x32xf32>
    %67 = arith.negf %66 : vector<2x32xf32>
    %68 = math.exp %67 : vector<2x32xf32>
    %cst_40 = arith.constant 1.000000e+00 : f32
    %69 = vector.broadcast %cst_40 : f32 to vector<2x32xf32>
    %70 = arith.addf %69, %68 : vector<2x32xf32>
    %71 = arith.divf %69, %70 : vector<2x32xf32>
    %72 = vector.extract_strided_slice %59 {offsets = [0, 64], sizes = [2, 32], strides = [1, 1]} : vector<2x128xf32> to vector<2x32xf32>
    %73 = math.tanh %72 : vector<2x32xf32>
    %74 = vector.extract_strided_slice %59 {offsets = [0, 96], sizes = [2, 32], strides = [1, 1]} : vector<2x128xf32> to vector<2x32xf32>
    %75 = arith.negf %74 : vector<2x32xf32>
    %76 = math.exp %75 : vector<2x32xf32>
    %cst_41 = arith.constant 1.000000e+00 : f32
    %77 = vector.broadcast %cst_41 : f32 to vector<2x32xf32>
    %78 = arith.addf %77, %76 : vector<2x32xf32>
    %79 = arith.divf %77, %78 : vector<2x32xf32>
    %80 = arith.mulf %71, %26 : vector<2x32xf32>
    %81 = arith.mulf %65, %73 : vector<2x32xf32>
    %82 = arith.addf %80, %81 : vector<2x32xf32>
    %83 = math.tanh %82 : vector<2x32xf32>
    %84 = arith.mulf %79, %83 : vector<2x32xf32>
    %c0_42 = arith.constant 0 : index
    %c0_43 = arith.constant 0 : index
    %c0_44 = arith.constant 0 : index
    %85 = vector.load %arg15[%c0_42, %c0_43, %c0_44] : memref<8x2x32xf32, #tpu.memory_space<vmem>>, vector<1x2x32xf32>
    %86 = vector.shape_cast %85 : vector<1x2x32xf32> to vector<2x32xf32>
    %87 = vector.shape_cast %55 : vector<2x32xf32> to vector<1x2x32xf32>
    tpu.vector_store %arg15[%c0_42, %c0_43, %c0_44], %87 {strides = array<i32>} : memref<8x2x32xf32, #tpu.memory_space<vmem>>, vector<1x2x32xf32>,
    %c7_45 = arith.constant 7 : index
    %c0_46 = arith.constant 0 : index
    %c0_47 = arith.constant 0 : index
    %88 = vector.load %arg16[%c7_45, %c0_46, %c0_47] : memref<8x2x32xf32, #tpu.memory_space<vmem>>, vector<1x2x32xf32>
    %89 = vector.shape_cast %88 : vector<1x2x32xf32> to vector<2x32xf32>
    %90 = vector.shape_cast %84 : vector<2x32xf32> to vector<1x2x32xf32>
    tpu.vector_store %arg16[%c7_45, %c0_46, %c0_47], %90 {strides = array<i32>} : memref<8x2x32xf32, #tpu.memory_space<vmem>>, vector<1x2x32xf32>,
    %c0_48 = arith.constant 0 : index
    %c1_49 = arith.constant 1 : index
    %c0_50 = arith.constant 0 : index
    %c0_51 = arith.constant 0 : index
    %91 = vector.load %arg14[%c0_48, %c1_49, %c0_50, %c0_51] : memref<2x8x2x128xf32, #tpu.memory_space<vmem>>, vector<1x1x2x128xf32>
    %92 = vector.shape_cast %91 : vector<1x1x2x128xf32> to vector<2x128xf32>
    %cst_52 = arith.constant dense<0.000000e+00> : vector<2x128xf32>
    %93 = tpu.matmul %55, %0, %cst_52 {dimension_numbers = #tpu.dot_dimension_numbers<[1], [0], [0], [1], [0, 0, 1, 1], [], []>} : vector<2x32xf32>, vector<32x128xf32>, vector<2x128xf32> -> vector<2x128xf32>
    %94 = arith.addf %92, %93 : vector<2x128xf32>
    %95 = vector.extract_strided_slice %94 {offsets = [0, 0], sizes = [2, 32], strides = [1, 1]} : vector<2x128xf32> to vector<2x32xf32>
    %96 = arith.negf %95 : vector<2x32xf32>
    %97 = math.exp %96 : vector<2x32xf32>
    %cst_53 = arith.constant 1.000000e+00 : f32
    %98 = vector.broadcast %cst_53 : f32 to vector<2x32xf32>
    %99 = arith.addf %98, %97 : vector<2x32xf32>
    %100 = arith.divf %98, %99 : vector<2x32xf32>
    %101 = vector.extract_strided_slice %94 {offsets = [0, 32], sizes = [2, 32], strides = [1, 1]} : vector<2x128xf32> to vector<2x32xf32>
    %102 = arith.negf %101 : vector<2x32xf32>
    %103 = math.exp %102 : vector<2x32xf32>
    %cst_54 = arith.constant 1.000000e+00 : f32
    %104 = vector.broadcast %cst_54 : f32 to vector<2x32xf32>
    %105 = arith.addf %104, %103 : vector<2x32xf32>
    %106 = arith.divf %104, %105 : vector<2x32xf32>
    %107 = vector.extract_strided_slice %94 {offsets = [0, 64], sizes = [2, 32], strides = [1, 1]} : vector<2x128xf32> to vector<2x32xf32>
    %108 = math.tanh %107 : vector<2x32xf32>
    %109 = vector.extract_strided_slice %94 {offsets = [0, 96], sizes = [2, 32], strides = [1, 1]} : vector<2x128xf32> to vector<2x32xf32>
    %110 = arith.negf %109 : vector<2x32xf32>
    %111 = math.exp %110 : vector<2x32xf32>
    %cst_55 = arith.constant 1.000000e+00 : f32
    %112 = vector.broadcast %cst_55 : f32 to vector<2x32xf32>
    %113 = arith.addf %112, %111 : vector<2x32xf32>
    %114 = arith.divf %112, %113 : vector<2x32xf32>
    %115 = arith.mulf %106, %53 : vector<2x32xf32>
    %116 = arith.mulf %100, %108 : vector<2x32xf32>
    %117 = arith.addf %115, %116 : vector<2x32xf32>
    %118 = math.tanh %117 : vector<2x32xf32>
    %119 = arith.mulf %114, %118 : vector<2x32xf32>
    %c1_56 = arith.constant 1 : index
    %c6 = arith.constant 6 : index
    %c0_57 = arith.constant 0 : index
    %c0_58 = arith.constant 0 : index
    %120 = vector.load %arg14[%c1_56, %c6, %c0_57, %c0_58] : memref<2x8x2x128xf32, #tpu.memory_space<vmem>>, vector<1x1x2x128xf32>
    %121 = vector.shape_cast %120 : vector<1x1x2x128xf32> to vector<2x128xf32>
    %cst_59 = arith.constant dense<0.000000e+00> : vector<2x128xf32>
    %122 = tpu.matmul %84, %1, %cst_59 {dimension_numbers = #tpu.dot_dimension_numbers<[1], [0], [0], [1], [0, 0, 1, 1], [], []>} : vector<2x32xf32>, vector<32x128xf32>, vector<2x128xf32> -> vector<2x128xf32>
    %123 = arith.addf %121, %122 : vector<2x128xf32>
    %124 = vector.extract_strided_slice %123 {offsets = [0, 0], sizes = [2, 32], strides = [1, 1]} : vector<2x128xf32> to vector<2x32xf32>
    %125 = arith.negf %124 : vector<2x32xf32>
    %126 = math.exp %125 : vector<2x32xf32>
    %cst_60 = arith.constant 1.000000e+00 : f32
    %127 = vector.broadcast %cst_60 : f32 to vector<2x32xf32>
    %128 = arith.addf %127, %126 : vector<2x32xf32>
    %129 = arith.divf %127, %128 : vector<2x32xf32>
    %130 = vector.extract_strided_slice %123 {offsets = [0, 32], sizes = [2, 32], strides = [1, 1]} : vector<2x128xf32> to vector<2x32xf32>
    %131 = arith.negf %130 : vector<2x32xf32>
    %132 = math.exp %131 : vector<2x32xf32>
    %cst_61 = arith.constant 1.000000e+00 : f32
    %133 = vector.broadcast %cst_61 : f32 to vector<2x32xf32>
    %134 = arith.addf %133, %132 : vector<2x32xf32>
    %135 = arith.divf %133, %134 : vector<2x32xf32>
    %136 = vector.extract_strided_slice %123 {offsets = [0, 64], sizes = [2, 32], strides = [1, 1]} : vector<2x128xf32> to vector<2x32xf32>
    %137 = math.tanh %136 : vector<2x32xf32>
    %138 = vector.extract_strided_slice %123 {offsets = [0, 96], sizes = [2, 32], strides = [1, 1]} : vector<2x128xf32> to vector<2x32xf32>
    %139 = arith.negf %138 : vector<2x32xf32>
    %140 = math.exp %139 : vector<2x32xf32>
    %cst_62 = arith.constant 1.000000e+00 : f32
    %141 = vector.broadcast %cst_62 : f32 to vector<2x32xf32>
    %142 = arith.addf %141, %140 : vector<2x32xf32>
    %143 = arith.divf %141, %142 : vector<2x32xf32>
    %144 = arith.mulf %135, %82 : vector<2x32xf32>
    %145 = arith.mulf %129, %137 : vector<2x32xf32>
    %146 = arith.addf %144, %145 : vector<2x32xf32>
    %147 = math.tanh %146 : vector<2x32xf32>
    %148 = arith.mulf %143, %147 : vector<2x32xf32>
    %c1_63 = arith.constant 1 : index
    %c0_64 = arith.constant 0 : index
    %c0_65 = arith.constant 0 : index
    %149 = vector.load %arg15[%c1_63, %c0_64, %c0_65] : memref<8x2x32xf32, #tpu.memory_space<vmem>>, vector<1x2x32xf32>
    %150 = vector.shape_cast %149 : vector<1x2x32xf32> to vector<2x32xf32>
    %151 = vector.shape_cast %119 : vector<2x32xf32> to vector<1x2x32xf32>
    tpu.vector_store %arg15[%c1_63, %c0_64, %c0_65], %151 {strides = array<i32>} : memref<8x2x32xf32, #tpu.memory_space<vmem>>, vector<1x2x32xf32>,
    %c6_66 = arith.constant 6 : index
    %c0_67 = arith.constant 0 : index
    %c0_68 = arith.constant 0 : index
    %152 = vector.load %arg16[%c6_66, %c0_67, %c0_68] : memref<8x2x32xf32, #tpu.memory_space<vmem>>, vector<1x2x32xf32>
    %153 = vector.shape_cast %152 : vector<1x2x32xf32> to vector<2x32xf32>
    %154 = vector.shape_cast %148 : vector<2x32xf32> to vector<1x2x32xf32>
    tpu.vector_store %arg16[%c6_66, %c0_67, %c0_68], %154 {strides = array<i32>} : memref<8x2x32xf32, #tpu.memory_space<vmem>>, vector<1x2x32xf32>,
    %c0_69 = arith.constant 0 : index
    %c2 = arith.constant 2 : index
    %c0_70 = arith.constant 0 : index
    %c0_71 = arith.constant 0 : index
    %155 = vector.load %arg14[%c0_69, %c2, %c0_70, %c0_71] : memref<2x8x2x128xf32, #tpu.memory_space<vmem>>, vector<1x1x2x128xf32>
    %156 = vector.shape_cast %155 : vector<1x1x2x128xf32> to vector<2x128xf32>
    %cst_72 = arith.constant dense<0.000000e+00> : vector<2x128xf32>
    %157 = tpu.matmul %119, %0, %cst_72 {dimension_numbers = #tpu.dot_dimension_numbers<[1], [0], [0], [1], [0, 0, 1, 1], [], []>} : vector<2x32xf32>, vector<32x128xf32>, vector<2x128xf32> -> vector<2x128xf32>
    %158 = arith.addf %156, %157 : vector<2x128xf32>
    %159 = vector.extract_strided_slice %158 {offsets = [0, 0], sizes = [2, 32], strides = [1, 1]} : vector<2x128xf32> to vector<2x32xf32>
    %160 = arith.negf %159 : vector<2x32xf32>
    %161 = math.exp %160 : vector<2x32xf32>
    %cst_73 = arith.constant 1.000000e+00 : f32
    %162 = vector.broadcast %cst_73 : f32 to vector<2x32xf32>
    %163 = arith.addf %162, %161 : vector<2x32xf32>
    %164 = arith.divf %162, %163 : vector<2x32xf32>
    %165 = vector.extract_strided_slice %158 {offsets = [0, 32], sizes = [2, 32], strides = [1, 1]} : vector<2x128xf32> to vector<2x32xf32>
    %166 = arith.negf %165 : vector<2x32xf32>
    %167 = math.exp %166 : vector<2x32xf32>
    %cst_74 = arith.constant 1.000000e+00 : f32
    %168 = vector.broadcast %cst_74 : f32 to vector<2x32xf32>
    %169 = arith.addf %168, %167 : vector<2x32xf32>
    %170 = arith.divf %168, %169 : vector<2x32xf32>
    %171 = vector.extract_strided_slice %158 {offsets = [0, 64], sizes = [2, 32], strides = [1, 1]} : vector<2x128xf32> to vector<2x32xf32>
    %172 = math.tanh %171 : vector<2x32xf32>
    %173 = vector.extract_strided_slice %158 {offsets = [0, 96], sizes = [2, 32], strides = [1, 1]} : vector<2x128xf32> to vector<2x32xf32>
    %174 = arith.negf %173 : vector<2x32xf32>
    %175 = math.exp %174 : vector<2x32xf32>
    %cst_75 = arith.constant 1.000000e+00 : f32
    %176 = vector.broadcast %cst_75 : f32 to vector<2x32xf32>
    %177 = arith.addf %176, %175 : vector<2x32xf32>
    %178 = arith.divf %176, %177 : vector<2x32xf32>
    %179 = arith.mulf %170, %117 : vector<2x32xf32>
    %180 = arith.mulf %164, %172 : vector<2x32xf32>
    %181 = arith.addf %179, %180 : vector<2x32xf32>
    %182 = math.tanh %181 : vector<2x32xf32>
    %183 = arith.mulf %178, %182 : vector<2x32xf32>
    %c1_76 = arith.constant 1 : index
    %c5 = arith.constant 5 : index
    %c0_77 = arith.constant 0 : index
    %c0_78 = arith.constant 0 : index
    %184 = vector.load %arg14[%c1_76, %c5, %c0_77, %c0_78] : memref<2x8x2x128xf32, #tpu.memory_space<vmem>>, vector<1x1x2x128xf32>
    %185 = vector.shape_cast %184 : vector<1x1x2x128xf32> to vector<2x128xf32>
    %cst_79 = arith.constant dense<0.000000e+00> : vector<2x128xf32>
    %186 = tpu.matmul %148, %1, %cst_79 {dimension_numbers = #tpu.dot_dimension_numbers<[1], [0], [0], [1], [0, 0, 1, 1], [], []>} : vector<2x32xf32>, vector<32x128xf32>, vector<2x128xf32> -> vector<2x128xf32>
    %187 = arith.addf %185, %186 : vector<2x128xf32>
    %188 = vector.extract_strided_slice %187 {offsets = [0, 0], sizes = [2, 32], strides = [1, 1]} : vector<2x128xf32> to vector<2x32xf32>
    %189 = arith.negf %188 : vector<2x32xf32>
    %190 = math.exp %189 : vector<2x32xf32>
    %cst_80 = arith.constant 1.000000e+00 : f32
    %191 = vector.broadcast %cst_80 : f32 to vector<2x32xf32>
    %192 = arith.addf %191, %190 : vector<2x32xf32>
    %193 = arith.divf %191, %192 : vector<2x32xf32>
    %194 = vector.extract_strided_slice %187 {offsets = [0, 32], sizes = [2, 32], strides = [1, 1]} : vector<2x128xf32> to vector<2x32xf32>
    %195 = arith.negf %194 : vector<2x32xf32>
    %196 = math.exp %195 : vector<2x32xf32>
    %cst_81 = arith.constant 1.000000e+00 : f32
    %197 = vector.broadcast %cst_81 : f32 to vector<2x32xf32>
    %198 = arith.addf %197, %196 : vector<2x32xf32>
    %199 = arith.divf %197, %198 : vector<2x32xf32>
    %200 = vector.extract_strided_slice %187 {offsets = [0, 64], sizes = [2, 32], strides = [1, 1]} : vector<2x128xf32> to vector<2x32xf32>
    %201 = math.tanh %200 : vector<2x32xf32>
    %202 = vector.extract_strided_slice %187 {offsets = [0, 96], sizes = [2, 32], strides = [1, 1]} : vector<2x128xf32> to vector<2x32xf32>
    %203 = arith.negf %202 : vector<2x32xf32>
    %204 = math.exp %203 : vector<2x32xf32>
    %cst_82 = arith.constant 1.000000e+00 : f32
    %205 = vector.broadcast %cst_82 : f32 to vector<2x32xf32>
    %206 = arith.addf %205, %204 : vector<2x32xf32>
    %207 = arith.divf %205, %206 : vector<2x32xf32>
    %208 = arith.mulf %199, %146 : vector<2x32xf32>
    %209 = arith.mulf %193, %201 : vector<2x32xf32>
    %210 = arith.addf %208, %209 : vector<2x32xf32>
    %211 = math.tanh %210 : vector<2x32xf32>
    %212 = arith.mulf %207, %211 : vector<2x32xf32>
    %c2_83 = arith.constant 2 : index
    %c0_84 = arith.constant 0 : index
    %c0_85 = arith.constant 0 : index
    %213 = vector.load %arg15[%c2_83, %c0_84, %c0_85] : memref<8x2x32xf32, #tpu.memory_space<vmem>>, vector<1x2x32xf32>
    %214 = vector.shape_cast %213 : vector<1x2x32xf32> to vector<2x32xf32>
    %215 = vector.shape_cast %183 : vector<2x32xf32> to vector<1x2x32xf32>
    tpu.vector_store %arg15[%c2_83, %c0_84, %c0_85], %215 {strides = array<i32>} : memref<8x2x32xf32, #tpu.memory_space<vmem>>, vector<1x2x32xf32>,
    %c5_86 = arith.constant 5 : index
    %c0_87 = arith.constant 0 : index
    %c0_88 = arith.constant 0 : index
    %216 = vector.load %arg16[%c5_86, %c0_87, %c0_88] : memref<8x2x32xf32, #tpu.memory_space<vmem>>, vector<1x2x32xf32>
    %217 = vector.shape_cast %216 : vector<1x2x32xf32> to vector<2x32xf32>
    %218 = vector.shape_cast %212 : vector<2x32xf32> to vector<1x2x32xf32>
    tpu.vector_store %arg16[%c5_86, %c0_87, %c0_88], %218 {strides = array<i32>} : memref<8x2x32xf32, #tpu.memory_space<vmem>>, vector<1x2x32xf32>,
    %c0_89 = arith.constant 0 : index
    %c3 = arith.constant 3 : index
    %c0_90 = arith.constant 0 : index
    %c0_91 = arith.constant 0 : index
    %219 = vector.load %arg14[%c0_89, %c3, %c0_90, %c0_91] : memref<2x8x2x128xf32, #tpu.memory_space<vmem>>, vector<1x1x2x128xf32>
    %220 = vector.shape_cast %219 : vector<1x1x2x128xf32> to vector<2x128xf32>
    %cst_92 = arith.constant dense<0.000000e+00> : vector<2x128xf32>
    %221 = tpu.matmul %183, %0, %cst_92 {dimension_numbers = #tpu.dot_dimension_numbers<[1], [0], [0], [1], [0, 0, 1, 1], [], []>} : vector<2x32xf32>, vector<32x128xf32>, vector<2x128xf32> -> vector<2x128xf32>
    %222 = arith.addf %220, %221 : vector<2x128xf32>
    %223 = vector.extract_strided_slice %222 {offsets = [0, 0], sizes = [2, 32], strides = [1, 1]} : vector<2x128xf32> to vector<2x32xf32>
    %224 = arith.negf %223 : vector<2x32xf32>
    %225 = math.exp %224 : vector<2x32xf32>
    %cst_93 = arith.constant 1.000000e+00 : f32
    %226 = vector.broadcast %cst_93 : f32 to vector<2x32xf32>
    %227 = arith.addf %226, %225 : vector<2x32xf32>
    %228 = arith.divf %226, %227 : vector<2x32xf32>
    %229 = vector.extract_strided_slice %222 {offsets = [0, 32], sizes = [2, 32], strides = [1, 1]} : vector<2x128xf32> to vector<2x32xf32>
    %230 = arith.negf %229 : vector<2x32xf32>
    %231 = math.exp %230 : vector<2x32xf32>
    %cst_94 = arith.constant 1.000000e+00 : f32
    %232 = vector.broadcast %cst_94 : f32 to vector<2x32xf32>
    %233 = arith.addf %232, %231 : vector<2x32xf32>
    %234 = arith.divf %232, %233 : vector<2x32xf32>
    %235 = vector.extract_strided_slice %222 {offsets = [0, 64], sizes = [2, 32], strides = [1, 1]} : vector<2x128xf32> to vector<2x32xf32>
    %236 = math.tanh %235 : vector<2x32xf32>
    %237 = vector.extract_strided_slice %222 {offsets = [0, 96], sizes = [2, 32], strides = [1, 1]} : vector<2x128xf32> to vector<2x32xf32>
    %238 = arith.negf %237 : vector<2x32xf32>
    %239 = math.exp %238 : vector<2x32xf32>
    %cst_95 = arith.constant 1.000000e+00 : f32
    %240 = vector.broadcast %cst_95 : f32 to vector<2x32xf32>
    %241 = arith.addf %240, %239 : vector<2x32xf32>
    %242 = arith.divf %240, %241 : vector<2x32xf32>
    %243 = arith.mulf %234, %181 : vector<2x32xf32>
    %244 = arith.mulf %228, %236 : vector<2x32xf32>
    %245 = arith.addf %243, %244 : vector<2x32xf32>
    %246 = math.tanh %245 : vector<2x32xf32>
    %247 = arith.mulf %242, %246 : vector<2x32xf32>
    %c1_96 = arith.constant 1 : index
    %c4 = arith.constant 4 : index
    %c0_97 = arith.constant 0 : index
    %c0_98 = arith.constant 0 : index
    %248 = vector.load %arg14[%c1_96, %c4, %c0_97, %c0_98] : memref<2x8x2x128xf32, #tpu.memory_space<vmem>>, vector<1x1x2x128xf32>
    %249 = vector.shape_cast %248 : vector<1x1x2x128xf32> to vector<2x128xf32>
    %cst_99 = arith.constant dense<0.000000e+00> : vector<2x128xf32>
    %250 = tpu.matmul %212, %1, %cst_99 {dimension_numbers = #tpu.dot_dimension_numbers<[1], [0], [0], [1], [0, 0, 1, 1], [], []>} : vector<2x32xf32>, vector<32x128xf32>, vector<2x128xf32> -> vector<2x128xf32>
    %251 = arith.addf %249, %250 : vector<2x128xf32>
    %252 = vector.extract_strided_slice %251 {offsets = [0, 0], sizes = [2, 32], strides = [1, 1]} : vector<2x128xf32> to vector<2x32xf32>
    %253 = arith.negf %252 : vector<2x32xf32>
    %254 = math.exp %253 : vector<2x32xf32>
    %cst_100 = arith.constant 1.000000e+00 : f32
    %255 = vector.broadcast %cst_100 : f32 to vector<2x32xf32>
    %256 = arith.addf %255, %254 : vector<2x32xf32>
    %257 = arith.divf %255, %256 : vector<2x32xf32>
    %258 = vector.extract_strided_slice %251 {offsets = [0, 32], sizes = [2, 32], strides = [1, 1]} : vector<2x128xf32> to vector<2x32xf32>
    %259 = arith.negf %258 : vector<2x32xf32>
    %260 = math.exp %259 : vector<2x32xf32>
    %cst_101 = arith.constant 1.000000e+00 : f32
    %261 = vector.broadcast %cst_101 : f32 to vector<2x32xf32>
    %262 = arith.addf %261, %260 : vector<2x32xf32>
    %263 = arith.divf %261, %262 : vector<2x32xf32>
    %264 = vector.extract_strided_slice %251 {offsets = [0, 64], sizes = [2, 32], strides = [1, 1]} : vector<2x128xf32> to vector<2x32xf32>
    %265 = math.tanh %264 : vector<2x32xf32>
    %266 = vector.extract_strided_slice %251 {offsets = [0, 96], sizes = [2, 32], strides = [1, 1]} : vector<2x128xf32> to vector<2x32xf32>
    %267 = arith.negf %266 : vector<2x32xf32>
    %268 = math.exp %267 : vector<2x32xf32>
    %cst_102 = arith.constant 1.000000e+00 : f32
    %269 = vector.broadcast %cst_102 : f32 to vector<2x32xf32>
    %270 = arith.addf %269, %268 : vector<2x32xf32>
    %271 = arith.divf %269, %270 : vector<2x32xf32>
    %272 = arith.mulf %263, %210 : vector<2x32xf32>
    %273 = arith.mulf %257, %265 : vector<2x32xf32>
    %274 = arith.addf %272, %273 : vector<2x32xf32>
    %275 = math.tanh %274 : vector<2x32xf32>
    %276 = arith.mulf %271, %275 : vector<2x32xf32>
    %c3_103 = arith.constant 3 : index
    %c0_104 = arith.constant 0 : index
    %c0_105 = arith.constant 0 : index
    %277 = vector.load %arg15[%c3_103, %c0_104, %c0_105] : memref<8x2x32xf32, #tpu.memory_space<vmem>>, vector<1x2x32xf32>
    %278 = vector.shape_cast %277 : vector<1x2x32xf32> to vector<2x32xf32>
    %279 = vector.shape_cast %247 : vector<2x32xf32> to vector<1x2x32xf32>
    tpu.vector_store %arg15[%c3_103, %c0_104, %c0_105], %279 {strides = array<i32>} : memref<8x2x32xf32, #tpu.memory_space<vmem>>, vector<1x2x32xf32>,
    %c4_106 = arith.constant 4 : index
    %c0_107 = arith.constant 0 : index
    %c0_108 = arith.constant 0 : index
    %280 = vector.load %arg16[%c4_106, %c0_107, %c0_108] : memref<8x2x32xf32, #tpu.memory_space<vmem>>, vector<1x2x32xf32>
    %281 = vector.shape_cast %280 : vector<1x2x32xf32> to vector<2x32xf32>
    %282 = vector.shape_cast %276 : vector<2x32xf32> to vector<1x2x32xf32>
    tpu.vector_store %arg16[%c4_106, %c0_107, %c0_108], %282 {strides = array<i32>} : memref<8x2x32xf32, #tpu.memory_space<vmem>>, vector<1x2x32xf32>,
    %c0_109 = arith.constant 0 : index
    %c4_110 = arith.constant 4 : index
    %c0_111 = arith.constant 0 : index
    %c0_112 = arith.constant 0 : index
    %283 = vector.load %arg14[%c0_109, %c4_110, %c0_111, %c0_112] : memref<2x8x2x128xf32, #tpu.memory_space<vmem>>, vector<1x1x2x128xf32>
    %284 = vector.shape_cast %283 : vector<1x1x2x128xf32> to vector<2x128xf32>
    %cst_113 = arith.constant dense<0.000000e+00> : vector<2x128xf32>
    %285 = tpu.matmul %247, %0, %cst_113 {dimension_numbers = #tpu.dot_dimension_numbers<[1], [0], [0], [1], [0, 0, 1, 1], [], []>} : vector<2x32xf32>, vector<32x128xf32>, vector<2x128xf32> -> vector<2x128xf32>
    %286 = arith.addf %284, %285 : vector<2x128xf32>
    %287 = vector.extract_strided_slice %286 {offsets = [0, 0], sizes = [2, 32], strides = [1, 1]} : vector<2x128xf32> to vector<2x32xf32>
    %288 = arith.negf %287 : vector<2x32xf32>
    %289 = math.exp %288 : vector<2x32xf32>
    %cst_114 = arith.constant 1.000000e+00 : f32
    %290 = vector.broadcast %cst_114 : f32 to vector<2x32xf32>
    %291 = arith.addf %290, %289 : vector<2x32xf32>
    %292 = arith.divf %290, %291 : vector<2x32xf32>
    %293 = vector.extract_strided_slice %286 {offsets = [0, 32], sizes = [2, 32], strides = [1, 1]} : vector<2x128xf32> to vector<2x32xf32>
    %294 = arith.negf %293 : vector<2x32xf32>
    %295 = math.exp %294 : vector<2x32xf32>
    %cst_115 = arith.constant 1.000000e+00 : f32
    %296 = vector.broadcast %cst_115 : f32 to vector<2x32xf32>
    %297 = arith.addf %296, %295 : vector<2x32xf32>
    %298 = arith.divf %296, %297 : vector<2x32xf32>
    %299 = vector.extract_strided_slice %286 {offsets = [0, 64], sizes = [2, 32], strides = [1, 1]} : vector<2x128xf32> to vector<2x32xf32>
    %300 = math.tanh %299 : vector<2x32xf32>
    %301 = vector.extract_strided_slice %286 {offsets = [0, 96], sizes = [2, 32], strides = [1, 1]} : vector<2x128xf32> to vector<2x32xf32>
    %302 = arith.negf %301 : vector<2x32xf32>
    %303 = math.exp %302 : vector<2x32xf32>
    %cst_116 = arith.constant 1.000000e+00 : f32
    %304 = vector.broadcast %cst_116 : f32 to vector<2x32xf32>
    %305 = arith.addf %304, %303 : vector<2x32xf32>
    %306 = arith.divf %304, %305 : vector<2x32xf32>
    %307 = arith.mulf %298, %245 : vector<2x32xf32>
    %308 = arith.mulf %292, %300 : vector<2x32xf32>
    %309 = arith.addf %307, %308 : vector<2x32xf32>
    %310 = math.tanh %309 : vector<2x32xf32>
    %311 = arith.mulf %306, %310 : vector<2x32xf32>
    %c1_117 = arith.constant 1 : index
    %c3_118 = arith.constant 3 : index
    %c0_119 = arith.constant 0 : index
    %c0_120 = arith.constant 0 : index
    %312 = vector.load %arg14[%c1_117, %c3_118, %c0_119, %c0_120] : memref<2x8x2x128xf32, #tpu.memory_space<vmem>>, vector<1x1x2x128xf32>
    %313 = vector.shape_cast %312 : vector<1x1x2x128xf32> to vector<2x128xf32>
    %cst_121 = arith.constant dense<0.000000e+00> : vector<2x128xf32>
    %314 = tpu.matmul %276, %1, %cst_121 {dimension_numbers = #tpu.dot_dimension_numbers<[1], [0], [0], [1], [0, 0, 1, 1], [], []>} : vector<2x32xf32>, vector<32x128xf32>, vector<2x128xf32> -> vector<2x128xf32>
    %315 = arith.addf %313, %314 : vector<2x128xf32>
    %316 = vector.extract_strided_slice %315 {offsets = [0, 0], sizes = [2, 32], strides = [1, 1]} : vector<2x128xf32> to vector<2x32xf32>
    %317 = arith.negf %316 : vector<2x32xf32>
    %318 = math.exp %317 : vector<2x32xf32>
    %cst_122 = arith.constant 1.000000e+00 : f32
    %319 = vector.broadcast %cst_122 : f32 to vector<2x32xf32>
    %320 = arith.addf %319, %318 : vector<2x32xf32>
    %321 = arith.divf %319, %320 : vector<2x32xf32>
    %322 = vector.extract_strided_slice %315 {offsets = [0, 32], sizes = [2, 32], strides = [1, 1]} : vector<2x128xf32> to vector<2x32xf32>
    %323 = arith.negf %322 : vector<2x32xf32>
    %324 = math.exp %323 : vector<2x32xf32>
    %cst_123 = arith.constant 1.000000e+00 : f32
    %325 = vector.broadcast %cst_123 : f32 to vector<2x32xf32>
    %326 = arith.addf %325, %324 : vector<2x32xf32>
    %327 = arith.divf %325, %326 : vector<2x32xf32>
    %328 = vector.extract_strided_slice %315 {offsets = [0, 64], sizes = [2, 32], strides = [1, 1]} : vector<2x128xf32> to vector<2x32xf32>
    %329 = math.tanh %328 : vector<2x32xf32>
    %330 = vector.extract_strided_slice %315 {offsets = [0, 96], sizes = [2, 32], strides = [1, 1]} : vector<2x128xf32> to vector<2x32xf32>
    %331 = arith.negf %330 : vector<2x32xf32>
    %332 = math.exp %331 : vector<2x32xf32>
    %cst_124 = arith.constant 1.000000e+00 : f32
    %333 = vector.broadcast %cst_124 : f32 to vector<2x32xf32>
    %334 = arith.addf %333, %332 : vector<2x32xf32>
    %335 = arith.divf %333, %334 : vector<2x32xf32>
    %336 = arith.mulf %327, %274 : vector<2x32xf32>
    %337 = arith.mulf %321, %329 : vector<2x32xf32>
    %338 = arith.addf %336, %337 : vector<2x32xf32>
    %339 = math.tanh %338 : vector<2x32xf32>
    %340 = arith.mulf %335, %339 : vector<2x32xf32>
    %c4_125 = arith.constant 4 : index
    %c0_126 = arith.constant 0 : index
    %c0_127 = arith.constant 0 : index
    %341 = vector.load %arg15[%c4_125, %c0_126, %c0_127] : memref<8x2x32xf32, #tpu.memory_space<vmem>>, vector<1x2x32xf32>
    %342 = vector.shape_cast %341 : vector<1x2x32xf32> to vector<2x32xf32>
    %343 = vector.shape_cast %311 : vector<2x32xf32> to vector<1x2x32xf32>
    tpu.vector_store %arg15[%c4_125, %c0_126, %c0_127], %343 {strides = array<i32>} : memref<8x2x32xf32, #tpu.memory_space<vmem>>, vector<1x2x32xf32>,
    %c3_128 = arith.constant 3 : index
    %c0_129 = arith.constant 0 : index
    %c0_130 = arith.constant 0 : index
    %344 = vector.load %arg16[%c3_128, %c0_129, %c0_130] : memref<8x2x32xf32, #tpu.memory_space<vmem>>, vector<1x2x32xf32>
    %345 = vector.shape_cast %344 : vector<1x2x32xf32> to vector<2x32xf32>
    %346 = vector.shape_cast %340 : vector<2x32xf32> to vector<1x2x32xf32>
    tpu.vector_store %arg16[%c3_128, %c0_129, %c0_130], %346 {strides = array<i32>} : memref<8x2x32xf32, #tpu.memory_space<vmem>>, vector<1x2x32xf32>,
    %c0_131 = arith.constant 0 : index
    %c5_132 = arith.constant 5 : index
    %c0_133 = arith.constant 0 : index
    %c0_134 = arith.constant 0 : index
    %347 = vector.load %arg14[%c0_131, %c5_132, %c0_133, %c0_134] : memref<2x8x2x128xf32, #tpu.memory_space<vmem>>, vector<1x1x2x128xf32>
    %348 = vector.shape_cast %347 : vector<1x1x2x128xf32> to vector<2x128xf32>
    %cst_135 = arith.constant dense<0.000000e+00> : vector<2x128xf32>
    %349 = tpu.matmul %311, %0, %cst_135 {dimension_numbers = #tpu.dot_dimension_numbers<[1], [0], [0], [1], [0, 0, 1, 1], [], []>} : vector<2x32xf32>, vector<32x128xf32>, vector<2x128xf32> -> vector<2x128xf32>
    %350 = arith.addf %348, %349 : vector<2x128xf32>
    %351 = vector.extract_strided_slice %350 {offsets = [0, 0], sizes = [2, 32], strides = [1, 1]} : vector<2x128xf32> to vector<2x32xf32>
    %352 = arith.negf %351 : vector<2x32xf32>
    %353 = math.exp %352 : vector<2x32xf32>
    %cst_136 = arith.constant 1.000000e+00 : f32
    %354 = vector.broadcast %cst_136 : f32 to vector<2x32xf32>
    %355 = arith.addf %354, %353 : vector<2x32xf32>
    %356 = arith.divf %354, %355 : vector<2x32xf32>
    %357 = vector.extract_strided_slice %350 {offsets = [0, 32], sizes = [2, 32], strides = [1, 1]} : vector<2x128xf32> to vector<2x32xf32>
    %358 = arith.negf %357 : vector<2x32xf32>
    %359 = math.exp %358 : vector<2x32xf32>
    %cst_137 = arith.constant 1.000000e+00 : f32
    %360 = vector.broadcast %cst_137 : f32 to vector<2x32xf32>
    %361 = arith.addf %360, %359 : vector<2x32xf32>
    %362 = arith.divf %360, %361 : vector<2x32xf32>
    %363 = vector.extract_strided_slice %350 {offsets = [0, 64], sizes = [2, 32], strides = [1, 1]} : vector<2x128xf32> to vector<2x32xf32>
    %364 = math.tanh %363 : vector<2x32xf32>
    %365 = vector.extract_strided_slice %350 {offsets = [0, 96], sizes = [2, 32], strides = [1, 1]} : vector<2x128xf32> to vector<2x32xf32>
    %366 = arith.negf %365 : vector<2x32xf32>
    %367 = math.exp %366 : vector<2x32xf32>
    %cst_138 = arith.constant 1.000000e+00 : f32
    %368 = vector.broadcast %cst_138 : f32 to vector<2x32xf32>
    %369 = arith.addf %368, %367 : vector<2x32xf32>
    %370 = arith.divf %368, %369 : vector<2x32xf32>
    %371 = arith.mulf %362, %309 : vector<2x32xf32>
    %372 = arith.mulf %356, %364 : vector<2x32xf32>
    %373 = arith.addf %371, %372 : vector<2x32xf32>
    %374 = math.tanh %373 : vector<2x32xf32>
    %375 = arith.mulf %370, %374 : vector<2x32xf32>
    %c1_139 = arith.constant 1 : index
    %c2_140 = arith.constant 2 : index
    %c0_141 = arith.constant 0 : index
    %c0_142 = arith.constant 0 : index
    %376 = vector.load %arg14[%c1_139, %c2_140, %c0_141, %c0_142] : memref<2x8x2x128xf32, #tpu.memory_space<vmem>>, vector<1x1x2x128xf32>
    %377 = vector.shape_cast %376 : vector<1x1x2x128xf32> to vector<2x128xf32>
    %cst_143 = arith.constant dense<0.000000e+00> : vector<2x128xf32>
    %378 = tpu.matmul %340, %1, %cst_143 {dimension_numbers = #tpu.dot_dimension_numbers<[1], [0], [0], [1], [0, 0, 1, 1], [], []>} : vector<2x32xf32>, vector<32x128xf32>, vector<2x128xf32> -> vector<2x128xf32>
    %379 = arith.addf %377, %378 : vector<2x128xf32>
    %380 = vector.extract_strided_slice %379 {offsets = [0, 0], sizes = [2, 32], strides = [1, 1]} : vector<2x128xf32> to vector<2x32xf32>
    %381 = arith.negf %380 : vector<2x32xf32>
    %382 = math.exp %381 : vector<2x32xf32>
    %cst_144 = arith.constant 1.000000e+00 : f32
    %383 = vector.broadcast %cst_144 : f32 to vector<2x32xf32>
    %384 = arith.addf %383, %382 : vector<2x32xf32>
    %385 = arith.divf %383, %384 : vector<2x32xf32>
    %386 = vector.extract_strided_slice %379 {offsets = [0, 32], sizes = [2, 32], strides = [1, 1]} : vector<2x128xf32> to vector<2x32xf32>
    %387 = arith.negf %386 : vector<2x32xf32>
    %388 = math.exp %387 : vector<2x32xf32>
    %cst_145 = arith.constant 1.000000e+00 : f32
    %389 = vector.broadcast %cst_145 : f32 to vector<2x32xf32>
    %390 = arith.addf %389, %388 : vector<2x32xf32>
    %391 = arith.divf %389, %390 : vector<2x32xf32>
    %392 = vector.extract_strided_slice %379 {offsets = [0, 64], sizes = [2, 32], strides = [1, 1]} : vector<2x128xf32> to vector<2x32xf32>
    %393 = math.tanh %392 : vector<2x32xf32>
    %394 = vector.extract_strided_slice %379 {offsets = [0, 96], sizes = [2, 32], strides = [1, 1]} : vector<2x128xf32> to vector<2x32xf32>
    %395 = arith.negf %394 : vector<2x32xf32>
    %396 = math.exp %395 : vector<2x32xf32>
    %cst_146 = arith.constant 1.000000e+00 : f32
    %397 = vector.broadcast %cst_146 : f32 to vector<2x32xf32>
    %398 = arith.addf %397, %396 : vector<2x32xf32>
    %399 = arith.divf %397, %398 : vector<2x32xf32>
    %400 = arith.mulf %391, %338 : vector<2x32xf32>
    %401 = arith.mulf %385, %393 : vector<2x32xf32>
    %402 = arith.addf %400, %401 : vector<2x32xf32>
    %403 = math.tanh %402 : vector<2x32xf32>
    %404 = arith.mulf %399, %403 : vector<2x32xf32>
    %c5_147 = arith.constant 5 : index
    %c0_148 = arith.constant 0 : index
    %c0_149 = arith.constant 0 : index
    %405 = vector.load %arg15[%c5_147, %c0_148, %c0_149] : memref<8x2x32xf32, #tpu.memory_space<vmem>>, vector<1x2x32xf32>
    %406 = vector.shape_cast %405 : vector<1x2x32xf32> to vector<2x32xf32>
    %407 = vector.shape_cast %375 : vector<2x32xf32> to vector<1x2x32xf32>
    tpu.vector_store %arg15[%c5_147, %c0_148, %c0_149], %407 {strides = array<i32>} : memref<8x2x32xf32, #tpu.memory_space<vmem>>, vector<1x2x32xf32>,
    %c2_150 = arith.constant 2 : index
    %c0_151 = arith.constant 0 : index
    %c0_152 = arith.constant 0 : index
    %408 = vector.load %arg16[%c2_150, %c0_151, %c0_152] : memref<8x2x32xf32, #tpu.memory_space<vmem>>, vector<1x2x32xf32>
    %409 = vector.shape_cast %408 : vector<1x2x32xf32> to vector<2x32xf32>
    %410 = vector.shape_cast %404 : vector<2x32xf32> to vector<1x2x32xf32>
    tpu.vector_store %arg16[%c2_150, %c0_151, %c0_152], %410 {strides = array<i32>} : memref<8x2x32xf32, #tpu.memory_space<vmem>>, vector<1x2x32xf32>,
    %c0_153 = arith.constant 0 : index
    %c6_154 = arith.constant 6 : index
    %c0_155 = arith.constant 0 : index
    %c0_156 = arith.constant 0 : index
    %411 = vector.load %arg14[%c0_153, %c6_154, %c0_155, %c0_156] : memref<2x8x2x128xf32, #tpu.memory_space<vmem>>, vector<1x1x2x128xf32>
    %412 = vector.shape_cast %411 : vector<1x1x2x128xf32> to vector<2x128xf32>
    %cst_157 = arith.constant dense<0.000000e+00> : vector<2x128xf32>
    %413 = tpu.matmul %375, %0, %cst_157 {dimension_numbers = #tpu.dot_dimension_numbers<[1], [0], [0], [1], [0, 0, 1, 1], [], []>} : vector<2x32xf32>, vector<32x128xf32>, vector<2x128xf32> -> vector<2x128xf32>
    %414 = arith.addf %412, %413 : vector<2x128xf32>
    %415 = vector.extract_strided_slice %414 {offsets = [0, 0], sizes = [2, 32], strides = [1, 1]} : vector<2x128xf32> to vector<2x32xf32>
    %416 = arith.negf %415 : vector<2x32xf32>
    %417 = math.exp %416 : vector<2x32xf32>
    %cst_158 = arith.constant 1.000000e+00 : f32
    %418 = vector.broadcast %cst_158 : f32 to vector<2x32xf32>
    %419 = arith.addf %418, %417 : vector<2x32xf32>
    %420 = arith.divf %418, %419 : vector<2x32xf32>
    %421 = vector.extract_strided_slice %414 {offsets = [0, 32], sizes = [2, 32], strides = [1, 1]} : vector<2x128xf32> to vector<2x32xf32>
    %422 = arith.negf %421 : vector<2x32xf32>
    %423 = math.exp %422 : vector<2x32xf32>
    %cst_159 = arith.constant 1.000000e+00 : f32
    %424 = vector.broadcast %cst_159 : f32 to vector<2x32xf32>
    %425 = arith.addf %424, %423 : vector<2x32xf32>
    %426 = arith.divf %424, %425 : vector<2x32xf32>
    %427 = vector.extract_strided_slice %414 {offsets = [0, 64], sizes = [2, 32], strides = [1, 1]} : vector<2x128xf32> to vector<2x32xf32>
    %428 = math.tanh %427 : vector<2x32xf32>
    %429 = vector.extract_strided_slice %414 {offsets = [0, 96], sizes = [2, 32], strides = [1, 1]} : vector<2x128xf32> to vector<2x32xf32>
    %430 = arith.negf %429 : vector<2x32xf32>
    %431 = math.exp %430 : vector<2x32xf32>
    %cst_160 = arith.constant 1.000000e+00 : f32
    %432 = vector.broadcast %cst_160 : f32 to vector<2x32xf32>
    %433 = arith.addf %432, %431 : vector<2x32xf32>
    %434 = arith.divf %432, %433 : vector<2x32xf32>
    %435 = arith.mulf %426, %373 : vector<2x32xf32>
    %436 = arith.mulf %420, %428 : vector<2x32xf32>
    %437 = arith.addf %435, %436 : vector<2x32xf32>
    %438 = math.tanh %437 : vector<2x32xf32>
    %439 = arith.mulf %434, %438 : vector<2x32xf32>
    %c1_161 = arith.constant 1 : index
    %c1_162 = arith.constant 1 : index
    %c0_163 = arith.constant 0 : index
    %c0_164 = arith.constant 0 : index
    %440 = vector.load %arg14[%c1_161, %c1_162, %c0_163, %c0_164] : memref<2x8x2x128xf32, #tpu.memory_space<vmem>>, vector<1x1x2x128xf32>
    %441 = vector.shape_cast %440 : vector<1x1x2x128xf32> to vector<2x128xf32>
    %cst_165 = arith.constant dense<0.000000e+00> : vector<2x128xf32>
    %442 = tpu.matmul %404, %1, %cst_165 {dimension_numbers = #tpu.dot_dimension_numbers<[1], [0], [0], [1], [0, 0, 1, 1], [], []>} : vector<2x32xf32>, vector<32x128xf32>, vector<2x128xf32> -> vector<2x128xf32>
    %443 = arith.addf %441, %442 : vector<2x128xf32>
    %444 = vector.extract_strided_slice %443 {offsets = [0, 0], sizes = [2, 32], strides = [1, 1]} : vector<2x128xf32> to vector<2x32xf32>
    %445 = arith.negf %444 : vector<2x32xf32>
    %446 = math.exp %445 : vector<2x32xf32>
    %cst_166 = arith.constant 1.000000e+00 : f32
    %447 = vector.broadcast %cst_166 : f32 to vector<2x32xf32>
    %448 = arith.addf %447, %446 : vector<2x32xf32>
    %449 = arith.divf %447, %448 : vector<2x32xf32>
    %450 = vector.extract_strided_slice %443 {offsets = [0, 32], sizes = [2, 32], strides = [1, 1]} : vector<2x128xf32> to vector<2x32xf32>
    %451 = arith.negf %450 : vector<2x32xf32>
    %452 = math.exp %451 : vector<2x32xf32>
    %cst_167 = arith.constant 1.000000e+00 : f32
    %453 = vector.broadcast %cst_167 : f32 to vector<2x32xf32>
    %454 = arith.addf %453, %452 : vector<2x32xf32>
    %455 = arith.divf %453, %454 : vector<2x32xf32>
    %456 = vector.extract_strided_slice %443 {offsets = [0, 64], sizes = [2, 32], strides = [1, 1]} : vector<2x128xf32> to vector<2x32xf32>
    %457 = math.tanh %456 : vector<2x32xf32>
    %458 = vector.extract_strided_slice %443 {offsets = [0, 96], sizes = [2, 32], strides = [1, 1]} : vector<2x128xf32> to vector<2x32xf32>
    %459 = arith.negf %458 : vector<2x32xf32>
    %460 = math.exp %459 : vector<2x32xf32>
    %cst_168 = arith.constant 1.000000e+00 : f32
    %461 = vector.broadcast %cst_168 : f32 to vector<2x32xf32>
    %462 = arith.addf %461, %460 : vector<2x32xf32>
    %463 = arith.divf %461, %462 : vector<2x32xf32>
    %464 = arith.mulf %455, %402 : vector<2x32xf32>
    %465 = arith.mulf %449, %457 : vector<2x32xf32>
    %466 = arith.addf %464, %465 : vector<2x32xf32>
    %467 = math.tanh %466 : vector<2x32xf32>
    %468 = arith.mulf %463, %467 : vector<2x32xf32>
    %c6_169 = arith.constant 6 : index
    %c0_170 = arith.constant 0 : index
    %c0_171 = arith.constant 0 : index
    %469 = vector.load %arg15[%c6_169, %c0_170, %c0_171] : memref<8x2x32xf32, #tpu.memory_space<vmem>>, vector<1x2x32xf32>
    %470 = vector.shape_cast %469 : vector<1x2x32xf32> to vector<2x32xf32>
    %471 = vector.shape_cast %439 : vector<2x32xf32> to vector<1x2x32xf32>
    tpu.vector_store %arg15[%c6_169, %c0_170, %c0_171], %471 {strides = array<i32>} : memref<8x2x32xf32, #tpu.memory_space<vmem>>, vector<1x2x32xf32>,
    %c1_172 = arith.constant 1 : index
    %c0_173 = arith.constant 0 : index
    %c0_174 = arith.constant 0 : index
    %472 = vector.load %arg16[%c1_172, %c0_173, %c0_174] : memref<8x2x32xf32, #tpu.memory_space<vmem>>, vector<1x2x32xf32>
    %473 = vector.shape_cast %472 : vector<1x2x32xf32> to vector<2x32xf32>
    %474 = vector.shape_cast %468 : vector<2x32xf32> to vector<1x2x32xf32>
    tpu.vector_store %arg16[%c1_172, %c0_173, %c0_174], %474 {strides = array<i32>} : memref<8x2x32xf32, #tpu.memory_space<vmem>>, vector<1x2x32xf32>,
    %c0_175 = arith.constant 0 : index
    %c7_176 = arith.constant 7 : index
    %c0_177 = arith.constant 0 : index
    %c0_178 = arith.constant 0 : index
    %475 = vector.load %arg14[%c0_175, %c7_176, %c0_177, %c0_178] : memref<2x8x2x128xf32, #tpu.memory_space<vmem>>, vector<1x1x2x128xf32>
    %476 = vector.shape_cast %475 : vector<1x1x2x128xf32> to vector<2x128xf32>
    %cst_179 = arith.constant dense<0.000000e+00> : vector<2x128xf32>
    %477 = tpu.matmul %439, %0, %cst_179 {dimension_numbers = #tpu.dot_dimension_numbers<[1], [0], [0], [1], [0, 0, 1, 1], [], []>} : vector<2x32xf32>, vector<32x128xf32>, vector<2x128xf32> -> vector<2x128xf32>
    %478 = arith.addf %476, %477 : vector<2x128xf32>
    %479 = vector.extract_strided_slice %478 {offsets = [0, 0], sizes = [2, 32], strides = [1, 1]} : vector<2x128xf32> to vector<2x32xf32>
    %480 = arith.negf %479 : vector<2x32xf32>
    %481 = math.exp %480 : vector<2x32xf32>
    %cst_180 = arith.constant 1.000000e+00 : f32
    %482 = vector.broadcast %cst_180 : f32 to vector<2x32xf32>
    %483 = arith.addf %482, %481 : vector<2x32xf32>
    %484 = arith.divf %482, %483 : vector<2x32xf32>
    %485 = vector.extract_strided_slice %478 {offsets = [0, 32], sizes = [2, 32], strides = [1, 1]} : vector<2x128xf32> to vector<2x32xf32>
    %486 = arith.negf %485 : vector<2x32xf32>
    %487 = math.exp %486 : vector<2x32xf32>
    %cst_181 = arith.constant 1.000000e+00 : f32
    %488 = vector.broadcast %cst_181 : f32 to vector<2x32xf32>
    %489 = arith.addf %488, %487 : vector<2x32xf32>
    %490 = arith.divf %488, %489 : vector<2x32xf32>
    %491 = vector.extract_strided_slice %478 {offsets = [0, 64], sizes = [2, 32], strides = [1, 1]} : vector<2x128xf32> to vector<2x32xf32>
    %492 = math.tanh %491 : vector<2x32xf32>
    %493 = vector.extract_strided_slice %478 {offsets = [0, 96], sizes = [2, 32], strides = [1, 1]} : vector<2x128xf32> to vector<2x32xf32>
    %494 = arith.negf %493 : vector<2x32xf32>
    %495 = math.exp %494 : vector<2x32xf32>
    %cst_182 = arith.constant 1.000000e+00 : f32
    %496 = vector.broadcast %cst_182 : f32 to vector<2x32xf32>
    %497 = arith.addf %496, %495 : vector<2x32xf32>
    %498 = arith.divf %496, %497 : vector<2x32xf32>
    %499 = arith.mulf %490, %437 : vector<2x32xf32>
    %500 = arith.mulf %484, %492 : vector<2x32xf32>
    %501 = arith.addf %499, %500 : vector<2x32xf32>
    %502 = math.tanh %501 : vector<2x32xf32>
    %503 = arith.mulf %498, %502 : vector<2x32xf32>
    %c1_183 = arith.constant 1 : index
    %c0_184 = arith.constant 0 : index
    %c0_185 = arith.constant 0 : index
    %c0_186 = arith.constant 0 : index
    %504 = vector.load %arg14[%c1_183, %c0_184, %c0_185, %c0_186] : memref<2x8x2x128xf32, #tpu.memory_space<vmem>>, vector<1x1x2x128xf32>
    %505 = vector.shape_cast %504 : vector<1x1x2x128xf32> to vector<2x128xf32>
    %cst_187 = arith.constant dense<0.000000e+00> : vector<2x128xf32>
    %506 = tpu.matmul %468, %1, %cst_187 {dimension_numbers = #tpu.dot_dimension_numbers<[1], [0], [0], [1], [0, 0, 1, 1], [], []>} : vector<2x32xf32>, vector<32x128xf32>, vector<2x128xf32> -> vector<2x128xf32>
    %507 = arith.addf %505, %506 : vector<2x128xf32>
    %508 = vector.extract_strided_slice %507 {offsets = [0, 0], sizes = [2, 32], strides = [1, 1]} : vector<2x128xf32> to vector<2x32xf32>
    %509 = arith.negf %508 : vector<2x32xf32>
    %510 = math.exp %509 : vector<2x32xf32>
    %cst_188 = arith.constant 1.000000e+00 : f32
    %511 = vector.broadcast %cst_188 : f32 to vector<2x32xf32>
    %512 = arith.addf %511, %510 : vector<2x32xf32>
    %513 = arith.divf %511, %512 : vector<2x32xf32>
    %514 = vector.extract_strided_slice %507 {offsets = [0, 32], sizes = [2, 32], strides = [1, 1]} : vector<2x128xf32> to vector<2x32xf32>
    %515 = arith.negf %514 : vector<2x32xf32>
    %516 = math.exp %515 : vector<2x32xf32>
    %cst_189 = arith.constant 1.000000e+00 : f32
    %517 = vector.broadcast %cst_189 : f32 to vector<2x32xf32>
    %518 = arith.addf %517, %516 : vector<2x32xf32>
    %519 = arith.divf %517, %518 : vector<2x32xf32>
    %520 = vector.extract_strided_slice %507 {offsets = [0, 64], sizes = [2, 32], strides = [1, 1]} : vector<2x128xf32> to vector<2x32xf32>
    %521 = math.tanh %520 : vector<2x32xf32>
    %522 = vector.extract_strided_slice %507 {offsets = [0, 96], sizes = [2, 32], strides = [1, 1]} : vector<2x128xf32> to vector<2x32xf32>
    %523 = arith.negf %522 : vector<2x32xf32>
    %524 = math.exp %523 : vector<2x32xf32>
    %cst_190 = arith.constant 1.000000e+00 : f32
    %525 = vector.broadcast %cst_190 : f32 to vector<2x32xf32>
    %526 = arith.addf %525, %524 : vector<2x32xf32>
    %527 = arith.divf %525, %526 : vector<2x32xf32>
    %528 = arith.mulf %519, %466 : vector<2x32xf32>
    %529 = arith.mulf %513, %521 : vector<2x32xf32>
    %530 = arith.addf %528, %529 : vector<2x32xf32>
    %531 = math.tanh %530 : vector<2x32xf32>
    %532 = arith.mulf %527, %531 : vector<2x32xf32>
    %c7_191 = arith.constant 7 : index
    %c0_192 = arith.constant 0 : index
    %c0_193 = arith.constant 0 : index
    %533 = vector.load %arg15[%c7_191, %c0_192, %c0_193] : memref<8x2x32xf32, #tpu.memory_space<vmem>>, vector<1x2x32xf32>
    %534 = vector.shape_cast %533 : vector<1x2x32xf32> to vector<2x32xf32>
    %535 = vector.shape_cast %503 : vector<2x32xf32> to vector<1x2x32xf32>
    tpu.vector_store %arg15[%c7_191, %c0_192, %c0_193], %535 {strides = array<i32>} : memref<8x2x32xf32, #tpu.memory_space<vmem>>, vector<1x2x32xf32>,
    %c0_194 = arith.constant 0 : index
    %c0_195 = arith.constant 0 : index
    %c0_196 = arith.constant 0 : index
    %536 = vector.load %arg16[%c0_194, %c0_195, %c0_196] : memref<8x2x32xf32, #tpu.memory_space<vmem>>, vector<1x2x32xf32>
    %537 = vector.shape_cast %536 : vector<1x2x32xf32> to vector<2x32xf32>
    %538 = vector.shape_cast %532 : vector<2x32xf32> to vector<1x2x32xf32>
    tpu.vector_store %arg16[%c0_194, %c0_195, %c0_196], %538 {strides = array<i32>} : memref<8x2x32xf32, #tpu.memory_space<vmem>>, vector<1x2x32xf32>,
    %c0_197 = arith.constant 0 : index
    %c0_198 = arith.constant 0 : index
    %539 = vector.load %arg8[%c0_197, %c0_198] : memref<64x5xf32, #tpu.memory_space<vmem>>, vector<64x5xf32>
    %c0_199 = arith.constant 0 : index
    %c0_200 = arith.constant 0 : index
    %c0_201 = arith.constant 0 : index
    %540 = vector.load %arg15[%c0_199, %c0_200, %c0_201] : memref<8x2x32xf32, #tpu.memory_space<vmem>>, vector<8x2x32xf32>
    %541 = vector.shape_cast %540 : vector<8x2x32xf32> to vector<16x32xf32>
    %c0_202 = arith.constant 0 : index
    %c0_203 = arith.constant 0 : index
    %c0_204 = arith.constant 0 : index
    %542 = vector.load %arg16[%c0_202, %c0_203, %c0_204] : memref<8x2x32xf32, #tpu.memory_space<vmem>>, vector<8x2x32xf32>
    %543 = vector.shape_cast %542 : vector<8x2x32xf32> to vector<16x32xf32>
    %544 = vector.extract_strided_slice %539 {offsets = [0, 0], sizes = [32, 5], strides = [1, 1]} : vector<64x5xf32> to vector<32x5xf32>
    %cst_205 = arith.constant dense<0.000000e+00> : vector<16x5xf32>
    %545 = tpu.matmul %541, %544, %cst_205 {dimension_numbers = #tpu.dot_dimension_numbers<[1], [0], [0], [1], [0, 0, 1, 1], [], []>} : vector<16x32xf32>, vector<32x5xf32>, vector<16x5xf32> -> vector<16x5xf32>
    %546 = vector.extract_strided_slice %539 {offsets = [32, 0], sizes = [32, 5], strides = [1, 1]} : vector<64x5xf32> to vector<32x5xf32>
    %cst_206 = arith.constant dense<0.000000e+00> : vector<16x5xf32>
    %547 = tpu.matmul %543, %546, %cst_206 {dimension_numbers = #tpu.dot_dimension_numbers<[1], [0], [0], [1], [0, 0, 1, 1], [], []>} : vector<16x32xf32>, vector<32x5xf32>, vector<16x5xf32> -> vector<16x5xf32>
    %548 = arith.addf %545, %547 : vector<16x5xf32>
    %c0_207 = arith.constant 0 : index
    %c0_208 = arith.constant 0 : index
    %549 = vector.load %arg9[%c0_207, %c0_208] : memref<1x5xf32, #tpu.memory_space<vmem>>, vector<1x5xf32>
    %550 = vector.broadcast %549 : vector<1x5xf32> to vector<16x5xf32>
    %551 = arith.addf %548, %550 : vector<16x5xf32>
    %552 = vector.shape_cast %551 : vector<16x5xf32> to vector<8x2x5xf32>
    %c0_209 = arith.constant 0 : index
    %c0_210 = arith.constant 0 : index
    %c0_211 = arith.constant 0 : index
    %553 = vector.load %arg1[%c0_209, %c0_210, %c0_211] : memref<8x2x5xf32, #tpu.memory_space<vmem>>, vector<8x2x5xf32>
    %c0_212 = arith.constant 0 : index
    %c0_213 = arith.constant 0 : index
    %c0_214 = arith.constant 0 : index
    %554 = vector.load %arg2[%c0_212, %c0_213, %c0_214] : memref<8x2x1xf32, #tpu.memory_space<vmem>>, vector<8x2x1xf32>
    %555 = vector.extract_strided_slice %553 {offsets = [0, 0, 0], sizes = [1, 2, 5], strides = [1, 1, 1]} : vector<8x2x5xf32> to vector<1x2x5xf32>
    %556 = vector.shape_cast %555 : vector<1x2x5xf32> to vector<2x5xf32>
    %557 = vector.broadcast %2 : vector<1x5xf32> to vector<2x5xf32>
    %558 = arith.mulf %557, %556 : vector<2x5xf32>
    %cst_215 = arith.constant dense<0.000000e+00> : vector<2xf32>
    %559 = vector.multi_reduction <add>, %558, %cst_215 [1] : vector<2x5xf32> to vector<2xf32>
    %560 = vector.shape_cast %559 : vector<2xf32> to vector<2x1xf32>
    %561 = vector.extract_strided_slice %552 {offsets = [0, 0, 0], sizes = [1, 2, 5], strides = [1, 1, 1]} : vector<8x2x5xf32> to vector<1x2x5xf32>
    %562 = vector.shape_cast %561 : vector<1x2x5xf32> to vector<2x5xf32>
    %563 = arith.mulf %562, %556 : vector<2x5xf32>
    %cst_216 = arith.constant dense<0.000000e+00> : vector<2xf32>
    %564 = vector.multi_reduction <add>, %563, %cst_216 [1] : vector<2x5xf32> to vector<2xf32>
    %565 = vector.shape_cast %564 : vector<2xf32> to vector<2x1xf32>
    %566 = arith.addf %560, %565 : vector<2x1xf32>
    %567 = vector.extract_strided_slice %552 {offsets = [0, 0, 0], sizes = [1, 2, 5], strides = [1, 1, 1]} : vector<8x2x5xf32> to vector<1x2x5xf32>
    %568 = vector.shape_cast %567 : vector<1x2x5xf32> to vector<2x5xf32>
    %569 = vector.broadcast %2 : vector<1x5xf32> to vector<2x5xf32>
    %570 = arith.addf %569, %568 : vector<2x5xf32>
    %571 = vector.extract_strided_slice %552 {offsets = [1, 0, 0], sizes = [1, 2, 5], strides = [1, 1, 1]} : vector<8x2x5xf32> to vector<1x2x5xf32>
    %572 = vector.shape_cast %571 : vector<1x2x5xf32> to vector<2x5xf32>
    %573 = vector.extract_strided_slice %554 {offsets = [1, 0, 0], sizes = [1, 2, 1], strides = [1, 1, 1]} : vector<8x2x1xf32> to vector<1x2x1xf32>
    %574 = vector.shape_cast %573 : vector<1x2x1xf32> to vector<2x1xf32>
    %575 = vector.extract_strided_slice %553 {offsets = [1, 0, 0], sizes = [1, 2, 5], strides = [1, 1, 1]} : vector<8x2x5xf32> to vector<1x2x5xf32>
    %576 = vector.shape_cast %575 : vector<1x2x5xf32> to vector<2x5xf32>
    %577 = vector.extract_strided_slice %553 {offsets = [0, 0, 0], sizes = [1, 2, 5], strides = [1, 1, 1]} : vector<8x2x5xf32> to vector<1x2x5xf32>
    %578 = vector.shape_cast %577 : vector<1x2x5xf32> to vector<2x5xf32>
    %579 = arith.mulf %572, %576 : vector<2x5xf32>
    %cst_217 = arith.constant dense<0.000000e+00> : vector<2xf32>
    %580 = vector.multi_reduction <add>, %579, %cst_217 [1] : vector<2x5xf32> to vector<2xf32>
    %581 = vector.shape_cast %580 : vector<2xf32> to vector<2x1xf32>
    %cst_218 = arith.constant dense<0.000000e+00> : vector<2x5xf32>
    %582 = tpu.matmul %576, %4, %cst_218 {dimension_numbers = #tpu.dot_dimension_numbers<[1], [0], [0], [1], [0, 0, 1, 1], [], []>} : vector<2x5xf32>, vector<5x5xf32>, vector<2x5xf32> -> vector<2x5xf32>
    %583 = arith.mulf %582, %578 : vector<2x5xf32>
    %cst_219 = arith.constant dense<0.000000e+00> : vector<2xf32>
    %584 = vector.multi_reduction <add>, %583, %cst_219 [1] : vector<2x5xf32> to vector<2xf32>
    %585 = vector.shape_cast %584 : vector<2xf32> to vector<2x1xf32>
    %586 = arith.addf %581, %585 : vector<2x1xf32>
    %587 = arith.mulf %574, %586 : vector<2x1xf32>
    %588 = arith.addf %566, %587 : vector<2x1xf32>
    %589 = vector.shape_cast %570 : vector<2x5xf32> to vector<2x1x5xf32>
    %590 = vector.broadcast %589 : vector<2x1x5xf32> to vector<2x5x5xf32>
    %591 = vector.broadcast %5 : vector<1x5x5xf32> to vector<2x5x5xf32>
    %592 = arith.addf %590, %591 : vector<2x5x5xf32>
    %cst_220 = arith.constant dense<0xFF800000> : vector<2x5xf32>
    %593 = vector.multi_reduction <maximumf>, %592, %cst_220 [2] : vector<2x5x5xf32> to vector<2x5xf32>
    %594 = vector.shape_cast %593 : vector<2x5xf32> to vector<2x5x1xf32>
    %595 = vector.broadcast %594 : vector<2x5x1xf32> to vector<2x5x5xf32>
    %596 = arith.subf %592, %595 : vector<2x5x5xf32>
    %597 = math.exp %596 : vector<2x5x5xf32>
    %cst_221 = arith.constant dense<0.000000e+00> : vector<2x5xf32>
    %598 = vector.multi_reduction <add>, %597, %cst_221 [2] : vector<2x5x5xf32> to vector<2x5xf32>
    %599 = vector.shape_cast %598 : vector<2x5xf32> to vector<2x5x1xf32>
    %600 = math.log %599 : vector<2x5x1xf32>
    %601 = arith.addf %600, %594 : vector<2x5x1xf32>
    %602 = vector.shape_cast %601 : vector<2x5x1xf32> to vector<2x5xf32>
    %603 = arith.addf %602, %572 : vector<2x5xf32>
    %cst_222 = arith.constant 0.000000e+00 : f32
    %604 = vector.broadcast %cst_222 : f32 to vector<2x1xf32>
    %605 = arith.cmpf ogt, %574, %604 : vector<2x1xf32>
    %606 = vector.shape_cast %605 : vector<2x1xi1> to vector<2x1xi1>
    %607 = vector.broadcast %606 : vector<2x1xi1> to vector<2x5xi1>
    %608 = arith.select %607, %603, %570 : vector<2x5xi1>, vector<2x5xf32>
    %609 = vector.extract_strided_slice %552 {offsets = [2, 0, 0], sizes = [1, 2, 5], strides = [1, 1, 1]} : vector<8x2x5xf32> to vector<1x2x5xf32>
    %610 = vector.shape_cast %609 : vector<1x2x5xf32> to vector<2x5xf32>
    %611 = vector.extract_strided_slice %554 {offsets = [2, 0, 0], sizes = [1, 2, 1], strides = [1, 1, 1]} : vector<8x2x1xf32> to vector<1x2x1xf32>
    %612 = vector.shape_cast %611 : vector<1x2x1xf32> to vector<2x1xf32>
    %613 = vector.extract_strided_slice %553 {offsets = [2, 0, 0], sizes = [1, 2, 5], strides = [1, 1, 1]} : vector<8x2x5xf32> to vector<1x2x5xf32>
    %614 = vector.shape_cast %613 : vector<1x2x5xf32> to vector<2x5xf32>
    %615 = vector.extract_strided_slice %553 {offsets = [1, 0, 0], sizes = [1, 2, 5], strides = [1, 1, 1]} : vector<8x2x5xf32> to vector<1x2x5xf32>
    %616 = vector.shape_cast %615 : vector<1x2x5xf32> to vector<2x5xf32>
    %617 = arith.mulf %610, %614 : vector<2x5xf32>
    %cst_223 = arith.constant dense<0.000000e+00> : vector<2xf32>
    %618 = vector.multi_reduction <add>, %617, %cst_223 [1] : vector<2x5xf32> to vector<2xf32>
    %619 = vector.shape_cast %618 : vector<2xf32> to vector<2x1xf32>
    %cst_224 = arith.constant dense<0.000000e+00> : vector<2x5xf32>
    %620 = tpu.matmul %614, %4, %cst_224 {dimension_numbers = #tpu.dot_dimension_numbers<[1], [0], [0], [1], [0, 0, 1, 1], [], []>} : vector<2x5xf32>, vector<5x5xf32>, vector<2x5xf32> -> vector<2x5xf32>
    %621 = arith.mulf %620, %616 : vector<2x5xf32>
    %cst_225 = arith.constant dense<0.000000e+00> : vector<2xf32>
    %622 = vector.multi_reduction <add>, %621, %cst_225 [1] : vector<2x5xf32> to vector<2xf32>
    %623 = vector.shape_cast %622 : vector<2xf32> to vector<2x1xf32>
    %624 = arith.addf %619, %623 : vector<2x1xf32>
    %625 = arith.mulf %612, %624 : vector<2x1xf32>
    %626 = arith.addf %588, %625 : vector<2x1xf32>
    %627 = vector.shape_cast %608 : vector<2x5xf32> to vector<2x1x5xf32>
    %628 = vector.broadcast %627 : vector<2x1x5xf32> to vector<2x5x5xf32>
    %629 = vector.broadcast %5 : vector<1x5x5xf32> to vector<2x5x5xf32>
    %630 = arith.addf %628, %629 : vector<2x5x5xf32>
    %cst_226 = arith.constant dense<0xFF800000> : vector<2x5xf32>
    %631 = vector.multi_reduction <maximumf>, %630, %cst_226 [2] : vector<2x5x5xf32> to vector<2x5xf32>
    %632 = vector.shape_cast %631 : vector<2x5xf32> to vector<2x5x1xf32>
    %633 = vector.broadcast %632 : vector<2x5x1xf32> to vector<2x5x5xf32>
    %634 = arith.subf %630, %633 : vector<2x5x5xf32>
    %635 = math.exp %634 : vector<2x5x5xf32>
    %cst_227 = arith.constant dense<0.000000e+00> : vector<2x5xf32>
    %636 = vector.multi_reduction <add>, %635, %cst_227 [2] : vector<2x5x5xf32> to vector<2x5xf32>
    %637 = vector.shape_cast %636 : vector<2x5xf32> to vector<2x5x1xf32>
    %638 = math.log %637 : vector<2x5x1xf32>
    %639 = arith.addf %638, %632 : vector<2x5x1xf32>
    %640 = vector.shape_cast %639 : vector<2x5x1xf32> to vector<2x5xf32>
    %641 = arith.addf %640, %610 : vector<2x5xf32>
    %cst_228 = arith.constant 0.000000e+00 : f32
    %642 = vector.broadcast %cst_228 : f32 to vector<2x1xf32>
    %643 = arith.cmpf ogt, %612, %642 : vector<2x1xf32>
    %644 = vector.shape_cast %643 : vector<2x1xi1> to vector<2x1xi1>
    %645 = vector.broadcast %644 : vector<2x1xi1> to vector<2x5xi1>
    %646 = arith.select %645, %641, %608 : vector<2x5xi1>, vector<2x5xf32>
    %647 = vector.extract_strided_slice %552 {offsets = [3, 0, 0], sizes = [1, 2, 5], strides = [1, 1, 1]} : vector<8x2x5xf32> to vector<1x2x5xf32>
    %648 = vector.shape_cast %647 : vector<1x2x5xf32> to vector<2x5xf32>
    %649 = vector.extract_strided_slice %554 {offsets = [3, 0, 0], sizes = [1, 2, 1], strides = [1, 1, 1]} : vector<8x2x1xf32> to vector<1x2x1xf32>
    %650 = vector.shape_cast %649 : vector<1x2x1xf32> to vector<2x1xf32>
    %651 = vector.extract_strided_slice %553 {offsets = [3, 0, 0], sizes = [1, 2, 5], strides = [1, 1, 1]} : vector<8x2x5xf32> to vector<1x2x5xf32>
    %652 = vector.shape_cast %651 : vector<1x2x5xf32> to vector<2x5xf32>
    %653 = vector.extract_strided_slice %553 {offsets = [2, 0, 0], sizes = [1, 2, 5], strides = [1, 1, 1]} : vector<8x2x5xf32> to vector<1x2x5xf32>
    %654 = vector.shape_cast %653 : vector<1x2x5xf32> to vector<2x5xf32>
    %655 = arith.mulf %648, %652 : vector<2x5xf32>
    %cst_229 = arith.constant dense<0.000000e+00> : vector<2xf32>
    %656 = vector.multi_reduction <add>, %655, %cst_229 [1] : vector<2x5xf32> to vector<2xf32>
    %657 = vector.shape_cast %656 : vector<2xf32> to vector<2x1xf32>
    %cst_230 = arith.constant dense<0.000000e+00> : vector<2x5xf32>
    %658 = tpu.matmul %652, %4, %cst_230 {dimension_numbers = #tpu.dot_dimension_numbers<[1], [0], [0], [1], [0, 0, 1, 1], [], []>} : vector<2x5xf32>, vector<5x5xf32>, vector<2x5xf32> -> vector<2x5xf32>
    %659 = arith.mulf %658, %654 : vector<2x5xf32>
    %cst_231 = arith.constant dense<0.000000e+00> : vector<2xf32>
    %660 = vector.multi_reduction <add>, %659, %cst_231 [1] : vector<2x5xf32> to vector<2xf32>
    %661 = vector.shape_cast %660 : vector<2xf32> to vector<2x1xf32>
    %662 = arith.addf %657, %661 : vector<2x1xf32>
    %663 = arith.mulf %650, %662 : vector<2x1xf32>
    %664 = arith.addf %626, %663 : vector<2x1xf32>
    %665 = vector.shape_cast %646 : vector<2x5xf32> to vector<2x1x5xf32>
    %666 = vector.broadcast %665 : vector<2x1x5xf32> to vector<2x5x5xf32>
    %667 = vector.broadcast %5 : vector<1x5x5xf32> to vector<2x5x5xf32>
    %668 = arith.addf %666, %667 : vector<2x5x5xf32>
    %cst_232 = arith.constant dense<0xFF800000> : vector<2x5xf32>
    %669 = vector.multi_reduction <maximumf>, %668, %cst_232 [2] : vector<2x5x5xf32> to vector<2x5xf32>
    %670 = vector.shape_cast %669 : vector<2x5xf32> to vector<2x5x1xf32>
    %671 = vector.broadcast %670 : vector<2x5x1xf32> to vector<2x5x5xf32>
    %672 = arith.subf %668, %671 : vector<2x5x5xf32>
    %673 = math.exp %672 : vector<2x5x5xf32>
    %cst_233 = arith.constant dense<0.000000e+00> : vector<2x5xf32>
    %674 = vector.multi_reduction <add>, %673, %cst_233 [2] : vector<2x5x5xf32> to vector<2x5xf32>
    %675 = vector.shape_cast %674 : vector<2x5xf32> to vector<2x5x1xf32>
    %676 = math.log %675 : vector<2x5x1xf32>
    %677 = arith.addf %676, %670 : vector<2x5x1xf32>
    %678 = vector.shape_cast %677 : vector<2x5x1xf32> to vector<2x5xf32>
    %679 = arith.addf %678, %648 : vector<2x5xf32>
    %cst_234 = arith.constant 0.000000e+00 : f32
    %680 = vector.broadcast %cst_234 : f32 to vector<2x1xf32>
    %681 = arith.cmpf ogt, %650, %680 : vector<2x1xf32>
    %682 = vector.shape_cast %681 : vector<2x1xi1> to vector<2x1xi1>
    %683 = vector.broadcast %682 : vector<2x1xi1> to vector<2x5xi1>
    %684 = arith.select %683, %679, %646 : vector<2x5xi1>, vector<2x5xf32>
    %685 = vector.extract_strided_slice %552 {offsets = [4, 0, 0], sizes = [1, 2, 5], strides = [1, 1, 1]} : vector<8x2x5xf32> to vector<1x2x5xf32>
    %686 = vector.shape_cast %685 : vector<1x2x5xf32> to vector<2x5xf32>
    %687 = vector.extract_strided_slice %554 {offsets = [4, 0, 0], sizes = [1, 2, 1], strides = [1, 1, 1]} : vector<8x2x1xf32> to vector<1x2x1xf32>
    %688 = vector.shape_cast %687 : vector<1x2x1xf32> to vector<2x1xf32>
    %689 = vector.extract_strided_slice %553 {offsets = [4, 0, 0], sizes = [1, 2, 5], strides = [1, 1, 1]} : vector<8x2x5xf32> to vector<1x2x5xf32>
    %690 = vector.shape_cast %689 : vector<1x2x5xf32> to vector<2x5xf32>
    %691 = vector.extract_strided_slice %553 {offsets = [3, 0, 0], sizes = [1, 2, 5], strides = [1, 1, 1]} : vector<8x2x5xf32> to vector<1x2x5xf32>
    %692 = vector.shape_cast %691 : vector<1x2x5xf32> to vector<2x5xf32>
    %693 = arith.mulf %686, %690 : vector<2x5xf32>
    %cst_235 = arith.constant dense<0.000000e+00> : vector<2xf32>
    %694 = vector.multi_reduction <add>, %693, %cst_235 [1] : vector<2x5xf32> to vector<2xf32>
    %695 = vector.shape_cast %694 : vector<2xf32> to vector<2x1xf32>
    %cst_236 = arith.constant dense<0.000000e+00> : vector<2x5xf32>
    %696 = tpu.matmul %690, %4, %cst_236 {dimension_numbers = #tpu.dot_dimension_numbers<[1], [0], [0], [1], [0, 0, 1, 1], [], []>} : vector<2x5xf32>, vector<5x5xf32>, vector<2x5xf32> -> vector<2x5xf32>
    %697 = arith.mulf %696, %692 : vector<2x5xf32>
    %cst_237 = arith.constant dense<0.000000e+00> : vector<2xf32>
    %698 = vector.multi_reduction <add>, %697, %cst_237 [1] : vector<2x5xf32> to vector<2xf32>
    %699 = vector.shape_cast %698 : vector<2xf32> to vector<2x1xf32>
    %700 = arith.addf %695, %699 : vector<2x1xf32>
    %701 = arith.mulf %688, %700 : vector<2x1xf32>
    %702 = arith.addf %664, %701 : vector<2x1xf32>
    %703 = vector.shape_cast %684 : vector<2x5xf32> to vector<2x1x5xf32>
    %704 = vector.broadcast %703 : vector<2x1x5xf32> to vector<2x5x5xf32>
    %705 = vector.broadcast %5 : vector<1x5x5xf32> to vector<2x5x5xf32>
    %706 = arith.addf %704, %705 : vector<2x5x5xf32>
    %cst_238 = arith.constant dense<0xFF800000> : vector<2x5xf32>
    %707 = vector.multi_reduction <maximumf>, %706, %cst_238 [2] : vector<2x5x5xf32> to vector<2x5xf32>
    %708 = vector.shape_cast %707 : vector<2x5xf32> to vector<2x5x1xf32>
    %709 = vector.broadcast %708 : vector<2x5x1xf32> to vector<2x5x5xf32>
    %710 = arith.subf %706, %709 : vector<2x5x5xf32>
    %711 = math.exp %710 : vector<2x5x5xf32>
    %cst_239 = arith.constant dense<0.000000e+00> : vector<2x5xf32>
    %712 = vector.multi_reduction <add>, %711, %cst_239 [2] : vector<2x5x5xf32> to vector<2x5xf32>
    %713 = vector.shape_cast %712 : vector<2x5xf32> to vector<2x5x1xf32>
    %714 = math.log %713 : vector<2x5x1xf32>
    %715 = arith.addf %714, %708 : vector<2x5x1xf32>
    %716 = vector.shape_cast %715 : vector<2x5x1xf32> to vector<2x5xf32>
    %717 = arith.addf %716, %686 : vector<2x5xf32>
    %cst_240 = arith.constant 0.000000e+00 : f32
    %718 = vector.broadcast %cst_240 : f32 to vector<2x1xf32>
    %719 = arith.cmpf ogt, %688, %718 : vector<2x1xf32>
    %720 = vector.shape_cast %719 : vector<2x1xi1> to vector<2x1xi1>
    %721 = vector.broadcast %720 : vector<2x1xi1> to vector<2x5xi1>
    %722 = arith.select %721, %717, %684 : vector<2x5xi1>, vector<2x5xf32>
    %723 = vector.extract_strided_slice %552 {offsets = [5, 0, 0], sizes = [1, 2, 5], strides = [1, 1, 1]} : vector<8x2x5xf32> to vector<1x2x5xf32>
    %724 = vector.shape_cast %723 : vector<1x2x5xf32> to vector<2x5xf32>
    %725 = vector.extract_strided_slice %554 {offsets = [5, 0, 0], sizes = [1, 2, 1], strides = [1, 1, 1]} : vector<8x2x1xf32> to vector<1x2x1xf32>
    %726 = vector.shape_cast %725 : vector<1x2x1xf32> to vector<2x1xf32>
    %727 = vector.extract_strided_slice %553 {offsets = [5, 0, 0], sizes = [1, 2, 5], strides = [1, 1, 1]} : vector<8x2x5xf32> to vector<1x2x5xf32>
    %728 = vector.shape_cast %727 : vector<1x2x5xf32> to vector<2x5xf32>
    %729 = vector.extract_strided_slice %553 {offsets = [4, 0, 0], sizes = [1, 2, 5], strides = [1, 1, 1]} : vector<8x2x5xf32> to vector<1x2x5xf32>
    %730 = vector.shape_cast %729 : vector<1x2x5xf32> to vector<2x5xf32>
    %731 = arith.mulf %724, %728 : vector<2x5xf32>
    %cst_241 = arith.constant dense<0.000000e+00> : vector<2xf32>
    %732 = vector.multi_reduction <add>, %731, %cst_241 [1] : vector<2x5xf32> to vector<2xf32>
    %733 = vector.shape_cast %732 : vector<2xf32> to vector<2x1xf32>
    %cst_242 = arith.constant dense<0.000000e+00> : vector<2x5xf32>
    %734 = tpu.matmul %728, %4, %cst_242 {dimension_numbers = #tpu.dot_dimension_numbers<[1], [0], [0], [1], [0, 0, 1, 1], [], []>} : vector<2x5xf32>, vector<5x5xf32>, vector<2x5xf32> -> vector<2x5xf32>
    %735 = arith.mulf %734, %730 : vector<2x5xf32>
    %cst_243 = arith.constant dense<0.000000e+00> : vector<2xf32>
    %736 = vector.multi_reduction <add>, %735, %cst_243 [1] : vector<2x5xf32> to vector<2xf32>
    %737 = vector.shape_cast %736 : vector<2xf32> to vector<2x1xf32>
    %738 = arith.addf %733, %737 : vector<2x1xf32>
    %739 = arith.mulf %726, %738 : vector<2x1xf32>
    %740 = arith.addf %702, %739 : vector<2x1xf32>
    %741 = vector.shape_cast %722 : vector<2x5xf32> to vector<2x1x5xf32>
    %742 = vector.broadcast %741 : vector<2x1x5xf32> to vector<2x5x5xf32>
    %743 = vector.broadcast %5 : vector<1x5x5xf32> to vector<2x5x5xf32>
    %744 = arith.addf %742, %743 : vector<2x5x5xf32>
    %cst_244 = arith.constant dense<0xFF800000> : vector<2x5xf32>
    %745 = vector.multi_reduction <maximumf>, %744, %cst_244 [2] : vector<2x5x5xf32> to vector<2x5xf32>
    %746 = vector.shape_cast %745 : vector<2x5xf32> to vector<2x5x1xf32>
    %747 = vector.broadcast %746 : vector<2x5x1xf32> to vector<2x5x5xf32>
    %748 = arith.subf %744, %747 : vector<2x5x5xf32>
    %749 = math.exp %748 : vector<2x5x5xf32>
    %cst_245 = arith.constant dense<0.000000e+00> : vector<2x5xf32>
    %750 = vector.multi_reduction <add>, %749, %cst_245 [2] : vector<2x5x5xf32> to vector<2x5xf32>
    %751 = vector.shape_cast %750 : vector<2x5xf32> to vector<2x5x1xf32>
    %752 = math.log %751 : vector<2x5x1xf32>
    %753 = arith.addf %752, %746 : vector<2x5x1xf32>
    %754 = vector.shape_cast %753 : vector<2x5x1xf32> to vector<2x5xf32>
    %755 = arith.addf %754, %724 : vector<2x5xf32>
    %cst_246 = arith.constant 0.000000e+00 : f32
    %756 = vector.broadcast %cst_246 : f32 to vector<2x1xf32>
    %757 = arith.cmpf ogt, %726, %756 : vector<2x1xf32>
    %758 = vector.shape_cast %757 : vector<2x1xi1> to vector<2x1xi1>
    %759 = vector.broadcast %758 : vector<2x1xi1> to vector<2x5xi1>
    %760 = arith.select %759, %755, %722 : vector<2x5xi1>, vector<2x5xf32>
    %761 = vector.extract_strided_slice %552 {offsets = [6, 0, 0], sizes = [1, 2, 5], strides = [1, 1, 1]} : vector<8x2x5xf32> to vector<1x2x5xf32>
    %762 = vector.shape_cast %761 : vector<1x2x5xf32> to vector<2x5xf32>
    %763 = vector.extract_strided_slice %554 {offsets = [6, 0, 0], sizes = [1, 2, 1], strides = [1, 1, 1]} : vector<8x2x1xf32> to vector<1x2x1xf32>
    %764 = vector.shape_cast %763 : vector<1x2x1xf32> to vector<2x1xf32>
    %765 = vector.extract_strided_slice %553 {offsets = [6, 0, 0], sizes = [1, 2, 5], strides = [1, 1, 1]} : vector<8x2x5xf32> to vector<1x2x5xf32>
    %766 = vector.shape_cast %765 : vector<1x2x5xf32> to vector<2x5xf32>
    %767 = vector.extract_strided_slice %553 {offsets = [5, 0, 0], sizes = [1, 2, 5], strides = [1, 1, 1]} : vector<8x2x5xf32> to vector<1x2x5xf32>
    %768 = vector.shape_cast %767 : vector<1x2x5xf32> to vector<2x5xf32>
    %769 = arith.mulf %762, %766 : vector<2x5xf32>
    %cst_247 = arith.constant dense<0.000000e+00> : vector<2xf32>
    %770 = vector.multi_reduction <add>, %769, %cst_247 [1] : vector<2x5xf32> to vector<2xf32>
    %771 = vector.shape_cast %770 : vector<2xf32> to vector<2x1xf32>
    %cst_248 = arith.constant dense<0.000000e+00> : vector<2x5xf32>
    %772 = tpu.matmul %766, %4, %cst_248 {dimension_numbers = #tpu.dot_dimension_numbers<[1], [0], [0], [1], [0, 0, 1, 1], [], []>} : vector<2x5xf32>, vector<5x5xf32>, vector<2x5xf32> -> vector<2x5xf32>
    %773 = arith.mulf %772, %768 : vector<2x5xf32>
    %cst_249 = arith.constant dense<0.000000e+00> : vector<2xf32>
    %774 = vector.multi_reduction <add>, %773, %cst_249 [1] : vector<2x5xf32> to vector<2xf32>
    %775 = vector.shape_cast %774 : vector<2xf32> to vector<2x1xf32>
    %776 = arith.addf %771, %775 : vector<2x1xf32>
    %777 = arith.mulf %764, %776 : vector<2x1xf32>
    %778 = arith.addf %740, %777 : vector<2x1xf32>
    %779 = vector.shape_cast %760 : vector<2x5xf32> to vector<2x1x5xf32>
    %780 = vector.broadcast %779 : vector<2x1x5xf32> to vector<2x5x5xf32>
    %781 = vector.broadcast %5 : vector<1x5x5xf32> to vector<2x5x5xf32>
    %782 = arith.addf %780, %781 : vector<2x5x5xf32>
    %cst_250 = arith.constant dense<0xFF800000> : vector<2x5xf32>
    %783 = vector.multi_reduction <maximumf>, %782, %cst_250 [2] : vector<2x5x5xf32> to vector<2x5xf32>
    %784 = vector.shape_cast %783 : vector<2x5xf32> to vector<2x5x1xf32>
    %785 = vector.broadcast %784 : vector<2x5x1xf32> to vector<2x5x5xf32>
    %786 = arith.subf %782, %785 : vector<2x5x5xf32>
    %787 = math.exp %786 : vector<2x5x5xf32>
    %cst_251 = arith.constant dense<0.000000e+00> : vector<2x5xf32>
    %788 = vector.multi_reduction <add>, %787, %cst_251 [2] : vector<2x5x5xf32> to vector<2x5xf32>
    %789 = vector.shape_cast %788 : vector<2x5xf32> to vector<2x5x1xf32>
    %790 = math.log %789 : vector<2x5x1xf32>
    %791 = arith.addf %790, %784 : vector<2x5x1xf32>
    %792 = vector.shape_cast %791 : vector<2x5x1xf32> to vector<2x5xf32>
    %793 = arith.addf %792, %762 : vector<2x5xf32>
    %cst_252 = arith.constant 0.000000e+00 : f32
    %794 = vector.broadcast %cst_252 : f32 to vector<2x1xf32>
    %795 = arith.cmpf ogt, %764, %794 : vector<2x1xf32>
    %796 = vector.shape_cast %795 : vector<2x1xi1> to vector<2x1xi1>
    %797 = vector.broadcast %796 : vector<2x1xi1> to vector<2x5xi1>
    %798 = arith.select %797, %793, %760 : vector<2x5xi1>, vector<2x5xf32>
    %799 = vector.extract_strided_slice %552 {offsets = [7, 0, 0], sizes = [1, 2, 5], strides = [1, 1, 1]} : vector<8x2x5xf32> to vector<1x2x5xf32>
    %800 = vector.shape_cast %799 : vector<1x2x5xf32> to vector<2x5xf32>
    %801 = vector.extract_strided_slice %554 {offsets = [7, 0, 0], sizes = [1, 2, 1], strides = [1, 1, 1]} : vector<8x2x1xf32> to vector<1x2x1xf32>
    %802 = vector.shape_cast %801 : vector<1x2x1xf32> to vector<2x1xf32>
    %803 = vector.extract_strided_slice %553 {offsets = [7, 0, 0], sizes = [1, 2, 5], strides = [1, 1, 1]} : vector<8x2x5xf32> to vector<1x2x5xf32>
    %804 = vector.shape_cast %803 : vector<1x2x5xf32> to vector<2x5xf32>
    %805 = vector.extract_strided_slice %553 {offsets = [6, 0, 0], sizes = [1, 2, 5], strides = [1, 1, 1]} : vector<8x2x5xf32> to vector<1x2x5xf32>
    %806 = vector.shape_cast %805 : vector<1x2x5xf32> to vector<2x5xf32>
    %807 = arith.mulf %800, %804 : vector<2x5xf32>
    %cst_253 = arith.constant dense<0.000000e+00> : vector<2xf32>
    %808 = vector.multi_reduction <add>, %807, %cst_253 [1] : vector<2x5xf32> to vector<2xf32>
    %809 = vector.shape_cast %808 : vector<2xf32> to vector<2x1xf32>
    %cst_254 = arith.constant dense<0.000000e+00> : vector<2x5xf32>
    %810 = tpu.matmul %804, %4, %cst_254 {dimension_numbers = #tpu.dot_dimension_numbers<[1], [0], [0], [1], [0, 0, 1, 1], [], []>} : vector<2x5xf32>, vector<5x5xf32>, vector<2x5xf32> -> vector<2x5xf32>
    %811 = arith.mulf %810, %806 : vector<2x5xf32>
    %cst_255 = arith.constant dense<0.000000e+00> : vector<2xf32>
    %812 = vector.multi_reduction <add>, %811, %cst_255 [1] : vector<2x5xf32> to vector<2xf32>
    %813 = vector.shape_cast %812 : vector<2xf32> to vector<2x1xf32>
    %814 = arith.addf %809, %813 : vector<2x1xf32>
    %815 = arith.mulf %802, %814 : vector<2x1xf32>
    %816 = arith.addf %778, %815 : vector<2x1xf32>
    %817 = vector.shape_cast %798 : vector<2x5xf32> to vector<2x1x5xf32>
    %818 = vector.broadcast %817 : vector<2x1x5xf32> to vector<2x5x5xf32>
    %819 = vector.broadcast %5 : vector<1x5x5xf32> to vector<2x5x5xf32>
    %820 = arith.addf %818, %819 : vector<2x5x5xf32>
    %cst_256 = arith.constant dense<0xFF800000> : vector<2x5xf32>
    %821 = vector.multi_reduction <maximumf>, %820, %cst_256 [2] : vector<2x5x5xf32> to vector<2x5xf32>
    %822 = vector.shape_cast %821 : vector<2x5xf32> to vector<2x5x1xf32>
    %823 = vector.broadcast %822 : vector<2x5x1xf32> to vector<2x5x5xf32>
    %824 = arith.subf %820, %823 : vector<2x5x5xf32>
    %825 = math.exp %824 : vector<2x5x5xf32>
    %cst_257 = arith.constant dense<0.000000e+00> : vector<2x5xf32>
    %826 = vector.multi_reduction <add>, %825, %cst_257 [2] : vector<2x5x5xf32> to vector<2x5xf32>
    %827 = vector.shape_cast %826 : vector<2x5xf32> to vector<2x5x1xf32>
    %828 = math.log %827 : vector<2x5x1xf32>
    %829 = arith.addf %828, %822 : vector<2x5x1xf32>
    %830 = vector.shape_cast %829 : vector<2x5x1xf32> to vector<2x5xf32>
    %831 = arith.addf %830, %800 : vector<2x5xf32>
    %cst_258 = arith.constant 0.000000e+00 : f32
    %832 = vector.broadcast %cst_258 : f32 to vector<2x1xf32>
    %833 = arith.cmpf ogt, %802, %832 : vector<2x1xf32>
    %834 = vector.shape_cast %833 : vector<2x1xi1> to vector<2x1xi1>
    %835 = vector.broadcast %834 : vector<2x1xi1> to vector<2x5xi1>
    %836 = arith.select %835, %831, %798 : vector<2x5xi1>, vector<2x5xf32>
    %c0_259 = arith.constant 0 : index
    %c0_260 = arith.constant 0 : index
    %837 = vector.load %arg3[%c0_259, %c0_260] : memref<2x5xf32, #tpu.memory_space<vmem>>, vector<2x5xf32>
    %838 = vector.broadcast %3 : vector<1x5xf32> to vector<2x5xf32>
    %839 = arith.mulf %838, %837 : vector<2x5xf32>
    %cst_261 = arith.constant dense<0.000000e+00> : vector<2xf32>
    %840 = vector.multi_reduction <add>, %839, %cst_261 [1] : vector<2x5xf32> to vector<2xf32>
    %841 = vector.shape_cast %840 : vector<2xf32> to vector<2x1xf32>
    %842 = arith.addf %816, %841 : vector<2x1xf32>
    %843 = vector.shape_cast %842 : vector<2x1xf32> to vector<1x2x1xf32>
    %cst_262 = arith.constant dense<0.000000e+00> : vector<1xf32>
    %844 = vector.multi_reduction <add>, %843, %cst_262 [1, 2] : vector<1x2x1xf32> to vector<1xf32>
    %845 = vector.shape_cast %844 : vector<1xf32> to vector<1x1x1xf32>
    %846 = vector.extract %845[0, 0, 0] : f32 from vector<1x1x1xf32>
    %847 = vector.broadcast %3 : vector<1x5xf32> to vector<2x5xf32>
    %848 = arith.addf %836, %847 : vector<2x5xf32>
    %cst_263 = arith.constant dense<0xFF800000> : vector<2xf32>
    %849 = vector.multi_reduction <maximumf>, %848, %cst_263 [1] : vector<2x5xf32> to vector<2xf32>
    %850 = vector.shape_cast %849 : vector<2xf32> to vector<2x1xf32>
    %851 = vector.broadcast %850 : vector<2x1xf32> to vector<2x5xf32>
    %852 = arith.subf %848, %851 : vector<2x5xf32>
    %853 = math.exp %852 : vector<2x5xf32>
    %cst_264 = arith.constant dense<0.000000e+00> : vector<2xf32>
    %854 = vector.multi_reduction <add>, %853, %cst_264 [1] : vector<2x5xf32> to vector<2xf32>
    %855 = vector.shape_cast %854 : vector<2xf32> to vector<2x1xf32>
    %856 = math.log %855 : vector<2x1xf32>
    %857 = arith.addf %850, %856 : vector<2x1xf32>
    %858 = vector.shape_cast %857 : vector<2x1xf32> to vector<1x2x1xf32>
    %cst_265 = arith.constant dense<0.000000e+00> : vector<1xf32>
    %859 = vector.multi_reduction <add>, %858, %cst_265 [1, 2] : vector<1x2x1xf32> to vector<1xf32>
    %860 = vector.shape_cast %859 : vector<1xf32> to vector<1x1x1xf32>
    %861 = vector.extract %860[0, 0, 0] : f32 from vector<1x1x1xf32>
    %862 = arith.subf %846, %861 : f32
    %cst_266 = arith.constant 0.000000e+00 : f32
    %863 = arith.subf %cst_266, %862 : f32
    %864 = vector.broadcast %863 : f32 to vector<1x1xf32>
    %c0_267 = arith.constant 0 : index
    %c0_268 = arith.constant 0 : index
    %865 = vector.load %arg13[%c0_267, %c0_268] : memref<1x1xf32, #tpu.memory_space<vmem>>, vector<1x1xf32>
    tpu.vector_store %arg13[%c0_267, %c0_268], %864 {strides = array<i32>} : memref<1x1xf32, #tpu.memory_space<vmem>>, vector<1x1xf32>,
    return
  }
}

</mosaic_0001>

<bundles_post_ra>
// kernel: bilstm_crf_loss.1
= control target key start
LH: loop header
LB: loop body
LE: loop exit
PB: predicated region body
PF: predicated region fallthrough
CT: control target
= control target key end

     0   :  { %v70_v3 = vlaneseq  ;;  %v4508_v6 = vmov 0.0   ;;  %v4509_v9 = vmov 1983009808   ;;  %v4510_v18 = vmov 0.0|0.0   ;;  %s5360_s0 = inlined_call_operand.vmem [shape: f32[8,2,16], index: 0, kind: input, shape index: {}]   ;;  %s5361_s1 = inlined_call_operand.vmem [shape: f32[8,2,5], index: 1, kind: input, shape index: {}]   ;;  %s5362_s2 = inlined_call_operand.vmem [shape: f32[8,2,1], index: 2, kind: input, shape index: {}]   ;;  %s5363_s3 = inlined_call_operand.vmem [shape: f32[2,5], index: 3, kind: input, shape index: {}]   ;;  %s5364_s4 = inlined_call_operand.vmem [shape: f32[16,256], index: 4, kind: input, shape index: {}]   ;;  %s5365_s5 = inlined_call_operand.vmem [shape: f32[1,256], index: 5, kind: input, shape index: {}]   ;;  %s5366_s6 = inlined_call_operand.vmem [shape: f32[32,128], index: 6, kind: input, shape index: {}]   ;;  %s5367_s7 = inlined_call_operand.vmem [shape: f32[32,128], index: 7, kind: input, shape index: {}]   ;;  %s5368_s8 = inlined_call_operand.vmem [shape: f32[64,5], index: 8, kind: input, shape index: {}]   ;;  %s5369_s9 = inlined_call_operand.vmem [shape: f32[1,5], index: 9, kind: input, shape index: {}]   ;;  %s5370_s10 = inlined_call_operand.vmem [shape: f32[1,5], index: 10, kind: input, shape index: {}]   ;;  %s5371_s11 = inlined_call_operand.vmem [shape: f32[1,5], index: 11, kind: input, shape index: {}]   ;;  %s5372_s12 = inlined_call_operand.vmem [shape: f32[5,5], index: 12, kind: input, shape index: {}]   ;;  %s5373_s13 = inlined_call_operand.hbm [shape: f32[1,1], index: 13, kind: output, shape index: {}]  }
   0x1   :  { %v65_v0 = vld [vmem:[%s5364_s4 + $0x8] sm:$0xff]  ;;  %v67_v1 = vld [vmem:[%s5364_s4 + $0x18] sm:$0xff]  ;;  %v64_v2 = vld [vmem:[%s5364_s4] sm:$0xff]  ;;  %191 = vmatprep.mubr.f32.mxu0 %v4508_v6  ;;  %v91_v10 = vunpack.c.l.s4 %v4509_v9  ;;  %4166 = vmatprep.subr.bf16.mxu1 %v4510_v18  ;;  %vm4511_vm0 = vmmov 0  }
   0x2   :  { %v4162_v4 = vpack.c.bf16 %v67_v1, %v65_v0  ;;  %v66_v5 = vld [vmem:[%s5364_s4 + $0x10] sm:$0xff]  ;;  %v56_v7 = vld [vmem:[%s5360_s0] sm:$0x3]  ;;  %v57_v8 = vld [vmem:[%s5360_s0 + $0x2] sm:$0x3]  ;;  %v4613_v14 = vshrl.u32 %v70_v3, 7  ;;  %3937 = vmatprep.mubr.msk.f32.mxu1 %vm4511_vm0, %v4508_v6 }
   0x3   :  { %v4164_v11 = vpack.c.bf16 %v66_v5, %v64_v2  ;;  %v58_v12 = vld [vmem:[%s5360_s0 + $0x4] sm:$0x3]  ;;  %v59_v13 = vld [vmem:[%s5360_s0 + $0x6] sm:$0x3]  ;;  %v88_v15 = vcombine.low %v56_v7, %v57_v8  ;;  %v92_v17 = vunpack.c.0.s8 %v91_v10  ;;  %v46_v20 = vld [vmem:[%s5366_s6 + $0x8] sm:$0xff] }
   0x4   :  { %4163 = vmatprep.subr.bf16.mxu0 %v4162_v4  ;;  %v89_v16 = vcombine.low %v58_v12, %v59_v13  ;;  %v45_v19 = vld [vmem:[%s5366_s6] sm:$0xff]  ;;  %v60_v21 = vld [vmem:[%s5360_s0 + $0x8] sm:$0x3]  ;;  %v61_v23 = vld [vmem:[%s5360_s0 + $0xa] sm:$0x3] }
   0x5   :  { %4165 = vmatpush1.bf16.msra.mxu0 %v4164_v11  ;;  %v4625_v22 = vpack.c.bf16 %v46_v20, %v45_v19  ;;  %v62_v24 = vld [vmem:[%s5360_s0 + $0xc] sm:$0x3]  ;;  %v63_v25 = vld [vmem:[%s5360_s0 + $0xe] sm:$0x3]  ;;  %v4639_v26 = vsub.s32 %v92_v17, %v4613_v14  ;;  %v105_v27 = vcombine.low %v60_v21, %v61_v23  ;;  %v47_v29 = vld [vmem:[%s5366_s6 + $0x10] sm:$0xff] }
   0x6   :  { %v106_v28 = vcombine.low %v62_v24, %v63_v25  ;;  %v48_v30 = vld [vmem:[%s5366_s6 + $0x18] sm:$0xff]  ;;  %4172 = vmatprep.subr.bf16.mxu0 %v4510_v18  ;;  %v49_v31 = vld [vmem:[%s5367_s7] sm:$0xff]  ;;  %v50_v33 = vld [vmem:[%s5367_s7 + $0x8] sm:$0xff] }
   0x7   :  { %4168 = vmatpush3.bf16.msra.mxu1 %v4625_v22  ;;  %v4652_v32 = vpack.c.bf16 %v48_v30, %v47_v29  ;;  %v96_v34 = vrot.slane %v88_v15, %v4639_v26  ;;  %v103_v35 = vrot.slane %v89_v16, %v4639_v26  ;;  %v113_v36 = vrot.slane %v105_v27, %v4639_v26 }
   0x8   :  { %v120_v37 = vrot.slane %v106_v28, %v4639_v26  ;;  %4169 = vmatprep.subr.bf16.mxu1 %v4510_v18 }
   0x9   :  { %18 = vsyncpa [#allocation6], 0  ;;  %vm122_vm1 = vcmask 130048   ;;  %v4662_v38 = vpack.c.bf16 %v50_v33, %v49_v31  ;;  %v104_v39 = vcombine.low %v96_v34, %v103_v35  ;;  %v51_v40 = vld [vmem:[%s5367_s7 + $0x10] sm:$0xff]  ;;  %v52_v41 = vld [vmem:[%s5367_s7 + $0x18] sm:$0xff]  ;;  %v4698_v44 = vsub.s32 0, %v4613_v14 }
   0xa   :  { %v121_v42 = vcombine.low %v113_v36, %v120_v37  ;;  %v4675_v43 = vpack.c.bf16 %v52_v41, %v51_v40  ;;  %v68_v45 = vld [vmem:[%s5365_s5] sm:$0x3]  ;;  %v4704_v46 = vsub.s32 1, %v4613_v14  ;;  %s4512_s5 = smov 64   ;;  %s4513_s28 = smov 32   ;;  %vm510_vm2 = vcmask 254976  }
   0xb   :  { %4171 = vmatpush3.bf16.msra.mxu1 %v4652_v32  ;;  %3762 = vmatmul.mubr.msk.f32.vlgmr.msra.gmra.mrb[0].mxu0 %vm122_vm1, %v104_v39  ;;  %v73_v47 = vrot.slane %v68_v45, %v4698_v44  ;;  %vm310_vm3 = vcmask 261120   ;;  %vm2461_vm4 = vcmask 36864   ;;  %vm2535_vm6 = vcmask 1041409   ;;  %s4516_s17 = smov [#allocation5]  }
   0xc   :  { %4178 = vmatprep.subr.bf16.mxu1 %v4510_v18  ;;  %197 = vmatprep.mubr.f32.mxu0 %v4508_v6  ;;  %v77_v48 = vrot.slane %v68_v45, %v4704_v46  ;;  %s3754_s18 = sshll.u32 %s4516_s17, 4  ;;  %s3755_s18 = int_to_ptr.vmem [resolvable:$true] %s3754_s18 }
   0xd   :  { %4174 = vmatpush3.bf16.msra.mxu0 %v4662_v38  ;;  %s4484_s20 = scalar_lea.vmem %s3755_s18, 16  ;;  %s4488_s21 = scalar_lea.vmem %s3755_s18, 32 }
   0xe   :  { %3938 = vmatmul.mubr.f32.vlgmr.msra.gmra.mrb[0].mxu1 %v4508_v6  ;;  %4175 = vmatprep.subr.bf16.mxu0 %v4510_v18  ;;  %p4485_p0 = scmp.ne.s32.totalorder %s3755_s18, %s4484_s20  ;;  %p4489_p1 = scmp.lt.s32.totalorder %s3755_s18, %s3755_s18 }
   0xf   :  { %4180 = vmatpush3.bf16.msra.mxu1 %v4625_v22  ;;  %3959 = vmatprep.mubr.msk.f32.mxu1 %vm4511_vm0, %v4508_v6  ;;  %p4490_p2 = scmp.lt.s32.totalorder %s4488_s21, %s4484_s20 }
  0x10   :  { %3763 = vmatmul.mubr.msk.f32.gmra.mrb[2].mxu0 %vm122_vm1, %v121_v42  ;;  %4181 = vmatprep.subr.bf16.mxu1 %v4510_v18 }
  0x11   :  { %4177 = vmatpush3.bf16.msra.mxu0 %v4675_v43  ;;  %3948 = vmatprep.mubr.msk.f32.mxu0 %vm4511_vm0, %v4508_v6  ;;  %p4491_p3 = por %p4490_p2, %p4489_p1 }
  0x12   :  { %4184 = vmatprep.subr.bf16.mxu0 %v4510_v18 }
  0x13   :  { %4183 = vmatpush3.bf16.msra.mxu1 %v4652_v32  ;;  %p4492_p4 = pnand %p4491_p3, %p4485_p0 }
  0x14   :  { %3949 = vmatmul.mubr.f32.vlgmr.msra.gmra.mrb[4].mxu0 %v4508_v6  ;;  %4190 = vmatprep.subr.bf16.mxu1 %v4510_v18 }
  0x15   :  { %4186 = vmatpush3.bf16.msra.mxu0 %v4662_v38  ;;  %3970 = vmatprep.mubr.msk.f32.mxu0 %vm4511_vm0, %v4508_v6 }
  0x16   :  { %4187 = vmatprep.subr.bf16.mxu0 %v4510_v18 }
  0x19   :  { %4189 = vmatpush3.bf16.msra.mxu0 %v4675_v43 }
  0x1a   :  { %4196 = vmatprep.subr.bf16.mxu0 %v4510_v18 }
  0xde   :  { %v193_v49 = vpop.f32.mrb[0].mxu0 }
  0xdf   :  { %v194_v50 = vadd.f32 %v193_v49, %v73_v47  ;;  %v195_v51 = vpop.f32.mrb[1].mxu0 }
  0xe0   :  { %v196_v52 = vadd.f32 %v195_v51, %v77_v48 }
  0xe1   :  { %v380_v53 = vpop.f32.mrb[0].mxu1  ;;  %v206_v54 = vcombine.high %v194_v50, %v194_v50  ;;  %v213_v55 = vrot.slane %v194_v50, %v4639_v26  ;;  %3764 = vst.sshfl [vmem:[#allocation2] sm:$0x3 pattern:$0x76325410] %v194_v50 }
  0xe2   :  { %v3939_v56 = vpop.f32.mrb[1].mxu1  ;;  %v258_v57 = vcombine.high %v196_v52, %v196_v52  ;;  %v265_v58 = vrot.slane %v196_v52, %v4639_v26  ;;  %3768 = vst.sshfl [vmem:[#allocation2 + $0x10] sm:$0x3 pattern:$0x76325410] %v196_v52 }
  0xe3   :  { %v199_v59 = vpop.f32.mrb[2].mxu0  ;;  %v220_v60 = vrot.slane %v206_v54, %v4639_v26  ;;  %v221_v61 = vcombine.high %v213_v55, %v213_v55  ;;  %3765 = vst.sshfl [vmem:[#allocation2 + $0x4] sm:$0x3 pattern:$0x76325410] %v206_v54 }
  0xe4   :  { %v200_v62 = vadd.f32 %v199_v59, %v73_v47  ;;  %v201_v63 = vpop.f32.mrb[3].mxu0  ;;  %v272_v0 = vrot.slane %v258_v57, %v4639_v26  ;;  %v273_v1 = vcombine.high %v265_v58, %v265_v58  ;;  %3769 = vst.sshfl [vmem:[#allocation2 + $0x14] sm:$0x3 pattern:$0x76325410] %v258_v57 }
  0xe5   :  { %v202_v2 = vadd.f32 %v201_v63, %v77_v48  ;;  %v222_v4 = vcombine.high %v220_v60, %v220_v60  ;;  %249 = vst [vmem:[#allocation2 + $0x2] sm:$0x3] %v221_v61 }
  0xe6   :  { %v223_v5 = vcombine.high %v200_v62, %v200_v62  ;;  %v230_v7 = vrot.slane %v200_v62, %v4639_v26  ;;  %3766 = vst.sshfl [vmem:[#allocation2 + $0x8] sm:$0x3 pattern:$0x76325410] %v200_v62  ;;  %v274_v8 = vcombine.high %v272_v0, %v272_v0  ;;  %302 = vst [vmem:[#allocation2 + $0x12] sm:$0x3] %v273_v1 }
  0xe7   :  { %v275_v9 = vcombine.high %v202_v2, %v202_v2  ;;  %v282_v10 = vrot.slane %v202_v2, %v4639_v26  ;;  %3770 = vst.sshfl [vmem:[#allocation2 + $0x18] sm:$0x3 pattern:$0x76325410] %v202_v2  ;;  %v477_v11 = vpop.f32.mrb[4].mxu0 }
  0xe8   :  { %251 = vst [vmem:[#allocation2 + $0x6] sm:$0x3] %v222_v4  ;;  %v237_v12 = vrot.slane %v223_v5, %v4639_v26  ;;  %v238_v13 = vcombine.high %v230_v7, %v230_v7  ;;  %3767 = vst.sshfl [vmem:[#allocation2 + $0xc] sm:$0x3 pattern:$0x76325410] %v223_v5 }
  0xe9   :  { %v3950_v15 = vpop.f32.mrb[5].mxu0  ;;  %304 = vst [vmem:[#allocation2 + $0x16] sm:$0x3] %v274_v8  ;;  %v289_v16 = vrot.slane %v275_v9, %v4639_v26  ;;  %v290_v17 = vcombine.high %v282_v10, %v282_v10  ;;  %v309_v21 = vld [vmem:[#allocation2] sm:$0x3] }
  0xea   :  { %3771 = vst.sshfl [vmem:[#allocation2 + $0x1c] sm:$0x3 pattern:$0x76325410] %v275_v9  ;;  %v239_v19 = vcombine.high %v237_v12, %v237_v12  ;;  %253 = vst [vmem:[#allocation2 + $0xa] sm:$0x3] %v238_v13  ;;  %v384_v25 = vadd.f32 %v380_v53, %v309_v21 }
  0xeb   :  { %v291_v20 = vcombine.high %v289_v16, %v289_v16  ;;  %306 = vst [vmem:[#allocation2 + $0x1a] sm:$0x3] %v290_v17 }
  0xec   :  { %255 = vst [vmem:[#allocation2 + $0xe] sm:$0x3] %v239_v19  ;;  %v3772_v30 = vmul.f32 -1.442695, %v384_v25  ;;  %v519_v0 = vld [vmem:[#allocation2 + $0x2] sm:$0x3] }
  0xed   :  { %308 = vst [vmem:[#allocation2 + $0x1e] sm:$0x3] %v291_v20 }
  0xf1   :  { %v618_v60 = vld [vmem:[#allocation2 + $0x1c] sm:$0x3] }
  0xf4   :  { %v410_v23 = vld [vmem:[#allocation2 + $0x1e] sm:$0x3] }
  0xf5   :  { %v481_v24 = vadd.f32 %v477_v11, %v410_v23 }
  0xf7   :  { %4295 = vtanh.f32 %v481_v24  ;;  %v3773_v29 = vmul.f32 -1.442695, %v481_v24 }
  0xf8   :  { %4297 = vtanh.f32 %v384_v25 }
  0xf9   :  { %4299 = vpow2.f32 %v3773_v29 }
  0xfa   :  { %4301 = vpow2.f32 %v3772_v30 }
 0x101   :  { %v4296_v27 = vpop.eup %4295 }
 0x102   :  { %491 = vrot.lane.b32.xlu0 %v4296_v27, %s4512_s5  ;;  %v4298_v28 = vpop.eup %4297 }
 0x103   :  { %v4300_v31 = vpop.eup %4299 }
 0x104   :  { %v485_v33 = vadd.f32 1.0, %v4300_v31  ;;  %v4302_v34 = vpop.eup %4301 }
 0x105   :  { %v388_v35 = vadd.f32 1.0, %v4302_v34 }
 0x106   :  { %394 = vrot.lane.b32.xlu0 %v4298_v28, %s4512_s5  ;;  %4303 = vrcp.f32 %v485_v33 }
 0x107   :  { %4305 = vrcp.f32 %v388_v35 }
 0x110   :  { %v4304_v36 = vpop.eup %4303 }
 0x111   :  { %v4306_v40 = vpop.eup %4305  ;;  %v489_v45 = vmul.f32 0.0, %v4304_v36 }
 0x112   :  { %v392_v49 = vmul.f32 0.0, %v4306_v40 }
 0x174   :  { %v492_v37 = vpop.permute.xlu0 %491 }
 0x175   :  { %v494_v39 = vmul.f32 %v4304_v36, %v492_v37 }
 0x177   :  { %496 = vrot.lane.b32.xlu1 %v494_v39, %s4513_s28 }
 0x178   :  { %v395_v41 = vpop.permute.xlu0 %394 }
 0x179   :  { %v397_v42 = vmul.f32 %v4306_v40, %v395_v41 }
 0x17b   :  { %399 = vrot.lane.b32.xlu1 %v397_v42, %s4513_s28 }
 0x1e9   :  { %v497_v47 = vpop.permute.xlu1 %496 }
 0x1ea   :  { %v4720_v48 = vadd.f32 %v497_v47, %v489_v45  ;;  %v729_v47 = vld [vmem:[#allocation2 + $0x4] sm:$0x3] }
 0x1ec   :  { %4307 = vtanh.f32 %v4720_v48 }
 0x1ed   :  { %v400_v50 = vpop.permute.xlu1 %399 }
 0x1ee   :  { %v4723_v51 = vadd.f32 %v400_v50, %v392_v49 }
 0x1f0   :  { %4309 = vtanh.f32 %v4723_v51 }
 0x1f6   :  { %v4308_v52 = vpop.eup %4307 }
 0x1f7   :  { %502 = vrot.lane.b32.xlu0 %v4308_v52, %s4512_s5 }
 0x1fa   :  { %v4310_v53 = vpop.eup %4309 }
 0x1fb   :  { %405 = vrot.lane.b32.xlu1 %v4310_v53, %s4512_s5 }
 0x269   :  { %v503_v54 = vpop.permute.xlu0 %502 }
 0x26a   :  { %v505_v55 = vmul.f32 %v4304_v36, %v503_v54 }
 0x26c   :  { %513 = vrot.lane.b32.xlu0 %v505_v55, %s4513_s28 }
 0x26d   :  { %v406_v56 = vpop.permute.xlu1 %405 }
 0x26e   :  { %v408_v57 = vmul.f32 %v4306_v40, %v406_v56  ;;  %v828_v40 = vld [vmem:[#allocation2 + $0x1a] sm:$0x3] }
 0x270   :  { %507 = vrot.lane.b32.xlu1 %v408_v57, %s4513_s28 }
 0x2de   :  { %v514_v58 = vpop.permute.xlu0 %513 }
 0x2df   :  { %517 = vst.msk [vmem:[#allocation4 + $0xe] sm:$0x3] %vm510_vm2, %v514_v58  ;;  %3971 = vmatmul.mubr.msk.f32.vlgmr.msra.gmra.mrb[6].mxu0 %vm310_vm3, %v514_v58 }
 0x2e0   :  { %4198 = vmatpush3.bf16.msra.mxu0 %v4662_v38  ;;  %3992 = vmatprep.mubr.msk.f32.mxu0 %vm4511_vm0, %v4508_v6 }
 0x2e1   :  { %4199 = vmatprep.subr.bf16.mxu0 %v4510_v18 }
 0x2e2   :  { %v508_v59 = vpop.permute.xlu1 %507 }
 0x2e3   :  { %511 = vst.msk [vmem:[#allocation3] sm:$0x3] %vm510_vm2, %v508_v59  ;;  %3960 = vmatmul.mubr.msk.f32.vlgmr.msra.gmra.mrb[2].mxu1 %vm310_vm3, %v508_v59 }
 0x2e4   :  { %4192 = vmatpush3.bf16.msra.mxu1 %v4625_v22  ;;  %4201 = vmatpush3.bf16.msra.mxu0 %v4675_v43 }
 0x2e5   :  { %4193 = vmatprep.subr.bf16.mxu1 %v4510_v18  ;;  %3981 = vmatprep.mubr.msk.f32.mxu1 %vm4511_vm0, %v4508_v6 }
 0x2e6   :  { %4208 = vmatprep.subr.bf16.mxu0 %v4510_v18 }
 0x2e8   :  { %4195 = vmatpush3.bf16.msra.mxu1 %v4652_v32 }
 0x2e9   :  { %4202 = vmatprep.subr.bf16.mxu1 %v4510_v18 }
 0x3b2   :  { %v687_v61 = vpop.f32.mrb[6].mxu0 }
 0x3b3   :  { %v691_v62 = vadd.f32 %v687_v61, %v618_v60  ;;  %v3972_v63 = vpop.f32.mrb[7].mxu0 }
 0x3b5   :  { %4311 = vtanh.f32 %v691_v62  ;;  %v3777_v8 = vmul.f32 -1.442695, %v691_v62 }
 0x3b6   :  { %v588_v1 = vpop.f32.mrb[2].mxu1 }
 0x3b7   :  { %v592_v2 = vadd.f32 %v588_v1, %v519_v0  ;;  %v3961_v4 = vpop.f32.mrb[3].mxu1 }
 0x3b9   :  { %4313 = vtanh.f32 %v592_v2  ;;  %v3775_v9 = vmul.f32 -1.442695, %v592_v2 }
 0x3ba   :  { %4315 = vpow2.f32 %v3777_v8 }
 0x3bb   :  { %4317 = vpow2.f32 %v3775_v9 }
 0x3bf   :  { %v4312_v5 = vpop.eup %4311 }
 0x3c0   :  { %701 = vrot.lane.b32.xlu0 %v4312_v5, %s4512_s5 }
 0x3c3   :  { %v4314_v7 = vpop.eup %4313 }
 0x3c4   :  { %602 = vrot.lane.b32.xlu1 %v4314_v7, %s4512_s5  ;;  %v4316_v10 = vpop.eup %4315 }
 0x3c5   :  { %v695_v11 = vadd.f32 1.0, %v4316_v10  ;;  %v4318_v12 = vpop.eup %4317 }
 0x3c6   :  { %v596_v13 = vadd.f32 1.0, %v4318_v12 }
 0x3c7   :  { %4319 = vrcp.f32 %v695_v11 }
 0x3c8   :  { %4321 = vrcp.f32 %v596_v13 }
 0x3d1   :  { %v4320_v15 = vpop.eup %4319 }
 0x3d2   :  { %v4322_v19 = vpop.eup %4321  ;;  %v699_v23 = vmul.f32 %v4320_v15, %v4720_v48 }
 0x3d3   :  { %v600_v27 = vmul.f32 %v4322_v19, %v4723_v51 }
 0x432   :  { %v702_v16 = vpop.permute.xlu0 %701 }
 0x433   :  { %v704_v17 = vmul.f32 %v4320_v15, %v702_v16 }
 0x435   :  { %706 = vrot.lane.b32.xlu0 %v704_v17, %s4513_s28 }
 0x436   :  { %v603_v20 = vpop.permute.xlu1 %602 }
 0x437   :  { %v605_v21 = vmul.f32 %v4322_v19, %v603_v20 }
 0x439   :  { %607 = vrot.lane.b32.xlu1 %v605_v21, %s4513_s28 }
 0x4a7   :  { %v707_v24 = vpop.permute.xlu0 %706 }
 0x4a8   :  { %v4751_v25 = vadd.f32 %v707_v24, %v699_v23  ;;  %v939_v24 = vld [vmem:[#allocation2 + $0x6] sm:$0x3] }
 0x4aa   :  { %4323 = vtanh.f32 %v4751_v25 }
 0x4ab   :  { %v608_v28 = vpop.permute.xlu1 %607 }
 0x4ac   :  { %v4755_v29 = vadd.f32 %v608_v28, %v600_v27 }
 0x4ae   :  { %4325 = vtanh.f32 %v4755_v29 }
 0x4b4   :  { %v4324_v30 = vpop.eup %4323 }
 0x4b5   :  { %712 = vrot.lane.b32.xlu0 %v4324_v30, %s4512_s5 }
 0x4b8   :  { %v4326_v31 = vpop.eup %4325 }
 0x4b9   :  { %613 = vrot.lane.b32.xlu1 %v4326_v31, %s4512_s5 }
 0x527   :  { %v713_v33 = vpop.permute.xlu0 %712 }
 0x528   :  { %v715_v34 = vmul.f32 %v4320_v15, %v713_v33 }
 0x52a   :  { %723 = vrot.lane.b32.xlu0 %v715_v34, %s4513_s28 }
 0x52b   :  { %v614_v35 = vpop.permute.xlu1 %613 }
 0x52c   :  { %v616_v36 = vmul.f32 %v4322_v19, %v614_v35  ;;  %v1038_v19 = vld [vmem:[#allocation2 + $0x18] sm:$0x3] }
 0x52e   :  { %717 = vrot.lane.b32.xlu1 %v616_v36, %s4513_s28 }
 0x59c   :  { %v724_v37 = vpop.permute.xlu0 %723 }
 0x59d   :  { %727 = vst.msk [vmem:[#allocation4 + $0xc] sm:$0x3] %vm510_vm2, %v724_v37  ;;  %3993 = vmatmul.mubr.msk.f32.vlgmr.msra.gmra.mrb[8].mxu0 %vm310_vm3, %v724_v37 }
 0x59e   :  { %4210 = vmatpush3.bf16.msra.mxu0 %v4662_v38  ;;  %4014 = vmatprep.mubr.msk.f32.mxu0 %vm4511_vm0, %v4508_v6 }
 0x59f   :  { %4211 = vmatprep.subr.bf16.mxu0 %v4510_v18 }
 0x5a0   :  { %v718_v39 = vpop.permute.xlu1 %717 }
 0x5a1   :  { %721 = vst.msk [vmem:[#allocation3 + $0x2] sm:$0x3] %vm510_vm2, %v718_v39  ;;  %3982 = vmatmul.mubr.msk.f32.vlgmr.msra.gmra.mrb[4].mxu1 %vm310_vm3, %v718_v39 }
 0x5a2   :  { %4204 = vmatpush3.bf16.msra.mxu1 %v4625_v22  ;;  %4213 = vmatpush3.bf16.msra.mxu0 %v4675_v43 }
 0x5a3   :  { %4205 = vmatprep.subr.bf16.mxu1 %v4510_v18  ;;  %4003 = vmatprep.mubr.msk.f32.mxu1 %vm4511_vm0, %v4508_v6 }
 0x5a4   :  { %4220 = vmatprep.subr.bf16.mxu0 %v4510_v18 }
 0x5a6   :  { %4207 = vmatpush3.bf16.msra.mxu1 %v4652_v32 }
 0x5a7   :  { %4214 = vmatprep.subr.bf16.mxu1 %v4510_v18 }
 0x670   :  { %v897_v41 = vpop.f32.mrb[8].mxu0 }
 0x671   :  { %v901_v42 = vadd.f32 %v897_v41, %v828_v40  ;;  %v3994_v45 = vpop.f32.mrb[9].mxu0 }
 0x673   :  { %4327 = vtanh.f32 %v901_v42  ;;  %v3781_v53 = vmul.f32 -1.442695, %v901_v42 }
 0x674   :  { %v798_v48 = vpop.f32.mrb[4].mxu1 }
 0x675   :  { %v802_v49 = vadd.f32 %v798_v48, %v729_v47  ;;  %v3983_v50 = vpop.f32.mrb[5].mxu1 }
 0x677   :  { %4329 = vtanh.f32 %v802_v49  ;;  %v3779_v54 = vmul.f32 -1.442695, %v802_v49 }
 0x678   :  { %4331 = vpow2.f32 %v3781_v53 }
 0x679   :  { %4333 = vpow2.f32 %v3779_v54 }
 0x67d   :  { %v4328_v51 = vpop.eup %4327 }
 0x67e   :  { %911 = vrot.lane.b32.xlu0 %v4328_v51, %s4512_s5 }
 0x681   :  { %v4330_v52 = vpop.eup %4329 }
 0x682   :  { %812 = vrot.lane.b32.xlu1 %v4330_v52, %s4512_s5  ;;  %v4332_v55 = vpop.eup %4331 }
 0x683   :  { %v905_v56 = vadd.f32 1.0, %v4332_v55  ;;  %v4334_v57 = vpop.eup %4333 }
 0x684   :  { %v806_v58 = vadd.f32 1.0, %v4334_v57 }
 0x685   :  { %4335 = vrcp.f32 %v905_v56 }
 0x686   :  { %4337 = vrcp.f32 %v806_v58 }
 0x68f   :  { %v4336_v59 = vpop.eup %4335 }
 0x690   :  { %v4338_v62 = vpop.eup %4337  ;;  %v909_v1 = vmul.f32 %v4336_v59, %v4751_v25 }
 0x691   :  { %v810_v5 = vmul.f32 %v4338_v62, %v4755_v29 }
 0x6f0   :  { %v912_v60 = vpop.permute.xlu0 %911 }
 0x6f1   :  { %v914_v61 = vmul.f32 %v4336_v59, %v912_v60 }
 0x6f3   :  { %916 = vrot.lane.b32.xlu0 %v914_v61, %s4513_s28 }
 0x6f4   :  { %v813_v63 = vpop.permute.xlu1 %812 }
 0x6f5   :  { %v815_v0 = vmul.f32 %v4338_v62, %v813_v63 }
 0x6f7   :  { %817 = vrot.lane.b32.xlu1 %v815_v0, %s4513_s28 }
 0x765   :  { %v917_v2 = vpop.permute.xlu0 %916 }
 0x766   :  { %v4783_v4 = vadd.f32 %v917_v2, %v909_v1  ;;  %v1149_v2 = vld [vmem:[#allocation2 + $0x8] sm:$0x3] }
 0x768   :  { %4339 = vtanh.f32 %v4783_v4 }
 0x769   :  { %v818_v7 = vpop.permute.xlu1 %817 }
 0x76a   :  { %v4787_v8 = vadd.f32 %v818_v7, %v810_v5 }
 0x76c   :  { %4341 = vtanh.f32 %v4787_v8 }
 0x772   :  { %v4340_v9 = vpop.eup %4339 }
 0x773   :  { %922 = vrot.lane.b32.xlu0 %v4340_v9, %s4512_s5 }
 0x776   :  { %v4342_v10 = vpop.eup %4341 }
 0x777   :  { %823 = vrot.lane.b32.xlu1 %v4342_v10, %s4512_s5 }
 0x7e5   :  { %v923_v11 = vpop.permute.xlu0 %922 }
 0x7e6   :  { %v925_v12 = vmul.f32 %v4336_v59, %v923_v11 }
 0x7e8   :  { %933 = vrot.lane.b32.xlu0 %v925_v12, %s4513_s28 }
 0x7e9   :  { %v824_v13 = vpop.permute.xlu1 %823 }
 0x7ea   :  { %v826_v15 = vmul.f32 %v4338_v62, %v824_v13  ;;  %v1248_v62 = vld [vmem:[#allocation2 + $0x16] sm:$0x3] }
 0x7ec   :  { %927 = vrot.lane.b32.xlu1 %v826_v15, %s4513_s28 }
 0x85a   :  { %v934_v16 = vpop.permute.xlu0 %933 }
 0x85b   :  { %937 = vst.msk [vmem:[#allocation4 + $0xa] sm:$0x3] %vm510_vm2, %v934_v16  ;;  %4015 = vmatmul.mubr.msk.f32.vlgmr.msra.gmra.mrb[10].mxu0 %vm310_vm3, %v934_v16 }
 0x85c   :  { %4222 = vmatpush3.bf16.msra.mxu0 %v4662_v38  ;;  %4036 = vmatprep.mubr.msk.f32.mxu0 %vm4511_vm0, %v4508_v6 }
 0x85d   :  { %4223 = vmatprep.subr.bf16.mxu0 %v4510_v18 }
 0x85e   :  { %v928_v17 = vpop.permute.xlu1 %927 }
 0x85f   :  { %931 = vst.msk [vmem:[#allocation3 + $0x4] sm:$0x3] %vm510_vm2, %v928_v17  ;;  %4004 = vmatmul.mubr.msk.f32.vlgmr.msra.gmra.mrb[6].mxu1 %vm310_vm3, %v928_v17 }
 0x860   :  { %4216 = vmatpush3.bf16.msra.mxu1 %v4625_v22  ;;  %4225 = vmatpush3.bf16.msra.mxu0 %v4675_v43 }
 0x861   :  { %4217 = vmatprep.subr.bf16.mxu1 %v4510_v18  ;;  %4025 = vmatprep.mubr.msk.f32.mxu1 %vm4511_vm0, %v4508_v6 }
 0x862   :  { %4232 = vmatprep.subr.bf16.mxu0 %v4510_v18 }
 0x864   :  { %4219 = vmatpush3.bf16.msra.mxu1 %v4652_v32 }
 0x865   :  { %4226 = vmatprep.subr.bf16.mxu1 %v4510_v18 }
 0x92e   :  { %v1107_v20 = vpop.f32.mrb[10].mxu0 }
 0x92f   :  { %v1111_v21 = vadd.f32 %v1107_v20, %v1038_v19  ;;  %v4016_v23 = vpop.f32.mrb[11].mxu0 }
 0x931   :  { %4343 = vtanh.f32 %v1111_v21  ;;  %v3785_v31 = vmul.f32 -1.442695, %v1111_v21 }
 0x932   :  { %v1008_v25 = vpop.f32.mrb[6].mxu1 }
 0x933   :  { %v1012_v27 = vadd.f32 %v1008_v25, %v939_v24  ;;  %v4005_v28 = vpop.f32.mrb[7].mxu1 }
 0x935   :  { %4345 = vtanh.f32 %v1012_v27  ;;  %v3783_v33 = vmul.f32 -1.442695, %v1012_v27 }
 0x936   :  { %4347 = vpow2.f32 %v3785_v31 }
 0x937   :  { %4349 = vpow2.f32 %v3783_v33 }
 0x93b   :  { %v4344_v29 = vpop.eup %4343 }
 0x93c   :  { %1121 = vrot.lane.b32.xlu0 %v4344_v29, %s4512_s5 }
 0x93f   :  { %v4346_v30 = vpop.eup %4345 }
 0x940   :  { %1022 = vrot.lane.b32.xlu1 %v4346_v30, %s4512_s5  ;;  %v4348_v34 = vpop.eup %4347 }
 0x941   :  { %v1115_v35 = vadd.f32 1.0, %v4348_v34  ;;  %v4350_v36 = vpop.eup %4349 }
 0x942   :  { %v1016_v37 = vadd.f32 1.0, %v4350_v36 }
 0x943   :  { %4351 = vrcp.f32 %v1115_v35 }
 0x944   :  { %4353 = vrcp.f32 %v1016_v37 }
 0x94d   :  { %v4352_v39 = vpop.eup %4351 }
 0x94e   :  { %v4354_v42 = vpop.eup %4353  ;;  %v1119_v48 = vmul.f32 %v4352_v39, %v4783_v4 }
 0x94f   :  { %v1020_v51 = vmul.f32 %v4354_v42, %v4787_v8 }
 0x9ae   :  { %v1122_v40 = vpop.permute.xlu0 %1121 }
 0x9af   :  { %v1124_v41 = vmul.f32 %v4352_v39, %v1122_v40 }
 0x9b1   :  { %1126 = vrot.lane.b32.xlu0 %v1124_v41, %s4513_s28 }
 0x9b2   :  { %v1023_v45 = vpop.permute.xlu1 %1022 }
 0x9b3   :  { %v1025_v47 = vmul.f32 %v4354_v42, %v1023_v45 }
 0x9b5   :  { %1027 = vrot.lane.b32.xlu1 %v1025_v47, %s4513_s28 }
 0xa23   :  { %v1127_v49 = vpop.permute.xlu0 %1126 }
 0xa24   :  { %v4815_v50 = vadd.f32 %v1127_v49, %v1119_v48  ;;  %v1359_v49 = vld [vmem:[#allocation2 + $0xa] sm:$0x3] }
 0xa26   :  { %4355 = vtanh.f32 %v4815_v50 }
 0xa27   :  { %v1028_v52 = vpop.permute.xlu1 %1027 }
 0xa28   :  { %v4819_v53 = vadd.f32 %v1028_v52, %v1020_v51 }
 0xa2a   :  { %4357 = vtanh.f32 %v4819_v53 }
 0xa30   :  { %v4356_v54 = vpop.eup %4355 }
 0xa31   :  { %1132 = vrot.lane.b32.xlu0 %v4356_v54, %s4512_s5 }
 0xa34   :  { %v4358_v55 = vpop.eup %4357 }
 0xa35   :  { %1033 = vrot.lane.b32.xlu1 %v4358_v55, %s4512_s5 }
 0xaa3   :  { %v1133_v56 = vpop.permute.xlu0 %1132 }
 0xaa4   :  { %v1135_v57 = vmul.f32 %v4352_v39, %v1133_v56 }
 0xaa6   :  { %1143 = vrot.lane.b32.xlu0 %v1135_v57, %s4513_s28 }
 0xaa7   :  { %v1034_v58 = vpop.permute.xlu1 %1033 }
 0xaa8   :  { %v1036_v59 = vmul.f32 %v4354_v42, %v1034_v58  ;;  %v1458_v42 = vld [vmem:[#allocation2 + $0x14] sm:$0x3] }
 0xaaa   :  { %1137 = vrot.lane.b32.xlu1 %v1036_v59, %s4513_s28 }
 0xb18   :  { %v1144_v60 = vpop.permute.xlu0 %1143 }
 0xb19   :  { %1147 = vst.msk [vmem:[#allocation4 + $0x8] sm:$0x3] %vm510_vm2, %v1144_v60  ;;  %4037 = vmatmul.mubr.msk.f32.vlgmr.msra.gmra.mrb[12].mxu0 %vm310_vm3, %v1144_v60 }
 0xb1a   :  { %4234 = vmatpush3.bf16.msra.mxu0 %v4662_v38  ;;  %4058 = vmatprep.mubr.msk.f32.mxu0 %vm4511_vm0, %v4508_v6 }
 0xb1b   :  { %4235 = vmatprep.subr.bf16.mxu0 %v4510_v18 }
 0xb1c   :  { %v1138_v61 = vpop.permute.xlu1 %1137 }
 0xb1d   :  { %1141 = vst.msk [vmem:[#allocation3 + $0x6] sm:$0x3] %vm510_vm2, %v1138_v61  ;;  %4026 = vmatmul.mubr.msk.f32.vlgmr.msra.gmra.mrb[8].mxu1 %vm310_vm3, %v1138_v61 }
 0xb1e   :  { %4228 = vmatpush3.bf16.msra.mxu1 %v4625_v22  ;;  %4237 = vmatpush3.bf16.msra.mxu0 %v4675_v43 }
 0xb1f   :  { %4229 = vmatprep.subr.bf16.mxu1 %v4510_v18  ;;  %4047 = vmatprep.mubr.msk.f32.mxu1 %vm4511_vm0, %v4508_v6 }
 0xb20   :  { %4244 = vmatprep.subr.bf16.mxu0 %v4510_v18 }
 0xb22   :  { %4231 = vmatpush3.bf16.msra.mxu1 %v4652_v32 }
 0xb23   :  { %4238 = vmatprep.subr.bf16.mxu1 %v4510_v18 }
 0xbec   :  { %v1317_v63 = vpop.f32.mrb[12].mxu0 }
 0xbed   :  { %v1321_v0 = vadd.f32 %v1317_v63, %v1248_v62  ;;  %v4038_v1 = vpop.f32.mrb[13].mxu0 }
 0xbef   :  { %4359 = vtanh.f32 %v1321_v0  ;;  %v3789_v10 = vmul.f32 -1.442695, %v1321_v0 }
 0xbf0   :  { %v1218_v4 = vpop.f32.mrb[8].mxu1 }
 0xbf1   :  { %v1222_v5 = vadd.f32 %v1218_v4, %v1149_v2  ;;  %v4027_v7 = vpop.f32.mrb[9].mxu1 }
 0xbf3   :  { %4361 = vtanh.f32 %v1222_v5  ;;  %v3787_v11 = vmul.f32 -1.442695, %v1222_v5 }
 0xbf4   :  { %4363 = vpow2.f32 %v3789_v10 }
 0xbf5   :  { %4365 = vpow2.f32 %v3787_v11 }
 0xbf9   :  { %v4360_v8 = vpop.eup %4359 }
 0xbfa   :  { %1331 = vrot.lane.b32.xlu0 %v4360_v8, %s4512_s5 }
 0xbfd   :  { %v4362_v9 = vpop.eup %4361 }
 0xbfe   :  { %1232 = vrot.lane.b32.xlu1 %v4362_v9, %s4512_s5  ;;  %v4364_v12 = vpop.eup %4363 }
 0xbff   :  { %v1325_v13 = vadd.f32 1.0, %v4364_v12  ;;  %v4366_v15 = vpop.eup %4365 }
 0xc00   :  { %v1226_v16 = vadd.f32 1.0, %v4366_v15 }
 0xc01   :  { %4367 = vrcp.f32 %v1325_v13 }
 0xc02   :  { %4369 = vrcp.f32 %v1226_v16 }
 0xc0b   :  { %v4368_v17 = vpop.eup %4367 }
 0xc0c   :  { %v4370_v21 = vpop.eup %4369  ;;  %v1329_v25 = vmul.f32 %v4368_v17, %v4815_v50 }
 0xc0d   :  { %v1230_v29 = vmul.f32 %v4370_v21, %v4819_v53 }
 0xc6c   :  { %v1332_v19 = vpop.permute.xlu0 %1331 }
 0xc6d   :  { %v1334_v20 = vmul.f32 %v4368_v17, %v1332_v19 }
 0xc6f   :  { %1336 = vrot.lane.b32.xlu0 %v1334_v20, %s4513_s28 }
 0xc70   :  { %v1233_v23 = vpop.permute.xlu1 %1232 }
 0xc71   :  { %v1235_v24 = vmul.f32 %v4370_v21, %v1233_v23 }
 0xc73   :  { %1237 = vrot.lane.b32.xlu1 %v1235_v24, %s4513_s28 }
 0xce1   :  { %v1337_v27 = vpop.permute.xlu0 %1336 }
 0xce2   :  { %v4847_v28 = vadd.f32 %v1337_v27, %v1329_v25  ;;  %v1569_v25 = vld [vmem:[#allocation2 + $0xc] sm:$0x3] }
 0xce4   :  { %4371 = vtanh.f32 %v4847_v28 }
 0xce5   :  { %v1238_v30 = vpop.permute.xlu1 %1237 }
 0xce6   :  { %v4851_v31 = vadd.f32 %v1238_v30, %v1230_v29 }
 0xce8   :  { %4373 = vtanh.f32 %v4851_v31 }
 0xcee   :  { %v4372_v33 = vpop.eup %4371 }
 0xcef   :  { %1342 = vrot.lane.b32.xlu0 %v4372_v33, %s4512_s5 }
 0xcf2   :  { %v4374_v34 = vpop.eup %4373 }
 0xcf3   :  { %1243 = vrot.lane.b32.xlu1 %v4374_v34, %s4512_s5 }
 0xd61   :  { %v1343_v35 = vpop.permute.xlu0 %1342 }
 0xd62   :  { %v1345_v36 = vmul.f32 %v4368_v17, %v1343_v35 }
 0xd64   :  { %1353 = vrot.lane.b32.xlu0 %v1345_v36, %s4513_s28 }
 0xd65   :  { %v1244_v37 = vpop.permute.xlu1 %1243 }
 0xd66   :  { %v1246_v39 = vmul.f32 %v4370_v21, %v1244_v37 }
 0xd68   :  { %1347 = vrot.lane.b32.xlu1 %v1246_v39, %s4513_s28 }
 0xdd6   :  { %v1354_v40 = vpop.permute.xlu0 %1353 }
 0xdd7   :  { %1357 = vst.msk [vmem:[#allocation4 + $0x6] sm:$0x3] %vm510_vm2, %v1354_v40  ;;  %4059 = vmatmul.mubr.msk.f32.vlgmr.msra.gmra.mrb[14].mxu0 %vm310_vm3, %v1354_v40 }
 0xdd8   :  { %4246 = vmatpush3.bf16.msra.mxu0 %v4662_v38  ;;  %4080 = vmatprep.mubr.msk.f32.mxu0 %vm4511_vm0, %v4508_v6 }
 0xdd9   :  { %4247 = vmatprep.subr.bf16.mxu0 %v4510_v18 }
 0xdda   :  { %v1348_v41 = vpop.permute.xlu1 %1347 }
 0xddb   :  { %1351 = vst.msk [vmem:[#allocation3 + $0x8] sm:$0x3] %vm510_vm2, %v1348_v41  ;;  %4048 = vmatmul.mubr.msk.f32.vlgmr.msra.gmra.mrb[10].mxu1 %vm310_vm3, %v1348_v41 }
 0xddc   :  { %4240 = vmatpush3.bf16.msra.mxu1 %v4625_v22  ;;  %4249 = vmatpush3.bf16.msra.mxu0 %v4675_v43 }
 0xddd   :  { %4241 = vmatprep.subr.bf16.mxu1 %v4510_v18  ;;  %4069 = vmatprep.mubr.msk.f32.mxu1 %vm4511_vm0, %v4508_v6 }
 0xdde   :  { %4256 = vmatprep.subr.bf16.mxu0 %v4510_v18 }
 0xde0   :  { %4243 = vmatpush3.bf16.msra.mxu1 %v4652_v32 }
 0xde1   :  { %4250 = vmatprep.subr.bf16.mxu1 %v4510_v18 }
 0xeaa   :  { %v1527_v45 = vpop.f32.mrb[14].mxu0 }
 0xeab   :  { %v1531_v47 = vadd.f32 %v1527_v45, %v1458_v42  ;;  %v4060_v48 = vpop.f32.mrb[15].mxu0 }
 0xead   :  { %4375 = vtanh.f32 %v1531_v47  ;;  %v3793_v55 = vmul.f32 -1.442695, %v1531_v47 }
 0xeae   :  { %v1428_v50 = vpop.f32.mrb[10].mxu1 }
 0xeaf   :  { %v1432_v51 = vadd.f32 %v1428_v50, %v1359_v49  ;;  %v4049_v52 = vpop.f32.mrb[11].mxu1 }
 0xeb1   :  { %4377 = vtanh.f32 %v1432_v51  ;;  %v3791_v56 = vmul.f32 -1.442695, %v1432_v51 }
 0xeb2   :  { %4379 = vpow2.f32 %v3793_v55 }
 0xeb3   :  { %4381 = vpow2.f32 %v3791_v56 }
 0xeb7   :  { %v4376_v53 = vpop.eup %4375 }
 0xeb8   :  { %1541 = vrot.lane.b32.xlu0 %v4376_v53, %s4512_s5 }
 0xebb   :  { %v4378_v54 = vpop.eup %4377 }
 0xebc   :  { %1442 = vrot.lane.b32.xlu1 %v4378_v54, %s4512_s5  ;;  %v4380_v57 = vpop.eup %4379 }
 0xebd   :  { %v1535_v58 = vadd.f32 1.0, %v4380_v57  ;;  %v4382_v59 = vpop.eup %4381 }
 0xebe   :  { %v1436_v60 = vadd.f32 1.0, %v4382_v59  ;;  %v1877_v59 = vld [vmem:[#allocation2 + $0x10] sm:$0x3] }
 0xebf   :  { %4383 = vrcp.f32 %v1535_v58 }
 0xec0   :  { %4385 = vrcp.f32 %v1436_v60 }
 0xec9   :  { %v4384_v61 = vpop.eup %4383 }
 0xeca   :  { %v4386_v0 = vpop.eup %4385  ;;  %v1539_v4 = vmul.f32 %v4384_v61, %v4847_v28 }
 0xecb   :  { %v1440_v8 = vmul.f32 %v4386_v0, %v4851_v31 }
 0xf2a   :  { %v1542_v62 = vpop.permute.xlu0 %1541 }
 0xf2b   :  { %v1544_v63 = vmul.f32 %v4384_v61, %v1542_v62 }
 0xf2d   :  { %1546 = vrot.lane.b32.xlu0 %v1544_v63, %s4513_s28  ;;  %v1779_v63 = vld [vmem:[#allocation2 + $0xe] sm:$0x3] }
 0xf2e   :  { %v1443_v1 = vpop.permute.xlu1 %1442 }
 0xf2f   :  { %v1445_v2 = vmul.f32 %v4386_v0, %v1443_v1 }
 0xf31   :  { %1447 = vrot.lane.b32.xlu1 %v1445_v2, %s4513_s28 }
 0xf9f   :  { %v1547_v5 = vpop.permute.xlu0 %1546 }
 0xfa0   :  { %v4879_v7 = vadd.f32 %v1547_v5, %v1539_v4 }
 0xfa2   :  { %4387 = vtanh.f32 %v4879_v7 }
 0xfa3   :  { %v1448_v9 = vpop.permute.xlu1 %1447 }
 0xfa4   :  { %v4883_v10 = vadd.f32 %v1448_v9, %v1440_v8 }
 0xfa6   :  { %4389 = vtanh.f32 %v4883_v10 }
 0xfac   :  { %v4388_v11 = vpop.eup %4387 }
 0xfad   :  { %1552 = vrot.lane.b32.xlu0 %v4388_v11, %s4512_s5 }
 0xfb0   :  { %v4390_v12 = vpop.eup %4389 }
 0xfb1   :  { %1453 = vrot.lane.b32.xlu1 %v4390_v12, %s4512_s5 }
0x101f   :  { %v1553_v13 = vpop.permute.xlu0 %1552 }
0x1020   :  { %v1555_v15 = vmul.f32 %v4384_v61, %v1553_v13 }
0x1022   :  { %1563 = vrot.lane.b32.xlu0 %v1555_v15, %s4513_s28 }
0x1023   :  { %v1454_v16 = vpop.permute.xlu1 %1453 }
0x1024   :  { %v1456_v17 = vmul.f32 %v4386_v0, %v1454_v16 }
0x1026   :  { %1557 = vrot.lane.b32.xlu1 %v1456_v17, %s4513_s28 }
0x1094   :  { %v1564_v19 = vpop.permute.xlu0 %1563 }
0x1095   :  { %1567 = vst.msk [vmem:[#allocation4 + $0x4] sm:$0x3] %vm510_vm2, %v1564_v19  ;;  %4081 = vmatmul.mubr.msk.f32.vlgmr.msra.gmra.mrb[16].mxu0 %vm310_vm3, %v1564_v19 }
0x1096   :  { %4258 = vmatpush3.bf16.msra.mxu0 %v4662_v38  ;;  %4102 = vmatprep.mubr.msk.f32.mxu0 %vm4511_vm0, %v4508_v6  ;;  %v1668_v38 = vld [vmem:[#allocation2 + $0x12] sm:$0x3] }
0x1097   :  { %4259 = vmatprep.subr.bf16.mxu0 %v4510_v18 }
0x1098   :  { %v1558_v20 = vpop.permute.xlu1 %1557 }
0x1099   :  { %1561 = vst.msk [vmem:[#allocation3 + $0xa] sm:$0x3] %vm510_vm2, %v1558_v20  ;;  %4070 = vmatmul.mubr.msk.f32.vlgmr.msra.gmra.mrb[12].mxu1 %vm310_vm3, %v1558_v20 }
0x109a   :  { %4252 = vmatpush3.bf16.msra.mxu1 %v4625_v22  ;;  %4261 = vmatpush3.bf16.msra.mxu0 %v4675_v43 }
0x109b   :  { %4253 = vmatprep.subr.bf16.mxu1 %v4510_v18  ;;  %4091 = vmatprep.mubr.msk.f32.mxu1 %vm4511_vm0, %v4508_v6 }
0x109c   :  { %4127 = vmatprep.subr.mxu0 %v4508_v6 }
0x109e   :  { %4255 = vmatpush3.bf16.msra.mxu1 %v4652_v32 }
0x1168   :  { %v1737_v21 = vpop.f32.mrb[16].mxu0 }
0x1169   :  { %v1741_v23 = vadd.f32 %v1737_v21, %v1668_v38  ;;  %v4082_v24 = vpop.f32.mrb[17].mxu0 }
0x116b   :  { %4391 = vtanh.f32 %v1741_v23  ;;  %v3797_v29 = vmul.f32 -1.442695, %v1741_v23 }
0x116c   :  { %v1638_v27 = vpop.f32.mrb[12].mxu1 }
0x116d   :  { %v1642_v28 = vadd.f32 %v1638_v27, %v1569_v25  ;;  %v4071_v22 = vpop.f32.mrb[13].mxu1 }
0x116f   :  { %4393 = vtanh.f32 %v1642_v28  ;;  %v3795_v30 = vmul.f32 -1.442695, %v1642_v28 }
0x1170   :  { %4395 = vpow2.f32 %v3797_v29  ;;  %v1992_v29 = vld [vmem:[%s5368_s8 + $0x30] sm:$0xff] }
0x1171   :  { %4397 = vpow2.f32 %v3795_v30 }
0x1175   :  { %v4392_v43 = vpop.eup %4391 }
0x1176   :  { %1751 = vrot.lane.b32.xlu0 %v4392_v43, %s4512_s5  ;;  %v1990_v43 = vld [vmem:[%s5368_s8 + $0x20] sm:$0xff] }
0x1179   :  { %v4394_v18 = vpop.eup %4393 }
0x117a   :  { %1652 = vrot.lane.b32.xlu1 %v4394_v18, %s4512_s5  ;;  %v4396_v32 = vpop.eup %4395  ;;  %v1991_v18 = vld [vmem:[%s5368_s8 + $0x28] sm:$0xff] }
0x117b   :  { %v1745_v31 = vadd.f32 1.0, %v4396_v32  ;;  %v4398_v33 = vpop.eup %4397  ;;  %v4262_v30 = vpack.c.bf16 %v1991_v18, %v1990_v43  ;;  %v1993_v32 = vld [vmem:[%s5368_s8 + $0x38] sm:$0xff] }
0x117c   :  { %v1646_v34 = vadd.f32 1.0, %v4398_v33 }
0x117d   :  { %4399 = vrcp.f32 %v1745_v31  ;;  %v4266_v31 = vpack.c.bf16 %v1993_v32, %v1992_v29  ;;  %4263 = vmatprep.subr.bf16.mxu1 %v4262_v30  ;;  %v4980_v32 = vld [vmem:[%s5370_s10] ss:$0 sm:$0xff] }
0x117e   :  { %4401 = vrcp.f32 %v1646_v34 }
0x1187   :  { %v4400_v35 = vpop.eup %4399 }
0x1188   :  { %v4402_v39 = vpop.eup %4401  ;;  %v1749_v42 = vmul.f32 %v4400_v35, %v4879_v7 }
0x1189   :  { %v1650_v48 = vmul.f32 %v4402_v39, %v4883_v10 }
0x11e8   :  { %v1752_v36 = vpop.permute.xlu0 %1751 }
0x11e9   :  { %v1754_v37 = vmul.f32 %v4400_v35, %v1752_v36  ;;  %v1987_v36 = vld [vmem:[%s5368_s8 + $0x8] sm:$0xff] }
0x11eb   :  { %1756 = vrot.lane.b32.xlu0 %v1754_v37, %s4513_s28 }
0x11ec   :  { %v1653_v40 = vpop.permute.xlu1 %1652 }
0x11ed   :  { %v1655_v41 = vmul.f32 %v4402_v39, %v1653_v40 }
0x11ef   :  { %1657 = vrot.lane.b32.xlu1 %v1655_v41, %s4513_s28 }
0x125d   :  { %v1757_v45 = vpop.permute.xlu0 %1756 }
0x125e   :  { %v1759_v47 = vadd.f32 %v1757_v45, %v1749_v42  ;;  %v2006_v42 = vld [vmem:[#allocation4 + $0x8] sm:$0x3] }
0x1260   :  { %4403 = vtanh.f32 %v1759_v47 }
0x1261   :  { %v1658_v49 = vpop.permute.xlu1 %1657 }
0x1262   :  { %v1660_v50 = vadd.f32 %v1658_v49, %v1650_v48  ;;  %v1997_v48 = vld [vmem:[#allocation3 + $0x6] sm:$0x3]  ;;  %v2007_v49 = vld [vmem:[#allocation4 + $0xa] sm:$0x3] }
0x1264   :  { %4405 = vtanh.f32 %v1660_v50 }
0x126a   :  { %v4404_v51 = vpop.eup %4403 }
0x126b   :  { %1762 = vrot.lane.b32.xlu0 %v4404_v51, %s4512_s5  ;;  %v2005_v51 = vld [vmem:[#allocation4 + $0x6] sm:$0x3] }
0x126e   :  { %v4406_v52 = vpop.eup %4405 }
0x126f   :  { %1663 = vrot.lane.b32.xlu1 %v4406_v52, %s4512_s5  ;;  %v2035_v52 = vcombine.low %v2006_v42, %v2007_v49 }
0x12dd   :  { %v1763_v53 = vpop.permute.xlu0 %1762 }
0x12de   :  { %v1765_v54 = vmul.f32 %v4400_v35, %v1763_v53  ;;  %v1986_v35 = vld [vmem:[%s5368_s8] sm:$0xff] }
0x12df   :  { %v4270_v37 = vpack.c.bf16 %v1987_v36, %v1986_v35  ;;  %v1995_v53 = vld [vmem:[#allocation3 + $0x2] sm:$0x3] }
0x12e0   :  { %1773 = vrot.lane.b32.xlu0 %v1765_v54, %s4513_s28  ;;  %v1996_v54 = vld [vmem:[#allocation3 + $0x4] sm:$0x3] }
0x12e1   :  { %v1664_v55 = vpop.permute.xlu1 %1663 }
0x12e2   :  { %v1666_v56 = vmul.f32 %v4402_v39, %v1664_v55 }
0x12e4   :  { %1767 = vrot.lane.b32.xlu1 %v1666_v56, %s4513_s28  ;;  %v2009_v56 = vld [vmem:[#allocation4 + $0xe] sm:$0x3] }
0x1352   :  { %v1774_v57 = vpop.permute.xlu0 %1773 }
0x1353   :  { %1777 = vst.msk [vmem:[#allocation4 + $0x2] sm:$0x3] %vm510_vm2, %v1774_v57  ;;  %4103 = vmatmul.mubr.msk.f32.vlgmr.msra.gmra.mrb[18].mxu0 %vm310_vm3, %v1774_v57  ;;  %v2140_v57 = vcombine.low %v1996_v54, %v1997_v48 }
0x1354   :  { %4129 = vmatprep.mubr.msk.f32.mxu0 %vm4511_vm0, %v4508_v6 }
0x1356   :  { %v1768_v58 = vpop.permute.xlu1 %1767 }
0x1357   :  { %1771 = vst.msk [vmem:[#allocation3 + $0xc] sm:$0x3] %vm510_vm2, %v1768_v58  ;;  %4092 = vmatmul.mubr.msk.f32.vlgmr.msra.gmra.mrb[14].mxu1 %vm310_vm3, %v1768_v58 }
0x1358   :  { %4265 = vmatpush3.bf16.msra.mxu1 %v4262_v30 }
0x1359   :  { %4267 = vmatprep.subr.bf16.mxu1 %v4266_v31 }
0x135c   :  { %4269 = vmatpush3.bf16.msra.mxu1 %v4266_v31 }
0x135d   :  { %4271 = vmatprep.subr.bf16.mxu1 %v4270_v37 }
0x1426   :  { %v1946_v60 = vpop.f32.mrb[18].mxu0 }
0x1427   :  { %v1950_v61 = vadd.f32 %v1946_v60, %v1877_v59  ;;  %v4104_v62 = vpop.f32.mrb[19].mxu0  ;;  %v2003_v59 = vld [vmem:[#allocation4 + $0x2] sm:$0x3] }
0x1429   :  { %4407 = vtanh.f32 %v1950_v61  ;;  %v3801_v7 = vmul.f32 -1.442695, %v1950_v61  ;;  %v1994_v61 = vld [vmem:[#allocation3] sm:$0x3] }
0x142a   :  { %v1848_v0 = vpop.f32.mrb[14].mxu1 }
0x142b   :  { %v1852_v1 = vadd.f32 %v1848_v0, %v1779_v63  ;;  %v4093_v2 = vpop.f32.mrb[15].mxu1  ;;  %v2139_v63 = vcombine.low %v1994_v61, %v1995_v53  ;;  %v2043_v0 = vrot.slane %v2035_v52, %v4639_v26 }
0x142d   :  { %4409 = vtanh.f32 %v1852_v1  ;;  %v3799_v8 = vmul.f32 -1.442695, %v1852_v1 }
0x142e   :  { %4411 = vpow2.f32 %v3801_v7  ;;  %v1989_v7 = vld [vmem:[%s5368_s8 + $0x18] sm:$0xff] }
0x142f   :  { %4413 = vpow2.f32 %v3799_v8 }
0x1433   :  { %v4408_v4 = vpop.eup %4407 }
0x1434   :  { %1960 = vrot.lane.b32.xlu0 %v4408_v4, %s4512_s5  ;;  %v2154_v4 = vrot.slane %v2140_v57, %v4639_v26 }
0x1437   :  { %v4410_v5 = vpop.eup %4409 }
0x1438   :  { %1862 = vrot.lane.b32.xlu1 %v4410_v5, %s4512_s5  ;;  %v4412_v9 = vpop.eup %4411  ;;  %v1988_v5 = vld [vmem:[%s5368_s8 + $0x10] sm:$0xff] }
0x1439   :  { %v1954_v10 = vadd.f32 1.0, %v4412_v9  ;;  %v4414_v11 = vpop.eup %4413 }
0x143a   :  { %v1856_v12 = vadd.f32 1.0, %v4414_v11  ;;  %v2147_v11 = vrot.slane %v2139_v63, %v4639_v26 }
0x143b   :  { %4415 = vrcp.f32 %v1954_v10 }
0x143c   :  { %4417 = vrcp.f32 %v1856_v12  ;;  %v1999_v12 = vld [vmem:[#allocation3 + $0xa] sm:$0x3] }
0x1445   :  { %v4416_v13 = vpop.eup %4415 }
0x1446   :  { %v4418_v17 = vpop.eup %4417  ;;  %v1958_v38 = vmul.f32 %v4416_v13, %v1759_v47  ;;  %v2004_v47 = vld [vmem:[#allocation4 + $0x4] sm:$0x3] }
0x1447   :  { %v1860_v24 = vmul.f32 %v4418_v17, %v1660_v50  ;;  %v2008_v50 = vld [vmem:[#allocation4 + $0xc] sm:$0x3]  ;;  %v2019_v55 = vcombine.low %v2004_v47, %v2005_v51 }
0x1448   :  { %v2036_v60 = vcombine.low %v2008_v50, %v2009_v56 }
0x1449   :  { %v2033_v2 = vrot.slane %v2019_v55, %v4639_v26 }
0x144a   :  { %v2050_v8 = vrot.slane %v2036_v60, %v4639_v26 }
0x14a6   :  { %v1961_v15 = vpop.permute.xlu0 %1960 }
0x14a7   :  { %v1963_v16 = vmul.f32 %v4416_v13, %v1961_v15  ;;  %v2051_v15 = vcombine.low %v2043_v0, %v2050_v8  ;;  %v4515_v0 = vmov 0  }
0x14a8   :  { %4293 = vset.pattern.permute.xlu1 %v4515_v0  ;;  %4294 = vset.pattern.permute.xlu0 %v4515_v0 }
0x14a9   :  { %1965 = vrot.lane.b32.xlu0 %v1963_v16, %s4513_s28  ;;  %v4274_v16 = vpack.c.bf16 %v1989_v7, %v1988_v5 }
0x14aa   :  { %v1863_v19 = vpop.permute.xlu1 %1862 }
0x14ab   :  { %v1865_v20 = vmul.f32 %v4418_v17, %v1863_v19  ;;  %v2155_v19 = vcombine.low %v2147_v11, %v2154_v4 }
0x14ad   :  { %1867 = vrot.lane.b32.xlu1 %v1865_v20, %s4513_s28  ;;  %v1998_v20 = vld [vmem:[#allocation3 + $0x8] sm:$0x3] }
0x151b   :  { %v1966_v21 = vpop.permute.xlu0 %1965 }
0x151c   :  { %v1968_v23 = vadd.f32 %v1966_v21, %v1958_v38  ;;  %v2156_v38 = vcombine.low %v1998_v20, %v1999_v12 }
0x151e   :  { %4419 = vtanh.f32 %v1968_v23  ;;  %v2164_v23 = vrot.slane %v2156_v38, %v4639_v26 }
0x151f   :  { %v1868_v25 = vpop.permute.xlu1 %1867 }
0x1520   :  { %v1870_v27 = vadd.f32 %v1868_v25, %v1860_v24  ;;  %v4514_v25 = vmov 1966171168  }
0x1522   :  { %4421 = vtanh.f32 %v1870_v27  ;;  %v2428_v27 = vunpack.c.l.s4 %v4514_v25 }
0x1524   :  { %v2429_v43 = vunpack.c.0.s8 %v2428_v27 }
0x1528   :  { %v4420_v28 = vpop.eup %4419 }
0x1529   :  { %1971 = vrot.lane.b32.xlu0 %v4420_v28, %s4512_s5  ;;  %v3806_v28 = vld [vmem:[%s5369_s9] ss:$0 sm:$0xff] }
0x152c   :  { %v4422_v22 = vpop.eup %4421 }
0x152d   :  { %1873 = vrot.lane.b32.xlu1 %v4422_v22, %s4512_s5 }
0x159b   :  { %v1972_v33 = vpop.permute.xlu0 %1971 }
0x159c   :  { %v1974_v34 = vmul.f32 %v4416_v13, %v1972_v33  ;;  %v2000_v13 = vld [vmem:[#allocation3 + $0xc] sm:$0x3]  ;;  %v4987_v33 = vsub.s32 %v2429_v43, %v4613_v14 }
0x159e   :  { %1982 = vrot.lane.b32.xlu0 %v1974_v34, %s4513_s28 }
0x159f   :  { %v1874_v39 = vpop.permute.xlu1 %1873 }
0x15a0   :  { %v1876_v40 = vmul.f32 %v4418_v17, %v1874_v39  ;;  %v4999_v39 = vld [vmem:[%s5372_s12] sm:$0x1f] }
0x15a2   :  { %1976 = vrot.lane.b32.xlu1 %v1876_v40, %s4513_s28 }
0x1610   :  { %v1983_v41 = vpop.permute.xlu0 %1982 }
0x1611   :  { %1985 = vst.msk [vmem:[#allocation4] sm:$0x3] %vm510_vm2, %v1983_v41 }
0x1614   :  { %v1977_v45 = vpop.permute.xlu1 %1976 }
0x1615   :  { %1980 = vst.msk [vmem:[#allocation3 + $0xe] sm:$0x3] %vm510_vm2, %v1977_v45 }
0x1618   :  { %v2002_v58 = vld [vmem:[#allocation4] sm:$0x3] }
0x1619   :  { %v2018_v62 = vcombine.low %v2002_v58, %v2003_v59 }
0x161b   :  { %v2026_v1 = vrot.slane %v2018_v62, %v4639_v26 }
0x161c   :  { %v2001_v9 = vld [vmem:[#allocation3 + $0xe] sm:$0x3] }
0x161d   :  { %v2034_v10 = vcombine.low %v2026_v1, %v2033_v2  ;;  %v2157_v17 = vcombine.low %v2000_v13, %v2001_v9  ;;  %v2313_v1 = vld [vmem:[%s5362_s2 + $0x2] sm:$0x3] }
0x161e   :  { %vm2511_vm5 = vcmp.gt.f32.partialorder %v2313_v1, 0.0 }
0x161f   :  { %4113 = vmatprep.mubr.msk.f32.mxu1 %vm310_vm3, %v2034_v10  ;;  %v2171_v21 = vrot.slane %v2157_v17, %v4639_v26  ;;  %v2512_v2 = vsel %vm2511_vm5, 1, %v4515_v0  ;;  %vm2341_vm5 = vcmask 39936  }
0x1620   :  { %4114 = vmatmul.mubr.msk.f32.vlgmr.msra.gmra.mrb[16].mxu1 %vm310_vm3, %v2051_v15 }
0x1621   :  { %4273 = vmatpush3.bf16.msra.mxu1 %v4270_v37  ;;  %4124 = vmatprep.mubr.msk.f32.mxu1 %vm310_vm3, %v2155_v19  ;;  %v2172_v24 = vcombine.low %v2164_v23, %v2171_v21  ;;  %v2526_v19 = vand.u32 127, %v70_v3 }
0x1622   :  { %4275 = vmatprep.subr.bf16.mxu1 %v4274_v16 }
0x1623   :  { %v5026_v38 = vsub.s32 %v2526_v19, %v4613_v14 }
0x1625   :  { %4277 = vmatpush3.bf16.msra.mxu1 %v4274_v16 }
0x1626   :  { %4147 = vmatprep.subr.mxu1 %v4508_v6 }
0x1628   :  { %4125 = vmatmul.mubr.msk.f32.vlgmr.msra.gmra.mrb[16].mxu1 %vm310_vm3, %v2172_v24  ;;  %vm2345_vm3 = vcmask 1044480  }
0x1629   :  { %4149 = vmatprep.mubr.msk.f32.mxu1 %vm4511_vm0, %v4508_v6  ;;  %4128 = vmatpush3.msk.msra.mxu0 %vm2345_vm3, %v4999_v39 }
0x162a   :  { %4148 = vmatpush3.msk.msra.mxu1 %vm2345_vm3, %v4999_v39  ;;  %4132 = vmatprep.subr.mxu0 %v4508_v6 }
0x162b   :  { %4157 = vmatprep.subr.mxu1 %v4508_v6 }
0x16fb   :  { %v4126_v22 = vpop.f32.mrb[16].mxu1 }
0x16fc   :  { %v4973_v18 = vadd.f32 %v4126_v22, %v3806_v28  ;;  %v2243_v29 = vpop.f32.mrb[17].mxu1 }
0x16fd   :  { %v4975_v30 = vadd.f32 %v3806_v28, %v2243_v29 }
0x16ff   :  { %v4984_v31 = vrot.slane %v4975_v30, %v4639_v26 }
0x1701   :  { %v4991_v34 = vadd.f32 %v4980_v32, %v4984_v31  ;;  %v5010_v50 = vcombine.high %v4984_v31, %v4984_v31 }
0x1703   :  { %v2433_v35 = vrot.slane %v4991_v34, %v4987_v33  ;;  %v2492_v51 = vrot.slane %v5010_v50, %v4639_v26 }
0x1705   :  { %v2441_v36 = vrot.slane %v2433_v35, %v4987_v33  ;;  %v2434_v37 = vcombine.high %v2433_v35, %v2433_v35  ;;  %v2496_v52 = vrot.slane %v2492_v51, %v4698_v44  ;;  %v2503_v63 = vrot.slane %v2492_v51, %v4704_v46 }
0x1707   :  { %v2452_v40 = vrot.slane %v2441_v36, %v4698_v44  ;;  %v2448_v41 = vrot.slane %v2434_v37, %v4987_v33 }
0x1709   :  { %v2459_v42 = vadd.f32 %v2452_v40, %v4999_v39  ;;  %v2456_v45 = vrot.slane %v2448_v41, %v4698_v44 }
0x170b   :  { %v2462_v47 = vsel %vm2461_vm4, %v2459_v42, -inf  ;;  %v2460_v48 = vadd.f32 %v2456_v45, %v4999_v39 }
0x170c   :  { %2463 = vmax.xlane.f32.xlu0 %v2462_v47 }
0x170d   :  { %v2465_v49 = vsel %vm2461_vm4, %v2460_v48, -inf }
0x170e   :  { %2466 = vmax.xlane.f32.xlu1 %v2465_v49 }
0x171f   :  { %2498 = vbcast.lane.b32.xlu1 %v2496_v52, 256 }
0x1799   :  { %v2464_v53 = vpop.xlane.xlu0 %2463 }
0x179a   :  { %v2468_v54 = vsub.f32 %v2459_v42, %v2464_v53 }
0x179b   :  { %v2467_v55 = vpop.xlane.xlu1 %2466 }
0x179c   :  { %v2470_v56 = vmul.f32 1.442695, %v2468_v54  ;;  %v2469_v57 = vsub.f32 %v2460_v48, %v2467_v55 }
0x179e   :  { %4423 = vpow2.f32 %v2470_v56  ;;  %v2472_v58 = vmul.f32 1.442695, %v2469_v57 }
0x179f   :  { %v2499_v11 = vpop.permute.xlu1 %2498 }
0x17a0   :  { %4425 = vpow2.f32 %v2472_v58 }
0x17a8   :  { %v4424_v59 = vpop.eup %4423 }
0x17a9   :  { %v2474_v60 = vsel %vm2461_vm4, %v4424_v59, 0.0  ;;  %v5054_v59 = vld [vmem:[%s5362_s2 + $0x4] sm:$0x3] }
0x17aa   :  { %v4426_v61 = vpop.eup %4425  ;;  %2475 = vadd.xlane.f32.xlu0 %v2474_v60  ;;  %vm2707_vm8 = vcmp.gt.f32.partialorder %v5054_v59, 0.0 }
0x17ab   :  { %v2477_v62 = vsel %vm2461_vm4, %v4426_v61, 0.0 }
0x17ae   :  { %2478 = vadd.xlane.f32.xlu0 %v2477_v62 }
0x17c4   :  { %2505 = vbcast.lane.b32.xlu0 %v2503_v63, 256 }
0x17c8   :  { %2514 = vperm.xlu0 %4294, %v2512_v2  }
0x1837   :  { %v2476_v4 = vpop.xlane.xlu0 %2475 }
0x1838   :  { %4427 = vlog2.f32 %v2476_v4 }
0x183b   :  { %v2479_v5 = vpop.xlane.xlu0 %2478 }
0x183c   :  { %4429 = vlog2.f32 %v2479_v5 }
0x183f   :  { %v2506_v16 = vpop.permute.xlu0 %2505 }
0x1842   :  { %v4428_v7 = vpop.eup %4427 }
0x1843   :  { %v2481_v8 = vmul.f32 0.6931472, %v4428_v7 }
0x1845   :  { %v2484_v9 = vadd.f32 %v2481_v8, %v2464_v53 }
0x1846   :  { %v4430_v10 = vpop.eup %4429 }
0x1847   :  { %v2483_v12 = vmul.f32 0.6931472, %v4430_v10  ;;  %v2509_v13 = vadd.f32 %v2499_v11, %v2484_v9  ;;  %v2515_v21 = vpop.permute.xlu0 %2514 }
0x1848   :  { %vm2516_vm7 = vcmp.eq.s32.totalorder %v2515_v21, 1 }
0x1849   :  { %v2485_v15 = vadd.f32 %v2483_v12, %v2467_v55  ;;  %2520 = vperm.xlu1 %4293, %v2509_v13   ;;  %v2263_v55 = vcombine.high %v4975_v30, %v4975_v30  ;;  %v2708_v30 = vsel %vm2707_vm8, 1, %v4515_v0  ;;  %vm3746_vm8 = vcmask 0  }
0x184b   :  { %v2510_v17 = vadd.f32 %v2506_v16, %v2485_v15  ;;  %v5046_v56 = vrot.slane %v2263_v55, %v4639_v26 }
0x184d   :  { %2523 = vperm.xlu1 %4293, %v2510_v17   ;;  %v2688_v57 = vrot.slane %v5046_v56, %v4639_v26 }
0x184f   :  { %v2692_v58 = vrot.slane %v2688_v57, %v4698_v44  ;;  %v2699_v60 = vrot.slane %v2688_v57, %v4704_v46 }
0x18c8   :  { %v2521_v20 = vpop.permute.xlu1 %2520 }
0x18c9   :  { %v2530_v24 = vrot.slane %v2521_v20, %v5026_v38 }
0x18cc   :  { %v2524_v23 = vpop.permute.xlu1 %2523 }
0x18cd   :  { %v2534_v25 = vrot.slane %v2524_v23, %v5026_v38 }
0x18cf   :  { %v2536_v27 = vsel %vm2535_vm6, %v2534_v25, %v2530_v24 }
0x18d0   :  { %v2538_v28 = vsel %vm2516_vm7, %v2536_v27, %v4991_v34 }
0x18d1   :  { %v2630_v22 = vrot.slane %v2538_v28, %v4987_v33 }
0x18d3   :  { %v2631_v43 = vcombine.high %v2630_v22, %v2630_v22  ;;  %v2638_v3 = vrot.slane %v2630_v22, %v4987_v33 }
0x18d5   :  { %v2649_v14 = vrot.slane %v2638_v3, %v4698_v44  ;;  %v2645_v29 = vrot.slane %v2631_v43, %v4987_v33 }
0x18d7   :  { %v2656_v35 = vadd.f32 %v2649_v14, %v4999_v39  ;;  %v2653_v36 = vrot.slane %v2645_v29, %v4698_v44 }
0x18d9   :  { %v2658_v37 = vsel %vm2461_vm4, %v2656_v35, -inf  ;;  %v2657_v40 = vadd.f32 %v2653_v36, %v4999_v39 }
0x18da   :  { %2659 = vmax.xlane.f32.xlu1 %v2658_v37 }
0x18db   :  { %v2661_v34 = vsel %vm2461_vm4, %v2657_v40, -inf }
0x18dc   :  { %2662 = vmax.xlane.f32.xlu0 %v2661_v34 }
0x1967   :  { %v2660_v41 = vpop.xlane.xlu1 %2659 }
0x1968   :  { %v2664_v42 = vsub.f32 %v2656_v35, %v2660_v41 }
0x1969   :  { %v2663_v45 = vpop.xlane.xlu0 %2662 }
0x196a   :  { %v2666_v47 = vmul.f32 1.442695, %v2664_v42  ;;  %v2665_v48 = vsub.f32 %v2657_v40, %v2663_v45 }
0x196c   :  { %4431 = vpow2.f32 %v2666_v47  ;;  %v2668_v49 = vmul.f32 1.442695, %v2665_v48  ;;  %v5075_v48 = vcombine.high %v5046_v56, %v5046_v56 }
0x196e   :  { %4433 = vpow2.f32 %v2668_v49  ;;  %v2881_v49 = vrot.slane %v5075_v48, %v4639_v26 }
0x1976   :  { %v4432_v51 = vpop.eup %4431 }
0x1977   :  { %v2670_v52 = vsel %vm2461_vm4, %v4432_v51, 0.0  ;;  %v2892_v51 = vrot.slane %v2881_v49, %v4704_v46 }
0x1978   :  { %v4434_v53 = vpop.eup %4433  ;;  %2671 = vadd.xlane.f32.xlu1 %v2670_v52  ;;  %v2885_v52 = vrot.slane %v2881_v49, %v4698_v44 }
0x1979   :  { %v2673_v54 = vsel %vm2461_vm4, %v4434_v53, 0.0 }
0x197a   :  { %2674 = vadd.xlane.f32.xlu0 %v2673_v54 }
0x1989   :  { %2694 = vbcast.lane.b32.xlu1 %v2692_v58, 256 }
0x1990   :  { %2701 = vbcast.lane.b32.xlu0 %v2699_v60, 256  ;;  %v5084_v60 = vld [vmem:[%s5362_s2 + $0x6] sm:$0x3] }
0x1991   :  { %vm2900_vm10 = vcmp.gt.f32.partialorder %v5084_v60, 0.0 }
0x1994   :  { %2710 = vperm.xlu0 %4294, %v2708_v30  }
0x1a05   :  { %v2672_v61 = vpop.xlane.xlu1 %2671 }
0x1a06   :  { %4435 = vlog2.f32 %v2672_v61 }
0x1a07   :  { %v2675_v62 = vpop.xlane.xlu0 %2674 }
0x1a08   :  { %4437 = vlog2.f32 %v2675_v62 }
0x1a09   :  { %v2695_v7 = vpop.permute.xlu1 %2694 }
0x1a0b   :  { %v2702_v10 = vpop.permute.xlu0 %2701 }
0x1a10   :  { %v4436_v63 = vpop.eup %4435 }
0x1a11   :  { %v2677_v1 = vmul.f32 0.6931472, %v4436_v63 }
0x1a12   :  { %v4438_v2 = vpop.eup %4437 }
0x1a13   :  { %v2679_v4 = vmul.f32 0.6931472, %v4438_v2  ;;  %v2680_v5 = vadd.f32 %v2677_v1, %v2660_v41  ;;  %v2711_v13 = vpop.permute.xlu0 %2710 }
0x1a14   :  { %vm2712_vm9 = vcmp.eq.s32.totalorder %v2711_v13, 1 }
0x1a15   :  { %v2705_v8 = vadd.f32 %v2695_v7, %v2680_v5  ;;  %v2681_v9 = vadd.f32 %v2679_v4, %v2663_v45  ;;  %v2901_v5 = vsel %vm2900_vm10, 1, %v4515_v0 }
0x1a17   :  { %2716 = vperm.xlu1 %4293, %v2705_v8   ;;  %v2706_v11 = vadd.f32 %v2702_v10, %v2681_v9 }
0x1a1b   :  { %2719 = vperm.xlu1 %4293, %v2706_v11  }
0x1a96   :  { %v2717_v12 = vpop.permute.xlu1 %2716 }
0x1a97   :  { %v2724_v16 = vrot.slane %v2717_v12, %v5026_v38 }
0x1a9a   :  { %v2720_v15 = vpop.permute.xlu1 %2719 }
0x1a9b   :  { %v2728_v17 = vrot.slane %v2720_v15, %v5026_v38 }
0x1a9d   :  { %v2729_v19 = vsel %vm2535_vm6, %v2728_v17, %v2724_v16 }
0x1a9e   :  { %v2731_v20 = vsel %vm2712_vm9, %v2729_v19, %v2538_v28 }
0x1a9f   :  { %v2823_v21 = vrot.slane %v2731_v20, %v4987_v33 }
0x1aa1   :  { %v2831_v23 = vrot.slane %v2823_v21, %v4987_v33  ;;  %v2824_v24 = vcombine.high %v2823_v21, %v2823_v21 }
0x1aa3   :  { %v2842_v25 = vrot.slane %v2831_v23, %v4698_v44  ;;  %v2838_v27 = vrot.slane %v2824_v24, %v4987_v33 }
0x1aa5   :  { %v2849_v22 = vadd.f32 %v2842_v25, %v4999_v39  ;;  %v2846_v43 = vrot.slane %v2838_v27, %v4698_v44 }
0x1aa7   :  { %v2851_v3 = vsel %vm2461_vm4, %v2849_v22, -inf  ;;  %v2850_v14 = vadd.f32 %v2846_v43, %v4999_v39 }
0x1aa8   :  { %2852 = vmax.xlane.f32.xlu1 %v2851_v3 }
0x1aa9   :  { %v2854_v28 = vsel %vm2461_vm4, %v2850_v14, -inf }
0x1aaa   :  { %2855 = vmax.xlane.f32.xlu0 %v2854_v28 }
0x1b35   :  { %v2853_v29 = vpop.xlane.xlu1 %2852 }
0x1b36   :  { %v2857_v35 = vsub.f32 %v2849_v22, %v2853_v29  ;;  %v5102_v22 = vrot.slane %v4973_v18, %v4639_v26 }
0x1b37   :  { %v2856_v36 = vpop.xlane.xlu0 %2855 }
0x1b38   :  { %v2859_v37 = vmul.f32 1.442695, %v2857_v35  ;;  %v2858_v40 = vsub.f32 %v2850_v14, %v2856_v36  ;;  %v3074_v43 = vrot.slane %v5102_v22, %v4639_v26 }
0x1b3a   :  { %4439 = vpow2.f32 %v2859_v37  ;;  %v2861_v34 = vmul.f32 1.442695, %v2858_v40  ;;  %v3078_v3 = vrot.slane %v3074_v43, %v4698_v44 }
0x1b3c   :  { %4441 = vpow2.f32 %v2861_v34 }
0x1b44   :  { %v4440_v41 = vpop.eup %4439 }
0x1b45   :  { %v2863_v42 = vsel %vm2461_vm4, %v4440_v41, 0.0 }
0x1b46   :  { %v4442_v45 = vpop.eup %4441  ;;  %2864 = vadd.xlane.f32.xlu0 %v2863_v42 }
0x1b47   :  { %v2866_v47 = vsel %vm2461_vm4, %v4442_v45, 0.0  ;;  %v5112_v45 = vld [vmem:[%s5362_s2 + $0x8] sm:$0x3] }
0x1b48   :  { %2867 = vadd.xlane.f32.xlu1 %v2866_v47  ;;  %v3085_v47 = vrot.slane %v3074_v43, %v4704_v46  ;;  %vm3093_vm12 = vcmp.gt.f32.partialorder %v5112_v45, 0.0 }
0x1b49   :  { %v3094_v49 = vsel %vm3093_vm12, 1, %v4515_v0 }
0x1b59   :  { %2894 = vbcast.lane.b32.xlu1 %v2892_v51, 256 }
0x1b5c   :  { %2887 = vbcast.lane.b32.xlu0 %v2885_v52, 256 }
0x1bd3   :  { %v2865_v53 = vpop.xlane.xlu0 %2864 }
0x1bd4   :  { %4443 = vlog2.f32 %v2865_v53 }
0x1bd5   :  { %v2868_v54 = vpop.xlane.xlu1 %2867 }
0x1bd6   :  { %4445 = vlog2.f32 %v2868_v54 }
0x1bd7   :  { %v2888_v62 = vpop.permute.xlu0 %2887 }
0x1bd9   :  { %v2895_v2 = vpop.permute.xlu1 %2894 }
0x1bde   :  { %v4444_v55 = vpop.eup %4443 }
0x1bdf   :  { %v2870_v57 = vmul.f32 0.6931472, %v4444_v55 }
0x1be0   :  { %v4446_v58 = vpop.eup %4445 }
0x1be1   :  { %v2872_v30 = vmul.f32 0.6931472, %v4446_v58  ;;  %v2873_v61 = vadd.f32 %v2870_v57, %v2853_v29 }
0x1be3   :  { %v2898_v63 = vadd.f32 %v2888_v62, %v2873_v61  ;;  %v2874_v1 = vadd.f32 %v2872_v30, %v2856_v36 }
0x1be5   :  { %v2899_v4 = vadd.f32 %v2895_v2, %v2874_v1  ;;  %2909 = vperm.xlu1 %4293, %v2898_v63  }
0x1be7   :  { %2912 = vperm.xlu0 %4294, %v2899_v4  }
0x1be9   :  { %2903 = vperm.xlu1 %4293, %v2901_v5  }
0x1c64   :  { %v2910_v7 = vpop.permute.xlu1 %2909 }
0x1c65   :  { %v2917_v9 = vrot.slane %v2910_v7, %v5026_v38 }
0x1c66   :  { %v2913_v8 = vpop.permute.xlu0 %2912 }
0x1c67   :  { %v2921_v10 = vrot.slane %v2913_v8, %v5026_v38 }
0x1c68   :  { %v2904_v11 = vpop.permute.xlu1 %2903 }
0x1c69   :  { %vm2905_vm11 = vcmp.eq.s32.totalorder %v2904_v11, 1  ;;  %v2922_v12 = vsel %vm2535_vm6, %v2921_v10, %v2917_v9 }
0x1c6a   :  { %v2924_v13 = vsel %vm2905_vm11, %v2922_v12, %v2731_v20 }
0x1c6b   :  { %v3016_v15 = vrot.slane %v2924_v13, %v4987_v33 }
0x1c6d   :  { %v3017_v16 = vcombine.high %v3016_v15, %v3016_v15  ;;  %v3024_v17 = vrot.slane %v3016_v15, %v4987_v33 }
0x1c6f   :  { %v3035_v19 = vrot.slane %v3024_v17, %v4698_v44  ;;  %v3031_v21 = vrot.slane %v3017_v16, %v4987_v33 }
0x1c71   :  { %v3042_v23 = vadd.f32 %v3035_v19, %v4999_v39  ;;  %v3039_v24 = vrot.slane %v3031_v21, %v4698_v44 }
0x1c73   :  { %v3044_v25 = vsel %vm2461_vm4, %v3042_v23, -inf  ;;  %v3043_v27 = vadd.f32 %v3039_v24, %v4999_v39 }
0x1c74   :  { %3045 = vmax.xlane.f32.xlu0 %v3044_v25 }
0x1c75   :  { %v3047_v20 = vsel %vm2461_vm4, %v3043_v27, -inf }
0x1c76   :  { %3048 = vmax.xlane.f32.xlu1 %v3047_v20 }
0x1c87   :  { %3080 = vbcast.lane.b32.xlu1 %v3078_v3, 256 }
0x1d01   :  { %v3046_v14 = vpop.xlane.xlu0 %3045 }
0x1d02   :  { %v3050_v28 = vsub.f32 %v3042_v23, %v3046_v14 }
0x1d03   :  { %v3049_v29 = vpop.xlane.xlu1 %3048 }
0x1d04   :  { %v3052_v35 = vmul.f32 1.442695, %v3050_v28  ;;  %v3051_v36 = vsub.f32 %v3043_v27, %v3049_v29 }
0x1d06   :  { %4447 = vpow2.f32 %v3052_v35  ;;  %v3054_v37 = vmul.f32 1.442695, %v3051_v36 }
0x1d07   :  { %v3081_v58 = vpop.permute.xlu1 %3080 }
0x1d08   :  { %4449 = vpow2.f32 %v3054_v37  ;;  %v5133_v37 = vcombine.high %v5102_v22, %v5102_v22 }
0x1d10   :  { %v4448_v40 = vpop.eup %4447 }
0x1d11   :  { %v3056_v34 = vsel %vm2461_vm4, %v4448_v40, 0.0  ;;  %v3267_v40 = vrot.slane %v5133_v37, %v4639_v26 }
0x1d12   :  { %v4450_v41 = vpop.eup %4449  ;;  %3057 = vadd.xlane.f32.xlu0 %v3056_v34 }
0x1d13   :  { %v3059_v42 = vsel %vm2461_vm4, %v4450_v41, 0.0  ;;  %v3278_v34 = vrot.slane %v3267_v40, %v4704_v46  ;;  %v3271_v41 = vrot.slane %v3267_v40, %v4698_v44 }
0x1d16   :  { %3060 = vadd.xlane.f32.xlu0 %v3059_v42 }
0x1d2c   :  { %3087 = vbcast.lane.b32.xlu0 %v3085_v47, 256 }
0x1d30   :  { %3096 = vperm.xlu0 %4294, %v3094_v49  }
0x1d9f   :  { %v3058_v51 = vpop.xlane.xlu0 %3057 }
0x1da0   :  { %4451 = vlog2.f32 %v3058_v51 }
0x1da3   :  { %v3061_v52 = vpop.xlane.xlu0 %3060 }
0x1da4   :  { %4453 = vlog2.f32 %v3061_v52 }
0x1da7   :  { %v3088_v63 = vpop.permute.xlu0 %3087 }
0x1daa   :  { %v4452_v53 = vpop.eup %4451 }
0x1dab   :  { %v3063_v54 = vmul.f32 0.6931472, %v4452_v53  ;;  %v5142_v53 = vld [vmem:[%s5362_s2 + $0xa] sm:$0x3] }
0x1dac   :  { %vm3286_vm14 = vcmp.gt.f32.partialorder %v5142_v53, 0.0 }
0x1dad   :  { %v3066_v55 = vadd.f32 %v3063_v54, %v3046_v14 }
0x1dae   :  { %v4454_v57 = vpop.eup %4453 }
0x1daf   :  { %v3065_v30 = vmul.f32 0.6931472, %v4454_v57  ;;  %v3091_v61 = vadd.f32 %v3081_v58, %v3066_v55  ;;  %v3097_v4 = vpop.permute.xlu0 %3096 }
0x1db0   :  { %vm3098_vm13 = vcmp.eq.s32.totalorder %v3097_v4, 1 }
0x1db1   :  { %v3067_v62 = vadd.f32 %v3065_v30, %v3049_v29  ;;  %3102 = vperm.xlu1 %4293, %v3091_v61  }
0x1db3   :  { %v3092_v1 = vadd.f32 %v3088_v63, %v3067_v62  ;;  %v3287_v63 = vsel %vm3286_vm14, 1, %v4515_v0 }
0x1db5   :  { %3105 = vperm.xlu1 %4293, %v3092_v1  }
0x1e30   :  { %v3103_v2 = vpop.permute.xlu1 %3102 }
0x1e31   :  { %v3110_v7 = vrot.slane %v3103_v2, %v5026_v38 }
0x1e34   :  { %v3106_v5 = vpop.permute.xlu1 %3105 }
0x1e35   :  { %v3114_v8 = vrot.slane %v3106_v5, %v5026_v38 }
0x1e37   :  { %v3115_v9 = vsel %vm2535_vm6, %v3114_v8, %v3110_v7 }
0x1e38   :  { %v3117_v10 = vsel %vm3098_vm13, %v3115_v9, %v2924_v13 }
0x1e39   :  { %v3209_v11 = vrot.slane %v3117_v10, %v4987_v33 }
0x1e3b   :  { %v3217_v12 = vrot.slane %v3209_v11, %v4987_v33  ;;  %v3210_v15 = vcombine.high %v3209_v11, %v3209_v11 }
0x1e3d   :  { %v3228_v16 = vrot.slane %v3217_v12, %v4698_v44  ;;  %v3224_v17 = vrot.slane %v3210_v15, %v4987_v33 }
0x1e3f   :  { %v3235_v19 = vadd.f32 %v3228_v16, %v4999_v39  ;;  %v3232_v21 = vrot.slane %v3224_v17, %v4698_v44 }
0x1e41   :  { %v3237_v23 = vsel %vm2461_vm4, %v3235_v19, -inf  ;;  %v3236_v24 = vadd.f32 %v3232_v21, %v4999_v39 }
0x1e42   :  { %3238 = vmax.xlane.f32.xlu1 %v3237_v23 }
0x1e43   :  { %v3240_v13 = vsel %vm2461_vm4, %v3236_v24, -inf }
0x1e44   :  { %3241 = vmax.xlane.f32.xlu0 %v3240_v13  ;;  %v2280_v13 = vcombine.high %v4973_v18, %v4973_v18 }
0x1ecf   :  { %v3239_v25 = vpop.xlane.xlu1 %3238 }
0x1ed0   :  { %v3243_v27 = vsub.f32 %v3235_v19, %v3239_v25 }
0x1ed1   :  { %v3242_v20 = vpop.xlane.xlu0 %3241 }
0x1ed2   :  { %v3245_v43 = vmul.f32 1.442695, %v3243_v27  ;;  %v3244_v3 = vsub.f32 %v3236_v24, %v3242_v20 }
0x1ed4   :  { %4455 = vpow2.f32 %v3245_v43  ;;  %v3247_v14 = vmul.f32 1.442695, %v3244_v3 }
0x1ed6   :  { %4457 = vpow2.f32 %v3247_v14 }
0x1ede   :  { %v4456_v28 = vpop.eup %4455 }
0x1edf   :  { %v3249_v29 = vsel %vm2461_vm4, %v4456_v28, 0.0 }
0x1ee0   :  { %v4458_v35 = vpop.eup %4457  ;;  %3250 = vadd.xlane.f32.xlu0 %v3249_v29 }
0x1ee1   :  { %v3252_v36 = vsel %vm2461_vm4, %v4458_v35, 0.0 }
0x1ee2   :  { %3253 = vadd.xlane.f32.xlu1 %v3252_v36 }
0x1ef3   :  { %3280 = vbcast.lane.b32.xlu1 %v3278_v34, 256 }
0x1ef6   :  { %3273 = vbcast.lane.b32.xlu0 %v3271_v41, 256  ;;  %v5171_v41 = vld [vmem:[%s5362_s2 + $0xc] sm:$0x3] }
0x1ef7   :  { %vm3479_vm1 = vcmp.gt.f32.partialorder %v5171_v41, 0.0 }
0x1f6d   :  { %v3251_v42 = vpop.xlane.xlu0 %3250 }
0x1f6e   :  { %4459 = vlog2.f32 %v3251_v42 }
0x1f6f   :  { %v3254_v47 = vpop.xlane.xlu1 %3253 }
0x1f70   :  { %4461 = vlog2.f32 %v3254_v47  ;;  %v3480_v47 = vsel %vm3479_vm1, 1, %v4515_v0 }
0x1f71   :  { %v3274_v57 = vpop.permute.xlu0 %3273 }
0x1f73   :  { %v3281_v61 = vpop.permute.xlu1 %3280 }
0x1f78   :  { %v4460_v49 = vpop.eup %4459 }
0x1f79   :  { %v3256_v51 = vmul.f32 0.6931472, %v4460_v49 }
0x1f7a   :  { %v4462_v52 = vpop.eup %4461 }
0x1f7b   :  { %v3258_v54 = vmul.f32 0.6931472, %v4462_v52  ;;  %v3259_v55 = vadd.f32 %v3256_v51, %v3239_v25  ;;  %v5161_v25 = vrot.slane %v2280_v13, %v4639_v26 }
0x1f7d   :  { %v3284_v58 = vadd.f32 %v3274_v57, %v3259_v55  ;;  %v3260_v30 = vadd.f32 %v3258_v54, %v3242_v20  ;;  %v3460_v27 = vrot.slane %v5161_v25, %v4639_v26 }
0x1f7f   :  { %v3285_v62 = vadd.f32 %v3281_v61, %v3260_v30  ;;  %3295 = vperm.xlu1 %4293, %v3284_v58   ;;  %v3464_v20 = vrot.slane %v3460_v27, %v4698_v44  ;;  %v3471_v42 = vrot.slane %v3460_v27, %v4704_v46  ;;  %v5210_v27 = vld [vmem:[%s5361_s1 + $0xa] sm:$0x3] }
0x1f80   :  { %4150 = vmatmul.mubr.msk.f32.vlgmr.msra.gmra.mrb[18].mxu1 %vm2341_vm5, %v5210_v27 }
0x1f81   :  { %3298 = vperm.xlu0 %4294, %v3285_v62   ;;  %4159 = vmatprep.mubr.msk.f32.mxu1 %vm4511_vm0, %v4508_v6 }
0x1f82   :  { %4158 = vmatpush3.msk.msra.mxu1 %vm2345_vm3, %v4999_v39 }
0x1f83   :  { %3289 = vperm.xlu1 %4293, %v3287_v63  }
0x1ffe   :  { %v3296_v1 = vpop.permute.xlu1 %3295 }
0x1fff   :  { %v3303_v4 = vrot.slane %v3296_v1, %v5026_v38 }
0x2000   :  { %v3299_v2 = vpop.permute.xlu0 %3298 }
0x2001   :  { %v3307_v5 = vrot.slane %v3299_v2, %v5026_v38 }
0x2002   :  { %v3290_v7 = vpop.permute.xlu1 %3289 }
0x2003   :  { %vm3291_vm15 = vcmp.eq.s32.totalorder %v3290_v7, 1  ;;  %v3308_v8 = vsel %vm2535_vm6, %v3307_v5, %v3303_v4 }
0x2004   :  { %v3310_v9 = vsel %vm3291_vm15, %v3308_v8, %v3117_v10 }
0x2005   :  { %v3402_v11 = vrot.slane %v3310_v9, %v4987_v33 }
0x2007   :  { %v3403_v12 = vcombine.high %v3402_v11, %v3402_v11  ;;  %v3410_v15 = vrot.slane %v3402_v11, %v4987_v33 }
0x2009   :  { %v3421_v16 = vrot.slane %v3410_v15, %v4698_v44  ;;  %v3417_v17 = vrot.slane %v3403_v12, %v4987_v33 }
0x200b   :  { %v3428_v19 = vadd.f32 %v3421_v16, %v4999_v39  ;;  %v3425_v21 = vrot.slane %v3417_v17, %v4698_v44 }
0x200d   :  { %v3430_v23 = vsel %vm2461_vm4, %v3428_v19, -inf  ;;  %v3429_v24 = vadd.f32 %v3425_v21, %v4999_v39 }
0x200e   :  { %3431 = vmax.xlane.f32.xlu0 %v3430_v23 }
0x200f   :  { %v3433_v10 = vsel %vm2461_vm4, %v3429_v24, -inf }
0x2010   :  { %3434 = vmax.xlane.f32.xlu1 %v3433_v10 }
0x2021   :  { %3466 = vbcast.lane.b32.xlu1 %v3464_v20, 256  ;;  %v5218_v20 = vld [vmem:[%s5361_s1 + $0x4] sm:$0x3] }
0x209b   :  { %v3432_v43 = vpop.xlane.xlu0 %3431 }
0x209c   :  { %v3436_v3 = vsub.f32 %v3428_v19, %v3432_v43 }
0x209d   :  { %v3435_v14 = vpop.xlane.xlu1 %3434 }
0x209e   :  { %v3438_v28 = vmul.f32 1.442695, %v3436_v3  ;;  %v3437_v29 = vsub.f32 %v3429_v24, %v3435_v14  ;;  %v5242_v3 = vld [vmem:[%s5361_s1 + $0x6] sm:$0x3] }
0x20a0   :  { %4463 = vpow2.f32 %v3438_v28  ;;  %v3440_v35 = vmul.f32 1.442695, %v3437_v29  ;;  %v5265_v28 = vld [vmem:[%s5361_s1 + $0xc] sm:$0x3] }
0x20a1   :  { %v3467_v58 = vpop.permute.xlu1 %3466 }
0x20a2   :  { %4465 = vpow2.f32 %v3440_v35 }
0x20aa   :  { %v4464_v36 = vpop.eup %4463 }
0x20ab   :  { %v3442_v18 = vsel %vm2461_vm4, %v4464_v36, 0.0 }
0x20ac   :  { %v4466_v40 = vpop.eup %4465  ;;  %3443 = vadd.xlane.f32.xlu0 %v3442_v18 }
0x20ad   :  { %v3445_v34 = vsel %vm2461_vm4, %v4466_v40, 0.0 }
0x20b0   :  { %3446 = vadd.xlane.f32.xlu0 %v3445_v34 }
0x20c6   :  { %3473 = vbcast.lane.b32.xlu0 %v3471_v42, 256 }
0x20ca   :  { %3482 = vperm.xlu0 %4294, %v3480_v47  }
0x2139   :  { %v3444_v49 = vpop.xlane.xlu0 %3443 }
0x213a   :  { %4467 = vlog2.f32 %v3444_v49  ;;  %v2296_v49 = vcombine.high %v5161_v25, %v5161_v25 }
0x213d   :  { %v3447_v51 = vpop.xlane.xlu0 %3446 }
0x213e   :  { %4469 = vlog2.f32 %v3447_v51  ;;  %v3653_v51 = vrot.slane %v2296_v49, %v4639_v26 }
0x2141   :  { %v3474_v63 = vpop.permute.xlu0 %3473 }
0x2144   :  { %v4468_v52 = vpop.eup %4467 }
0x2145   :  { %v3449_v54 = vmul.f32 0.6931472, %v4468_v52  ;;  %v3664_v52 = vrot.slane %v3653_v51, %v4704_v46  ;;  %v5281_v46 = vld [vmem:[%s5362_s2 + $0xe] sm:$0x3] }
0x2147   :  { %v3452_v55 = vadd.f32 %v3449_v54, %v3432_v43  ;;  %v5234_v43 = vld [vmem:[%s5361_s1 + $0xe] sm:$0x3]  ;;  %v3657_v54 = vrot.slane %v3653_v51, %v4698_v44 }
0x2148   :  { %v4470_v57 = vpop.eup %4469  ;;  %4160 = vmatmul.mubr.msk.f32.vlgmr.msra.gmra.mrb[20].mxu1 %vm2341_vm5, %v5234_v43 }
0x2149   :  { %v3477_v30 = vadd.f32 %v3467_v58, %v3452_v55  ;;  %v3451_v61 = vmul.f32 0.6931472, %v4470_v57  ;;  %v3483_v4 = vpop.permute.xlu0 %3482 }
0x214a   :  { %vm3484_vm2 = vcmp.eq.s32.totalorder %v3483_v4, 1 }
0x214b   :  { %v3453_v62 = vadd.f32 %v3451_v61, %v3435_v14  ;;  %3488 = vperm.xlu1 %4293, %v3477_v30   ;;  %v5254_v14 = vld [vmem:[%s5361_s1 + $0x8] sm:$0x3] }
0x214d   :  { %v3478_v1 = vadd.f32 %v3474_v63, %v3453_v62 }
0x214f   :  { %3491 = vperm.xlu1 %4293, %v3478_v1  }
0x21ca   :  { %v3489_v2 = vpop.permute.xlu1 %3488 }
0x21cb   :  { %v3496_v7 = vrot.slane %v3489_v2, %v5026_v38 }
0x21ce   :  { %v3492_v5 = vpop.permute.xlu1 %3491 }
0x21cf   :  { %v3500_v8 = vrot.slane %v3492_v5, %v5026_v38 }
0x21d1   :  { %v3501_v11 = vsel %vm2535_vm6, %v3500_v8, %v3496_v7 }
0x21d2   :  { %v5179_v12 = vsel %vm3484_vm2, %v3501_v11, %v3310_v9 }
0x21d3   :  { %v3595_v15 = vrot.slane %v5179_v12, %v4987_v33 }
0x21d5   :  { %v3603_v16 = vrot.slane %v3595_v15, %v4987_v33  ;;  %v3596_v17 = vcombine.high %v3595_v15, %v3595_v15 }
0x21d7   :  { %v3614_v19 = vrot.slane %v3603_v16, %v4698_v44  ;;  %v3610_v21 = vrot.slane %v3596_v17, %v4987_v33  ;;  %v5196_v33 = vld [vmem:[%s5361_s1 + $0x2] sm:$0x3] }
0x21d8   :  { %4130 = vmatmul.mubr.msk.f32.vlgmr.msra.gmra.mrb[20].mxu0 %vm2341_vm5, %v5196_v33 }
0x21d9   :  { %v3621_v23 = vadd.f32 %v3614_v19, %v4999_v39  ;;  %v3618_v24 = vrot.slane %v3610_v21, %v4698_v44  ;;  %4133 = vmatpush3.msk.msra.mxu0 %vm2345_vm3, %v4999_v39  ;;  %4134 = vmatprep.mubr.msk.f32.mxu0 %vm4511_vm0, %v4508_v6 }
0x21da   :  { %4137 = vmatprep.subr.mxu0 %v4508_v6 }
0x21db   :  { %v3623_v10 = vsel %vm2461_vm4, %v3621_v23, -inf  ;;  %v3622_v13 = vadd.f32 %v3618_v24, %v4999_v39 }
0x21dc   :  { %3624 = vmax.xlane.f32.xlu1 %v3623_v10  ;;  %4135 = vmatmul.mubr.msk.f32.vlgmr.msra.gmra.mrb[22].mxu0 %vm2341_vm5, %v5218_v20  ;;  %v2337_v10 = vmul.f32 %v5196_v33, %v5010_v50 }
0x21dd   :  { %v3626_v9 = vsel %vm2461_vm4, %v3622_v13, -inf  ;;  %4138 = vmatpush3.msk.msra.mxu0 %vm2345_vm3, %v4999_v39  ;;  %4139 = vmatprep.mubr.msk.f32.mxu0 %vm4511_vm0, %v4508_v6 }
0x21de   :  { %3627 = vmax.xlane.f32.xlu0 %v3626_v9  ;;  %4142 = vmatprep.subr.mxu0 %v4508_v6 }
0x21e0   :  { %4140 = vmatmul.mubr.msk.f32.vlgmr.msra.gmra.mrb[24].mxu0 %vm2341_vm5, %v5242_v3 }
0x21e1   :  { %4143 = vmatpush3.msk.msra.mxu0 %vm2345_vm3, %v4999_v39  ;;  %4144 = vmatprep.mubr.msk.f32.mxu0 %vm4511_vm0, %v4508_v6 }
0x21e2   :  { %4152 = vmatprep.subr.mxu0 %v4508_v6 }
0x21e4   :  { %4145 = vmatmul.mubr.msk.f32.vlgmr.msra.gmra.mrb[26].mxu0 %vm2341_vm5, %v5254_v14 }
0x21e5   :  { %4153 = vmatpush3.msk.msra.mxu0 %vm2345_vm3, %v4999_v39  ;;  %4154 = vmatprep.mubr.msk.f32.mxu0 %vm4511_vm0, %v4508_v6  ;;  %vm3672_vm0 = vcmp.gt.f32.partialorder %v5281_v46, 0.0 }
0x21e6   :  { %v3673_v17 = vsel %vm3672_vm0, 1, %v4515_v0 }
0x21e8   :  { %4155 = vmatmul.mubr.msk.f32.vlgmr.msra.gmra.mrb[28].mxu0 %vm2341_vm5, %v5265_v28 }
0x2269   :  { %v3625_v29 = vpop.xlane.xlu1 %3624 }
0x226a   :  { %v3629_v35 = vsub.f32 %v3621_v23, %v3625_v29  ;;  %v3191_v23 = vpop.f32.mrb[18].mxu1 }
0x226b   :  { %v3628_v36 = vpop.xlane.xlu0 %3627  ;;  %v4151_v24 = vpop.f32.mrb[19].mxu1 }
0x226c   :  { %v3631_v18 = vmul.f32 1.442695, %v3629_v35  ;;  %v3630_v40 = vsub.f32 %v3622_v13, %v3628_v36  ;;  %v2305_v13 = vld [vmem:[%s5361_s1] sm:$0x3] }
0x226e   :  { %4471 = vpow2.f32 %v3631_v18  ;;  %v3633_v34 = vmul.f32 1.442695, %v3630_v40  ;;  %v2925_v40 = vmul.f32 %v5254_v14, %v5102_v22 }
0x2270   :  { %4473 = vpow2.f32 %v3633_v34 }
0x2278   :  { %v4472_v39 = vpop.eup %4471 }
0x2279   :  { %v3635_v42 = vsel %vm2461_vm4, %v4472_v39, 0.0  ;;  %v3311_v39 = vmul.f32 %v5265_v28, %v5161_v25  ;;  %v3822_v25 = vld [vmem:[%s5371_s11] ss:$0 sm:$0xff] }
0x227a   :  { %v4474_v6 = vpop.eup %4473  ;;  %3636 = vadd.xlane.f32.xlu0 %v3635_v42 }
0x227b   :  { %v3638_v47 = vsel %vm2461_vm4, %v4474_v6, 0.0  ;;  %vm2327_vm4 = vcmask 33792   ;;  %v3504_v6 = vmul.f32 %v5234_v43, %v2296_v49 }
0x227c   :  { %3639 = vadd.xlane.f32.xlu1 %v3638_v47  ;;  %v2338_v9 = vsel %vm2327_vm4, %v2337_v10, 0.0  ;;  %v2926_v34 = vsel %vm2327_vm4, %v2925_v40, 0.0  ;;  %v3312_v42 = vsel %vm2327_vm4, %v3311_v39, 0.0  ;;  %v4483_v39 = vld [vmem:[%s5362_s2 + $0x2] sm:$0x3] }
0x227d   :  { %v3505_v22 = vsel %vm2327_vm4, %v3504_v6, 0.0 }
0x228d   :  { %3666 = vbcast.lane.b32.xlu1 %v3664_v52, 256 }
0x2290   :  { %3659 = vbcast.lane.b32.xlu0 %v3657_v54, 256 }
0x22ab   :  { %v5276_v55 = vpop.f32.mrb[20].mxu0 }
0x22ac   :  { %v4131_v57 = vpop.f32.mrb[21].mxu0  ;;  %v2419_v49 = vmul.f32 %v5276_v55, %v2305_v13 }
0x22af   :  { %v2612_v58 = vpop.f32.mrb[22].mxu0 }
0x22b0   :  { %v4136_v30 = vpop.f32.mrb[23].mxu0  ;;  %v2616_v0 = vmul.f32 %v2612_v58, %v5196_v33 }
0x22b2   :  { %v2617_v18 = vsel %vm2327_vm4, %v2616_v0, 0.0 }
0x22b3   :  { %v2805_v61 = vpop.f32.mrb[24].mxu0 }
0x22b4   :  { %v4141_v62 = vpop.f32.mrb[25].mxu0 }
0x22b7   :  { %v2998_v19 = vpop.f32.mrb[26].mxu0 }
0x22b8   :  { %v4146_v21 = vpop.f32.mrb[27].mxu0  ;;  %v3002_v55 = vmul.f32 %v2998_v19, %v5242_v3 }
0x2307   :  { %v3637_v63 = vpop.xlane.xlu0 %3636 }
0x2308   :  { %4475 = vlog2.f32 %v3637_v63  ;;  %v2539_v63 = vmul.f32 %v5218_v20, %v5046_v56  ;;  %v3384_v56 = vpop.f32.mrb[28].mxu0 }
0x2309   :  { %v3640_v1 = vpop.xlane.xlu1 %3639 }
0x230a   :  { %4477 = vlog2.f32 %v3640_v1  ;;  %v2540_v1 = vsel %vm2327_vm4, %v2539_v63, 0.0 }
0x230b   :  { %v3660_v7 = vpop.permute.xlu0 %3659 }
0x230d   :  { %v3667_v15 = vpop.permute.xlu1 %3666 }
0x2312   :  { %v4476_v2 = vpop.eup %4475 }
0x2313   :  { %v3642_v4 = vmul.f32 0.6931472, %v4476_v2 }
0x2314   :  { %v4478_v26 = vpop.eup %4477 }
0x2315   :  { %v3644_v44 = vmul.f32 0.6931472, %v4478_v26  ;;  %v3645_v5 = vadd.f32 %v3642_v4, %v3625_v29  ;;  %v2331_v29 = vmul.f32 %v2305_v13, %v4984_v31  ;;  %v3118_v31 = vmul.f32 %v5210_v27, %v5133_v37 }
0x2316   :  { %v3003_v4 = vsel %vm2327_vm4, %v3002_v55, 0.0 }
0x2317   :  { %v3670_v8 = vadd.f32 %v3660_v7, %v3645_v5  ;;  %v3646_v11 = vadd.f32 %v3644_v44, %v3628_v36  ;;  %v2332_v35 = vsel %vm2327_vm4, %v2331_v29, 0.0  ;;  %v2809_v36 = vmul.f32 %v2805_v61, %v5218_v20  ;;  %v4156_v20 = vpop.f32.mrb[29].mxu0  ;;  %v3577_v44 = vpop.f32.mrb[20].mxu1 }
0x2318   :  { %v3119_v33 = vsel %vm2327_vm4, %v3118_v31, 0.0  ;;  %v2420_v61 = vsel %vm2327_vm4, %v2419_v49, 0.0  ;;  %v4161_v5 = vpop.f32.mrb[21].mxu1  ;;  %v3581_v19 = vmul.f32 %v3577_v44, %v5265_v28 }
0x2319   :  { %v3671_v16 = vadd.f32 %v3667_v15, %v3646_v11  ;;  %3681 = vperm.xlu1 %4293, %v3670_v8   ;;  %v2810_v50 = vsel %vm2327_vm4, %v2809_v36, 0.0  ;;  %v3388_v15 = vmul.f32 %v3384_v56, %v5210_v27 }
0x231b   :  { %3684 = vperm.xlu0 %4294, %v3671_v16   ;;  %v3389_v21 = vsel %vm2327_vm4, %v3388_v15, 0.0 }
0x231d   :  { %3675 = vperm.xlu1 %4293, %v3673_v17  }
0x2341   :  { %2339 = vadd.xlane.f32.xlu1 %v2338_v9 }
0x2345   :  { %2333 = vadd.xlane.f32.xlu1 %v2332_v35 }
0x2349   :  { %2618 = vadd.xlane.f32.xlu1 %v2617_v18 }
0x234d   :  { %2811 = vadd.xlane.f32.xlu1 %v2810_v50 }
0x2351   :  { %2927 = vadd.xlane.f32.xlu1 %v2926_v34 }
0x2355   :  { %3120 = vadd.xlane.f32.xlu1 %v3119_v33 }
0x2359   :  { %3313 = vadd.xlane.f32.xlu1 %v3312_v42 }
0x235d   :  { %3506 = vadd.xlane.f32.xlu1 %v3505_v22 }
0x2398   :  { %v3682_v47 = vpop.permute.xlu1 %3681 }
0x2399   :  { %v3689_v52 = vrot.slane %v3682_v47, %v5026_v38 }
0x239a   :  { %v3685_v51 = vpop.permute.xlu0 %3684 }
0x239b   :  { %v3693_v37 = vrot.slane %v3685_v51, %v5026_v38  ;;  %v2326_v38 = vmul.f32 %v4980_v32, %v2305_v13  ;;  %v3195_v32 = vmul.f32 %v3191_v23, %v5254_v14  ;;  %v3582_v23 = vsel %vm2327_vm4, %v3581_v19, 0.0 }
0x239c   :  { %v3676_v54 = vpop.permute.xlu1 %3675 }
0x239d   :  { %vm3677_vm7 = vcmp.eq.s32.totalorder %v3676_v54, 1  ;;  %v3694_v57 = vsel %vm2535_vm6, %v3693_v37, %v3689_v52  ;;  %v2328_v62 = vsel %vm2327_vm4, %v2326_v38, 0.0  ;;  %v3196_v26 = vsel %vm2327_vm4, %v3195_v32, 0.0 }
0x239e   :  { %v3696_v43 = vsel %vm3677_vm7, %v3694_v57, %v5179_v12  ;;  %v2732_v12 = vmul.f32 %v5242_v3, %v5075_v48  ;;  %v3697_v48 = vld [vmem:[%s5363_s3] sm:$0x3]  ;;  %vm3709_vm6 = vcmask 1024  }
0x239f   :  { %v3720_v58 = vadd.f32 %v3822_v25, %v3696_v43  ;;  %v3704_v3 = vmul.f32 %v3822_v25, %v3697_v48 }
0x23a0   :  { %v2733_v2 = vsel %vm2327_vm4, %v2732_v12, 0.0 }
0x23a1   :  { %v3721_v30 = vsel %vm2327_vm4, %v3720_v58, -inf  ;;  %v3705_v7 = vsel %vm2327_vm4, %v3704_v3, 0.0 }
0x23a2   :  { %3722 = vmax.xlane.f32.xlu0 %v3721_v30  ;;  %3706 = vadd.xlane.f32.xlu1 %v3705_v7 }
0x23a6   :  { %2421 = vadd.xlane.f32.xlu0 %v2420_v61 }
0x23aa   :  { %2329 = vadd.xlane.f32.xlu0 %v2328_v62 }
0x23ae   :  { %2541 = vadd.xlane.f32.xlu0 %v2540_v1 }
0x23b2   :  { %2734 = vadd.xlane.f32.xlu0 %v2733_v2 }
0x23b6   :  { %3004 = vadd.xlane.f32.xlu0 %v3003_v4 }
0x23ba   :  { %3197 = vadd.xlane.f32.xlu0 %v3196_v26 }
0x23ce   :  { %v2340_v24 = vpop.xlane.xlu1 %2339 }
0x23d2   :  { %v2334_v13 = vpop.xlane.xlu1 %2333 }
0x23d6   :  { %v2619_v29 = vpop.xlane.xlu1 %2618 }
0x23da   :  { %v2812_v35 = vpop.xlane.xlu1 %2811 }
0x23de   :  { %v2928_v36 = vpop.xlane.xlu1 %2927 }
0x23e2   :  { %v3121_v34 = vpop.xlane.xlu1 %3120 }
0x23e6   :  { %v3314_v54 = vpop.xlane.xlu1 %3313 }
0x242f   :  { %v3723_v8 = vpop.xlane.xlu0 %3722 }
0x2430   :  { %v3724_v14 = vsub.f32 %v3720_v58, %v3723_v8 }
0x2432   :  { %v3725_v11 = vmul.f32 1.442695, %v3724_v14 }
0x2433   :  { %v2422_v10 = vpop.xlane.xlu0 %2421 }
0x2434   :  { %4479 = vpow2.f32 %v3725_v11  ;;  %v2423_v50 = vadd.f32 %v2422_v10, %v2340_v24 }
0x2436   :  { %v2424_v42 = vmul.f32 %v4483_v39, %v2423_v50 }
0x2437   :  { %v2330_v9 = vpop.xlane.xlu0 %2329 }
0x2438   :  { %v2335_v31 = vadd.f32 %v2334_v13, %v2330_v9 }
0x243a   :  { %v2425_v51 = vadd.f32 %v2424_v42, %v2335_v31 }
0x243b   :  { %v2542_v0 = vpop.xlane.xlu0 %2541 }
0x243c   :  { %v2620_v40 = vadd.f32 %v2619_v29, %v2542_v0 }
0x243e   :  { %v4480_v16 = vpop.eup %4479  ;;  %v2621_v6 = vmul.f32 %v2620_v40, %v5054_v59  ;;  %v3507_v59 = vpop.xlane.xlu1 %3506 }
0x243f   :  { %v3727_v17 = vsel %vm2327_vm4, %v4480_v16, 0.0  ;;  %v2735_v27 = vpop.xlane.xlu0 %2734 }
0x2440   :  { %3728 = vadd.xlane.f32.xlu0 %v3727_v17  ;;  %v2813_v33 = vadd.f32 %v2812_v35, %v2735_v27  ;;  %v2622_v25 = vadd.f32 %v2621_v6, %v2425_v51 }
0x2442   :  { %v2814_v52 = vmul.f32 %v2813_v33, %v5084_v60  ;;  %v3707_v32 = vpop.xlane.xlu1 %3706 }
0x2443   :  { %v3005_v18 = vpop.xlane.xlu0 %3004 }
0x2444   :  { %3390 = vadd.xlane.f32.xlu0 %v3389_v21  ;;  %v3006_v22 = vadd.f32 %v3005_v18, %v2928_v36  ;;  %v2815_v49 = vadd.f32 %v2814_v52, %v2622_v25 }
0x2446   :  { %v3007_v57 = vmul.f32 %v3006_v22, %v5112_v45 }
0x2447   :  { %v3198_v28 = vpop.xlane.xlu0 %3197 }
0x2448   :  { %3583 = vadd.xlane.f32.xlu0 %v3582_v23  ;;  %v3199_v37 = vadd.f32 %v3198_v28, %v3121_v34  ;;  %v3008_v61 = vadd.f32 %v3007_v57, %v2815_v49 }
0x244a   :  { %v3200_v58 = vmul.f32 %v3199_v37, %v5142_v53 }
0x244c   :  { %v3201_v63 = vadd.f32 %v3200_v58, %v3008_v61 }
0x24cd   :  { %v3729_v47 = vpop.xlane.xlu0 %3728 }
0x24ce   :  { %4481 = vlog2.f32 %v3729_v47 }
0x24d1   :  { %v3391_v43 = vpop.xlane.xlu0 %3390 }
0x24d2   :  { %v3392_v30 = vadd.f32 %v3391_v43, %v3314_v54 }
0x24d4   :  { %v3393_v38 = vmul.f32 %v3392_v30, %v5171_v41 }
0x24d5   :  { %v3584_v62 = vpop.xlane.xlu0 %3583 }
0x24d6   :  { %v3585_v1 = vadd.f32 %v3584_v62, %v3507_v59  ;;  %v3394_v55 = vadd.f32 %v3393_v38, %v3201_v63 }
0x24d8   :  { %v4482_v12 = vpop.eup %4481  ;;  %v3586_v60 = vmul.f32 %v3585_v1, %v5281_v46 }
0x24d9   :  { %v3731_v2 = vmul.f32 0.6931472, %v4482_v12 }
0x24da   :  { %v3587_v4 = vadd.f32 %v3586_v60, %v3394_v55 }
0x24db   :  { %v3732_v45 = vadd.f32 %v3731_v2, %v3723_v8 }
0x24dc   :  { %v3708_v26 = vadd.f32 %v3707_v32, %v3587_v4 }
0x24dd   :  { %v3733_v56 = vsel %vm3709_vm6, %v3732_v45, 0.0 }
0x24de   :  { %3734 = vadd.xlane.f32.xlu1 %v3733_v56  ;;  %v3710_v53 = vsel %vm3709_vm6, %v3708_v26, 0.0 }
0x24df   :  { %3711 = vadd.xlane.f32.xlu0 %v3710_v53 }
0x256b   :  { %v3735_v20 = vpop.xlane.xlu1 %3734 }
0x256c   :  { %v3736_v41 = vrot.slane %v3735_v20, 4  ;;  %v3712_v44 = vpop.xlane.xlu0 %3711 }
0x256d   :  { %v3713_v5 = vrot.slane %v3712_v44, 4 }
0x256e   :  { %v3737_v48 = vadd.f32 %v3736_v41, %v3735_v20 }
0x256f   :  { %v3714_v3 = vadd.f32 %v3713_v5, %v3712_v44 }
0x2570   :  { %v3738_v7 = vrot.slane %v3737_v48, 2 }
0x2571   :  { %v3715_v14 = vrot.slane %v3714_v3, 2 }
0x2572   :  { %v3739_v46 = vadd.f32 %v3738_v7, %v3737_v48 }
0x2573   :  { %v3716_v11 = vadd.f32 %v3715_v14, %v3714_v3 }
0x2574   :  { %v3740_v15 = vrot.slane %v3739_v46, 1 }
0x2575   :  { %v3717_v16 = vrot.slane %v3716_v11, 1 }
0x2576   :  { %v3741_v17 = vadd.f32 %v3740_v15, %v3739_v46 }
0x2577   :  { %v3718_v19 = vadd.f32 %v3717_v16, %v3716_v11 }
0x2579   :  { %4280 = vpush %v3718_v19 }
0x257a   :  { %4282 = vpush %v3741_v17 }
0x25aa   :  { %s4281_s2 = spop %4280 }
0x25ab   :  { %s4283_s15 = spop %4282 }
0x25ac   :  { %s3743_s16 = ssub.f32 %s4281_s2, %s4283_s15 }
0x25ae   :  { %s3744_s19 = ssub.f32 0.0, %s3743_s16 }
0x25b0   :  { %v3745_v8 = vstv %s3744_s19 }
0x25b1   :  { %3747 = vst.msk [vmem:[#allocation5] sm:$0x1] %vm3746_vm8, %v3745_v8 }
0x25b2   :  { %4495 = shalt.err (!%p4492_p4)
}
0x25b3   :  { %s4496_s4 = scalar_lea.hbm %s5373_s13, 16 }
0x25b4   :  { %p4497_p5 = scmp.ne.s32.totalorder %s5373_s13, %s4496_s4  ;;  %p4500_p6 = scmp.lt.u32.totalorder %s4496_s4, %s5373_s13 }
0x25b6   :  { %p4502_p7 = pnand %p4500_p6, %p4497_p5 }
0x25b8   :  { %4505 = shalt.err (!%p4502_p7)
}
0x25b9   :  { %3757 = dma.vmem_to_hbm [thread:$0]  %s3755_s18, 16, %s5373_s13, [#allocation6]  }
0x25ba   :  { %4506 = dma.done.wait [#allocation6], 16  }
0x25bb   :  { %4507 = vsyncadd [#allocation6], 4294967280 }
0x25bc   :  { %3761 = vsyncpa [#allocation6], 1 }

</bundles_post_ra>
